<compile_context>
chip_gen: v6e
topology: v6e:2x2x1
jax: 0.10.0
libtpu: 0.0.40
codegen_flags: <defaults>
</compile_context>

<pallas_src>
import functools
import math

import jax
import jax.numpy as jnp
from jax.experimental import pallas as pl
from jax.experimental.pallas import tpu as pltpu


def _round_up(x, m):
    return (x + m - 1) // m * m


def conv_out_size(s, k, stride, pad):
    return (s + 2 * pad - k) // stride + 1


def _softplus(x):
    # torch.nn.functional.softplus(beta=1, threshold=20), computed in f32.
    return jnp.where(x > 20.0, x, jnp.log1p(jnp.exp(jnp.minimum(x, 20.0))))


# ---------------------------------------------------------------------------
# Kernels 1 & 2: strided 5x5 conv as a transposed im2col GEMM + bias + softplus
# ---------------------------------------------------------------------------

def _conv_gemm_kernel(w_ref, b_ref, colsT_ref, o_ref):
    # out^T block = W(N,K) @ cols^T(K,Mt); bf16 operands, f32 accumulate/epilogue.
    acc = jnp.dot(w_ref[...], colsT_ref[...], preferred_element_type=jnp.float32)
    acc = acc + b_ref[...]                              # (N,1) broadcast over lanes
    o_ref[...] = _softplus(acc).astype(o_ref.dtype)


def _im2col_T(x_nchw, k=5, stride=2, pad=2):
    """(B,C,H,W) -> cols^T of shape (C*k*k, B*Ho*Wo); K rows ordered (c, kh, kw)."""
    B, C, H, W = x_nchw.shape
    Ho = conv_out_size(H, k, stride, pad)
    Wo = conv_out_size(W, k, stride, pad)
    xp = jnp.pad(x_nchw, ((0, 0), (0, 0), (pad, pad), (pad, pad)))
    taps = [xp[:, :, a:a + stride * (Ho - 1) + 1:stride,
                     b:b + stride * (Wo - 1) + 1:stride]
            for a in range(k) for b in range(k)]        # each (B,C,Ho,Wo)
    t = jnp.stack(taps, axis=2)                         # (B,C,k*k,Ho,Wo)
    colsT = t.transpose(1, 2, 0, 3, 4).reshape(C * k * k, B * Ho * Wo)
    return colsT, Ho, Wo


def conv5x5_s2_softplus(x_nchw, w_mat, b_col):
    """x: (B,Cin,H,W) bf16.  w_mat: (Cout, Kpad) bf16 (PyTorch conv weight rows,
    K zero-padded to a multiple of 8).  b_col: (Cout,1) f32.  Returns NCHW bf16."""
    B = x_nchw.shape[0]
    cout, kp = w_mat.shape
    colsT, Ho, Wo = _im2col_T(x_nchw)
    K, M = colsT.shape
    if kp > K:
        colsT = jnp.pad(colsT, ((0, kp - K), (0, 0)))
    Mp = _round_up(M, 128)
    mt = 256 if Mp % 256 == 0 else 128                  # conv1: 2 parallel M-tiles
    if Mp > M:
        colsT = jnp.pad(colsT, ((0, 0), (0, Mp - M)))

    outT = pl.pallas_call(
        _conv_gemm_kernel,
        grid=(Mp // mt,),
        in_specs=[
            pl.BlockSpec((cout, kp), lambda m: (0, 0)),
            pl.BlockSpec((cout, 1), lambda m: (0, 0)),
            pl.BlockSpec((kp, mt), lambda m: (0, m)),
        ],
        out_specs=pl.BlockSpec((cout, mt), lambda m: (0, m)),
        out_shape=jax.ShapeDtypeStruct((cout, Mp), jnp.bfloat16),
        compiler_params=pltpu.CompilerParams(dimension_semantics=("parallel",)),
    )(w_mat, b_col, colsT)

    outT = outT[:, :M]                                  # drop M padding
    return outT.reshape(cout, B, Ho, Wo).transpose(1, 0, 2, 3)   # NCHW


# ---------------------------------------------------------------------------
# Kernel 3: conv3 + flatten + fc + softplus + (mu, logvar) + reparam sample
# ---------------------------------------------------------------------------

def _head_kernel(cols3_ref, w3_ref, b3_ref, wfc_ref, bfc_ref,
                 wmu_ref, bmu_ref, wlv_ref, blv_ref, eps_ref,
                 z_ref, mu_ref, lv_ref, *, batch, n_spatial, hidden):
    # conv3 GEMM: rows ordered (spatial p, batch b); bf16 GEMM, f32 epilogue.
    h3 = jnp.dot(cols3_ref[...], w3_ref[...], preferred_element_type=jnp.float32)
    h3 = _softplus(h3 + b3_ref[...])                    # (n_spatial*batch, 32)

    # fc over the flattened (channel, spatial) axis: one small GEMM per spatial
    # position, accumulated in f32 -> no in-kernel (sublane->lane) relayout needed.
    acc = jnp.zeros((batch, hidden), jnp.float32)
    for p in range(n_spatial):
        lhs = h3[p * batch:(p + 1) * batch, :].astype(jnp.bfloat16)   # (B, 32)
        acc = acc + jnp.dot(lhs, wfc_ref[p], preferred_element_type=jnp.float32)
    h4 = _softplus(acc + bfc_ref[...])                  # (B, hidden) f32
    h4b = h4.astype(jnp.bfloat16)

    mu = jnp.dot(h4b, wmu_ref[...], preferred_element_type=jnp.float32) + bmu_ref[...]
    lv = jnp.dot(h4b, wlv_ref[...], preferred_element_type=jnp.float32) + blv_ref[...]

    mu_ref[...] = mu
    lv_ref[...] = lv
    # reparameterized gaussian sample: z = mu + exp(0.5*logvar) * eps
    z_ref[...] = mu + jnp.exp(0.5 * lv) * eps_ref[...]


def conv3_fc_reparam_sample(h2, params, eps):
    B, C, H, W = h2.shape
    k, stride, pad = 5, 2, 2
    Ho = conv_out_size(H, k, stride, pad)
    Wo = conv_out_size(W, k, stride, pad)
    xp = jnp.pad(h2, ((0, 0), (0, 0), (pad, pad), (pad, pad)))
    taps = [xp[:, :, a:a + stride * (Ho - 1) + 1:stride,
                     b:b + stride * (Wo - 1) + 1:stride]
            for a in range(k) for b in range(k)]
    t = jnp.stack(taps, axis=2)                         # (B,C,25,Ho,Wo)
    # rows ordered (spatial p, batch b); columns ordered (cin, kh, kw)
    cols3 = t.transpose(3, 4, 0, 1, 2).reshape(Ho * Wo * B, C * k * k)
    cols3 = cols3.astype(jnp.bfloat16)

    hidden = params["bfc"].shape[1]
    z_dim = params["bmu"].shape[1]
    n_sp = Ho * Wo

    def full(shape):
        zeros = (0,) * len(shape)
        return pl.BlockSpec(shape, lambda i, _z=zeros: _z)

    kernel = functools.partial(_head_kernel, batch=B, n_spatial=n_sp, hidden=hidden)
    z, mu, lv = pl.pallas_call(
        kernel,
        grid=(1,),
        in_specs=[full(cols3.shape), full(params["w3"].shape), full(params["b3"].shape),
                  full(params["wfc"].shape), full(params["bfc"].shape),
                  full(params["wmu"].shape), full(params["bmu"].shape),
                  full(params["wlv"].shape), full(params["blv"].shape),
                  full(eps.shape)],
        out_specs=[full((B, z_dim)), full((B, z_dim)), full((B, z_dim))],
        out_shape=[jax.ShapeDtypeStruct((B, z_dim), jnp.float32)] * 3,
        compiler_params=pltpu.CompilerParams(dimension_semantics=("arbitrary",)),
    )(cols3, params["w3"], params["b3"], params["wfc"], params["bfc"],
      params["wmu"], params["bmu"], params["wlv"], params["blv"],
      eps.astype(jnp.float32))
    return z, mu, lv


# ---------------------------------------------------------------------------
# Encoder: parameters + forward
# ---------------------------------------------------------------------------

def init_encoder_params(key, input_height=28, input_channels=1, z_dim=32, hidden=800):
    s_h2 = conv_out_size(input_height, 5, 2, 2)
    s_h4 = conv_out_size(s_h2, 5, 2, 2)
    s_h8 = conv_out_size(s_h4, 5, 2, 2)
    fc_in = s_h8 * s_h8 * 32

    keys = jax.random.split(key, 12)

    def unif(k, shape, fan_in):
        bound = 1.0 / math.sqrt(fan_in)
        return jax.random.uniform(k, shape, jnp.float32, -bound, bound)

    # weights in PyTorch layouts
    w1 = unif(keys[0], (16, input_channels, 5, 5), input_channels * 25)
    b1 = unif(keys[1], (16,), input_channels * 25)
    w2 = unif(keys[2], (32, 16, 5, 5), 16 * 25)
    b2 = unif(keys[3], (32,), 16 * 25)
    w3 = unif(keys[4], (32, 32, 5, 5), 32 * 25)
    b3 = unif(keys[5], (32,), 32 * 25)
    wfc = unif(keys[6], (fc_in, hidden), fc_in)          # (in, out)
    bfc = unif(keys[7], (hidden,), fc_in)
    wmu = unif(keys[8], (hidden, z_dim), hidden)
    bmu = unif(keys[9], (z_dim,), hidden)
    wlv = unif(keys[10], (hidden, z_dim), hidden)
    blv = unif(keys[11], (z_dim,), hidden)

    # ---- repack once (at init) into the layouts the kernels consume ----
    k1 = input_channels * 25
    w1_mat = jnp.pad(w1.reshape(16, k1),
                     ((0, 0), (0, _round_up(k1, 8) - k1))).astype(jnp.bfloat16)
    w2_mat = w2.reshape(32, 16 * 25).astype(jnp.bfloat16)
    w3_mat = w3.reshape(32, 32 * 25).T.astype(jnp.bfloat16)          # (800, 32)
    # torch's h3.view(B,-1) flattens (channel, spatial); regroup fc weight rows to
    # (spatial, channel, hidden) so the fused head kernel contracts per spatial block.
    wfc3d = wfc.reshape(32, s_h8 * s_h8, hidden).transpose(1, 0, 2).astype(jnp.bfloat16)

    return dict(
        w1=w1_mat, b1=b1.reshape(16, 1),
        w2=w2_mat, b2=b2.reshape(32, 1),
        w3=w3_mat, b3=b3.reshape(1, 32),
        wfc=wfc3d, bfc=bfc.reshape(1, hidden),
        wmu=wmu.astype(jnp.bfloat16), bmu=bmu.reshape(1, z_dim),
        wlv=wlv.astype(jnp.bfloat16), blv=blv.reshape(1, z_dim),
    )


def encoder_forward(params, x, eps):
    """x: (B, C, H, H) in [0,1]; eps: (B, z_dim) ~ N(0,1).  Returns (z, mu, logvar)."""
    x = 2.0 * x - 1.0                                     # torch: x = 2*x - 1
    x = x.astype(jnp.bfloat16)
    h1 = conv5x5_s2_softplus(x, params["w1"], params["b1"])     # (B,16,14,14)
    h2 = conv5x5_s2_softplus(h1, params["w2"], params["b2"])    # (B,32,7,7)
    return conv3_fc_reparam_sample(h2, params, eps)             # z, mu, logvar


# ---------------------------------------------------------------------------

if __name__ == "__main__":
    batch = 2
    input_height = 28
    input_channels = 1
    z_dim = 32

    key = jax.random.PRNGKey(0)
    k_params, k_x, k_eps = jax.random.split(key, 3)

    params = init_encoder_params(k_params, input_height=input_height,
                                 input_channels=input_channels, z_dim=z_dim)
    x = jax.random.uniform(k_x, (batch, input_channels, input_height, input_height),
                           jnp.float32)
    eps = jax.random.normal(k_eps, (batch, z_dim), jnp.float32)

    fwd = jax.jit(encoder_forward)
    z, mu, logvar = fwd(params, x, eps)
    z, mu, logvar = jax.block_until_ready((z, mu, logvar))

    assert z.shape == (batch, z_dim), z.shape
    assert mu.shape == (batch, z_dim), mu.shape
    assert logvar.shape == (batch, z_dim), logvar.shape
    assert bool(jnp.all(jnp.isfinite(z)))
    assert bool(jnp.all(jnp.isfinite(mu)))
    assert bool(jnp.all(jnp.isfinite(logvar)))

    print("KERNEL_OK")
</pallas_src>

<mosaic_0001>
module attributes {stable_mosaic.version = 11 : i64} {
  func.func @_conv_gemm_kernel(%arg0: i32, %arg1: memref<16x32xbf16, #tpu.memory_space<vmem>>, %arg2: memref<16x1xf32, #tpu.memory_space<vmem>>, %arg3: memref<32x256xbf16, #tpu.memory_space<vmem>>, %arg4: memref<16x256xbf16, #tpu.memory_space<vmem>>) attributes {dimension_semantics = [#tpu.dimension_semantics<parallel>], iteration_bounds = array<i64: 2>, scalar_prefetch = 0 : i64, scratch_operands = 0 : i64, tpu.core_type = #tpu.core_type<tc>, window_params = [{pipeline_mode = #tpu.pipeline_mode<synchronous>, transform_indices = @transform_0, window_bounds = array<i64: 16, 32>}, {pipeline_mode = #tpu.pipeline_mode<synchronous>, transform_indices = @transform_1, window_bounds = array<i64: 16, 1>}, {transform_indices = @transform_2, window_bounds = array<i64: 32, 256>}, {transform_indices = @transform_3, window_bounds = array<i64: 16, 256>}]} {
    %c0 = arith.constant 0 : index
    %c0_0 = arith.constant 0 : index
    %0 = vector.load %arg1[%c0, %c0_0] : memref<16x32xbf16, #tpu.memory_space<vmem>>, vector<16x32xbf16>
    %c0_1 = arith.constant 0 : index
    %c0_2 = arith.constant 0 : index
    %1 = vector.load %arg3[%c0_1, %c0_2] : memref<32x256xbf16, #tpu.memory_space<vmem>>, vector<32x256xbf16>
    %cst = arith.constant dense<0.000000e+00> : vector<16x256xf32>
    %2 = tpu.matmul %0, %1, %cst {dimension_numbers = #tpu.dot_dimension_numbers<[1], [0], [0], [1], [0, 0, 1, 1], [], []>} : vector<16x32xbf16>, vector<32x256xbf16>, vector<16x256xf32> -> vector<16x256xf32>
    %c0_3 = arith.constant 0 : index
    %c0_4 = arith.constant 0 : index
    %3 = vector.load %arg2[%c0_3, %c0_4] : memref<16x1xf32, #tpu.memory_space<vmem>>, vector<16x1xf32>
    %4 = vector.broadcast %3 : vector<16x1xf32> to vector<16x256xf32>
    %5 = arith.addf %2, %4 : vector<16x256xf32>
    %cst_5 = arith.constant 2.000000e+01 : f32
    %6 = vector.broadcast %cst_5 : f32 to vector<16x256xf32>
    %7 = arith.cmpf ogt, %5, %6 : vector<16x256xf32>
    %cst_6 = arith.constant 2.000000e+01 : f32
    %8 = vector.broadcast %cst_6 : f32 to vector<16x256xf32>
    %9 = arith.minimumf %5, %8 : vector<16x256xf32>
    %10 = math.exp %9 : vector<16x256xf32>
    %11 = math.log1p %10 : vector<16x256xf32>
    %12 = arith.select %7, %5, %11 : vector<16x256xi1>, vector<16x256xf32>
    %13 = arith.truncf %12 : vector<16x256xf32> to vector<16x256xbf16>
    %c0_7 = arith.constant 0 : index
    %c0_8 = arith.constant 0 : index
    %14 = vector.load %arg4[%c0_7, %c0_8] : memref<16x256xbf16, #tpu.memory_space<vmem>>, vector<16x256xbf16>
    tpu.vector_store %arg4[%c0_7, %c0_8], %13 {strides = array<i32>} : memref<16x256xbf16, #tpu.memory_space<vmem>>, vector<16x256xbf16>,
    return
  }
  func.func @transform_0(%arg0: i32) -> (i32, i32) {
    %c0_i32 = arith.constant 0 : i32
    %c0_i32_0 = arith.constant 0 : i32
    %c0_i32_1 = arith.constant 0 : i32
    return %c0_i32, %c0_i32_0 : i32, i32
  }
  func.func @transform_1(%arg0: i32) -> (i32, i32) {
    %c0_i32 = arith.constant 0 : i32
    %c0_i32_0 = arith.constant 0 : i32
    %c0_i32_1 = arith.constant 0 : i32
    return %c0_i32, %c0_i32_0 : i32, i32
  }
  func.func @transform_2(%arg0: i32) -> (i32, i32) {
    %c0_i32 = arith.constant 0 : i32
    %c0_i32_0 = arith.constant 0 : i32
    return %c0_i32, %arg0 : i32, i32
  }
  func.func @transform_3(%arg0: i32) -> (i32, i32) {
    %c0_i32 = arith.constant 0 : i32
    %c0_i32_0 = arith.constant 0 : i32
    return %c0_i32, %arg0 : i32, i32
  }
}

module attributes {stable_mosaic.version = 11 : i64} {
  func.func @_conv_gemm_kernel(%arg0: i32, %arg1: memref<32x400xbf16, #tpu.memory_space<vmem>>, %arg2: memref<32x1xf32, #tpu.memory_space<vmem>>, %arg3: memref<400x128xbf16, #tpu.memory_space<vmem>>, %arg4: memref<32x128xbf16, #tpu.memory_space<vmem>>) attributes {dimension_semantics = [#tpu.dimension_semantics<parallel>], iteration_bounds = array<i64: 1>, scalar_prefetch = 0 : i64, scratch_operands = 0 : i64, tpu.core_type = #tpu.core_type<tc>, window_params = [{pipeline_mode = #tpu.pipeline_mode<synchronous>, transform_indices = @transform_0, window_bounds = array<i64: 32, 400>}, {pipeline_mode = #tpu.pipeline_mode<synchronous>, transform_indices = @transform_1, window_bounds = array<i64: 32, 1>}, {transform_indices = @transform_2, window_bounds = array<i64: 400, 128>}, {transform_indices = @transform_3, window_bounds = array<i64: 32, 128>}]} {
    %c0 = arith.constant 0 : index
    %c0_0 = arith.constant 0 : index
    %0 = vector.load %arg1[%c0, %c0_0] : memref<32x400xbf16, #tpu.memory_space<vmem>>, vector<32x400xbf16>
    %c0_1 = arith.constant 0 : index
    %c0_2 = arith.constant 0 : index
    %1 = vector.load %arg3[%c0_1, %c0_2] : memref<400x128xbf16, #tpu.memory_space<vmem>>, vector<400x128xbf16>
    %cst = arith.constant dense<0.000000e+00> : vector<32x128xf32>
    %2 = tpu.matmul %0, %1, %cst {dimension_numbers = #tpu.dot_dimension_numbers<[1], [0], [0], [1], [0, 0, 1, 1], [], []>} : vector<32x400xbf16>, vector<400x128xbf16>, vector<32x128xf32> -> vector<32x128xf32>
    %c0_3 = arith.constant 0 : index
    %c0_4 = arith.constant 0 : index
    %3 = vector.load %arg2[%c0_3, %c0_4] : memref<32x1xf32, #tpu.memory_space<vmem>>, vector<32x1xf32>
    %4 = vector.broadcast %3 : vector<32x1xf32> to vector<32x128xf32>
    %5 = arith.addf %2, %4 : vector<32x128xf32>
    %cst_5 = arith.constant 2.000000e+01 : f32
    %6 = vector.broadcast %cst_5 : f32 to vector<32x128xf32>
    %7 = arith.cmpf ogt, %5, %6 : vector<32x128xf32>
    %cst_6 = arith.constant 2.000000e+01 : f32
    %8 = vector.broadcast %cst_6 : f32 to vector<32x128xf32>
    %9 = arith.minimumf %5, %8 : vector<32x128xf32>
    %10 = math.exp %9 : vector<32x128xf32>
    %11 = math.log1p %10 : vector<32x128xf32>
    %12 = arith.select %7, %5, %11 : vector<32x128xi1>, vector<32x128xf32>
    %13 = arith.truncf %12 : vector<32x128xf32> to vector<32x128xbf16>
    %c0_7 = arith.constant 0 : index
    %c0_8 = arith.constant 0 : index
    %14 = vector.load %arg4[%c0_7, %c0_8] : memref<32x128xbf16, #tpu.memory_space<vmem>>, vector<32x128xbf16>
    tpu.vector_store %arg4[%c0_7, %c0_8], %13 {strides = array<i32>} : memref<32x128xbf16, #tpu.memory_space<vmem>>, vector<32x128xbf16>,
    return
  }
  func.func @transform_0(%arg0: i32) -> (i32, i32) {
    %c0_i32 = arith.constant 0 : i32
    %c0_i32_0 = arith.constant 0 : i32
    %c0_i32_1 = arith.constant 0 : i32
    return %c0_i32, %c0_i32_0 : i32, i32
  }
  func.func @transform_1(%arg0: i32) -> (i32, i32) {
    %c0_i32 = arith.constant 0 : i32
    %c0_i32_0 = arith.constant 0 : i32
    %c0_i32_1 = arith.constant 0 : i32
    return %c0_i32, %c0_i32_0 : i32, i32
  }
  func.func @transform_2(%arg0: i32) -> (i32, i32) {
    %c0_i32 = arith.constant 0 : i32
    %c0_i32_0 = arith.constant 0 : i32
    return %c0_i32, %arg0 : i32, i32
  }
  func.func @transform_3(%arg0: i32) -> (i32, i32) {
    %c0_i32 = arith.constant 0 : i32
    %c0_i32_0 = arith.constant 0 : i32
    return %c0_i32, %arg0 : i32, i32
  }
}

module attributes {stable_mosaic.version = 11 : i64} {
  func.func @_head_kernel(%arg0: i32, %arg1: memref<32x800xbf16, #tpu.memory_space<vmem>>, %arg2: memref<800x32xbf16, #tpu.memory_space<vmem>>, %arg3: memref<1x32xf32, #tpu.memory_space<vmem>>, %arg4: memref<16x32x800xbf16, #tpu.memory_space<vmem>>, %arg5: memref<1x800xf32, #tpu.memory_space<vmem>>, %arg6: memref<800x32xbf16, #tpu.memory_space<vmem>>, %arg7: memref<1x32xf32, #tpu.memory_space<vmem>>, %arg8: memref<800x32xbf16, #tpu.memory_space<vmem>>, %arg9: memref<1x32xf32, #tpu.memory_space<vmem>>, %arg10: memref<2x32xf32, #tpu.memory_space<vmem>>, %arg11: memref<2x32xf32, #tpu.memory_space<vmem>>, %arg12: memref<2x32xf32, #tpu.memory_space<vmem>>, %arg13: memref<2x32xf32, #tpu.memory_space<vmem>>) attributes {dimension_semantics = [#tpu.dimension_semantics<arbitrary>], iteration_bounds = array<i64: 1>, scalar_prefetch = 0 : i64, scratch_operands = 0 : i64, tpu.core_type = #tpu.core_type<tc>, window_params = [{pipeline_mode = #tpu.pipeline_mode<synchronous>, transform_indices = @transform_0, window_bounds = array<i64: 32, 800>}, {pipeline_mode = #tpu.pipeline_mode<synchronous>, transform_indices = @transform_1, window_bounds = array<i64: 800, 32>}, {pipeline_mode = #tpu.pipeline_mode<synchronous>, transform_indices = @transform_2, window_bounds = array<i64: 1, 32>}, {pipeline_mode = #tpu.pipeline_mode<synchronous>, transform_indices = @transform_3, window_bounds = array<i64: 16, 32, 800>}, {pipeline_mode = #tpu.pipeline_mode<synchronous>, transform_indices = @transform_4, window_bounds = array<i64: 1, 800>}, {pipeline_mode = #tpu.pipeline_mode<synchronous>, transform_indices = @transform_5, window_bounds = array<i64: 800, 32>}, {pipeline_mode = #tpu.pipeline_mode<synchronous>, transform_indices = @transform_6, window_bounds = array<i64: 1, 32>}, {pipeline_mode = #tpu.pipeline_mode<synchronous>, transform_indices = @transform_7, window_bounds = array<i64: 800, 32>}, {pipeline_mode = #tpu.pipeline_mode<synchronous>, transform_indices = @transform_8, window_bounds = array<i64: 1, 32>}, {pipeline_mode = #tpu.pipeline_mode<synchronous>, transform_indices = @transform_9, window_bounds = array<i64: 2, 32>}, {pipeline_mode = #tpu.pipeline_mode<synchronous>, transform_indices = @transform_10, window_bounds = array<i64: 2, 32>}, {pipeline_mode = #tpu.pipeline_mode<synchronous>, transform_indices = @transform_11, window_bounds = array<i64: 2, 32>}, {pipeline_mode = #tpu.pipeline_mode<synchronous>, transform_indices = @transform_12, window_bounds = array<i64: 2, 32>}]} {
    %c0 = arith.constant 0 : index
    %c0_0 = arith.constant 0 : index
    %0 = vector.load %arg1[%c0, %c0_0] : memref<32x800xbf16, #tpu.memory_space<vmem>>, vector<32x800xbf16>
    %c0_1 = arith.constant 0 : index
    %c0_2 = arith.constant 0 : index
    %1 = vector.load %arg2[%c0_1, %c0_2] : memref<800x32xbf16, #tpu.memory_space<vmem>>, vector<800x32xbf16>
    %cst = arith.constant dense<0.000000e+00> : vector<32x32xf32>
    %2 = tpu.matmul %0, %1, %cst {dimension_numbers = #tpu.dot_dimension_numbers<[1], [0], [0], [1], [0, 0, 1, 1], [], []>} : vector<32x800xbf16>, vector<800x32xbf16>, vector<32x32xf32> -> vector<32x32xf32>
    %c0_3 = arith.constant 0 : index
    %c0_4 = arith.constant 0 : index
    %3 = vector.load %arg3[%c0_3, %c0_4] : memref<1x32xf32, #tpu.memory_space<vmem>>, vector<1x32xf32>
    %4 = vector.broadcast %3 : vector<1x32xf32> to vector<32x32xf32>
    %5 = arith.addf %2, %4 : vector<32x32xf32>
    %cst_5 = arith.constant 2.000000e+01 : f32
    %6 = vector.broadcast %cst_5 : f32 to vector<32x32xf32>
    %7 = arith.cmpf ogt, %5, %6 : vector<32x32xf32>
    %cst_6 = arith.constant 2.000000e+01 : f32
    %8 = vector.broadcast %cst_6 : f32 to vector<32x32xf32>
    %9 = arith.minimumf %5, %8 : vector<32x32xf32>
    %10 = math.exp %9 : vector<32x32xf32>
    %11 = math.log1p %10 : vector<32x32xf32>
    %12 = arith.select %7, %5, %11 : vector<32x32xi1>, vector<32x32xf32>
    %cst_7 = arith.constant 0.000000e+00 : f32
    %13 = vector.broadcast %cst_7 : f32 to vector<2x800xf32>
    %14 = vector.extract_strided_slice %12 {offsets = [0, 0], sizes = [2, 32], strides = [1, 1]} : vector<32x32xf32> to vector<2x32xf32>
    %15 = arith.truncf %14 : vector<2x32xf32> to vector<2x32xbf16>
    %c0_8 = arith.constant 0 : index
    %c0_9 = arith.constant 0 : index
    %c0_10 = arith.constant 0 : index
    %16 = vector.load %arg4[%c0_8, %c0_9, %c0_10] : memref<16x32x800xbf16, #tpu.memory_space<vmem>>, vector<1x32x800xbf16>
    %17 = vector.shape_cast %16 : vector<1x32x800xbf16> to vector<32x800xbf16>
    %cst_11 = arith.constant dense<0.000000e+00> : vector<2x800xf32>
    %18 = tpu.matmul %15, %17, %cst_11 {dimension_numbers = #tpu.dot_dimension_numbers<[1], [0], [0], [1], [0, 0, 1, 1], [], []>} : vector<2x32xbf16>, vector<32x800xbf16>, vector<2x800xf32> -> vector<2x800xf32>
    %19 = arith.addf %13, %18 : vector<2x800xf32>
    %20 = vector.extract_strided_slice %12 {offsets = [2, 0], sizes = [2, 32], strides = [1, 1]} : vector<32x32xf32> to vector<2x32xf32>
    %21 = arith.truncf %20 : vector<2x32xf32> to vector<2x32xbf16>
    %c1 = arith.constant 1 : index
    %c0_12 = arith.constant 0 : index
    %c0_13 = arith.constant 0 : index
    %22 = vector.load %arg4[%c1, %c0_12, %c0_13] : memref<16x32x800xbf16, #tpu.memory_space<vmem>>, vector<1x32x800xbf16>
    %23 = vector.shape_cast %22 : vector<1x32x800xbf16> to vector<32x800xbf16>
    %cst_14 = arith.constant dense<0.000000e+00> : vector<2x800xf32>
    %24 = tpu.matmul %21, %23, %cst_14 {dimension_numbers = #tpu.dot_dimension_numbers<[1], [0], [0], [1], [0, 0, 1, 1], [], []>} : vector<2x32xbf16>, vector<32x800xbf16>, vector<2x800xf32> -> vector<2x800xf32>
    %25 = arith.addf %19, %24 : vector<2x800xf32>
    %26 = vector.extract_strided_slice %12 {offsets = [4, 0], sizes = [2, 32], strides = [1, 1]} : vector<32x32xf32> to vector<2x32xf32>
    %27 = arith.truncf %26 : vector<2x32xf32> to vector<2x32xbf16>
    %c2 = arith.constant 2 : index
    %c0_15 = arith.constant 0 : index
    %c0_16 = arith.constant 0 : index
    %28 = vector.load %arg4[%c2, %c0_15, %c0_16] : memref<16x32x800xbf16, #tpu.memory_space<vmem>>, vector<1x32x800xbf16>
    %29 = vector.shape_cast %28 : vector<1x32x800xbf16> to vector<32x800xbf16>
    %cst_17 = arith.constant dense<0.000000e+00> : vector<2x800xf32>
    %30 = tpu.matmul %27, %29, %cst_17 {dimension_numbers = #tpu.dot_dimension_numbers<[1], [0], [0], [1], [0, 0, 1, 1], [], []>} : vector<2x32xbf16>, vector<32x800xbf16>, vector<2x800xf32> -> vector<2x800xf32>
    %31 = arith.addf %25, %30 : vector<2x800xf32>
    %32 = vector.extract_strided_slice %12 {offsets = [6, 0], sizes = [2, 32], strides = [1, 1]} : vector<32x32xf32> to vector<2x32xf32>
    %33 = arith.truncf %32 : vector<2x32xf32> to vector<2x32xbf16>
    %c3 = arith.constant 3 : index
    %c0_18 = arith.constant 0 : index
    %c0_19 = arith.constant 0 : index
    %34 = vector.load %arg4[%c3, %c0_18, %c0_19] : memref<16x32x800xbf16, #tpu.memory_space<vmem>>, vector<1x32x800xbf16>
    %35 = vector.shape_cast %34 : vector<1x32x800xbf16> to vector<32x800xbf16>
    %cst_20 = arith.constant dense<0.000000e+00> : vector<2x800xf32>
    %36 = tpu.matmul %33, %35, %cst_20 {dimension_numbers = #tpu.dot_dimension_numbers<[1], [0], [0], [1], [0, 0, 1, 1], [], []>} : vector<2x32xbf16>, vector<32x800xbf16>, vector<2x800xf32> -> vector<2x800xf32>
    %37 = arith.addf %31, %36 : vector<2x800xf32>
    %38 = vector.extract_strided_slice %12 {offsets = [8, 0], sizes = [2, 32], strides = [1, 1]} : vector<32x32xf32> to vector<2x32xf32>
    %39 = arith.truncf %38 : vector<2x32xf32> to vector<2x32xbf16>
    %c4 = arith.constant 4 : index
    %c0_21 = arith.constant 0 : index
    %c0_22 = arith.constant 0 : index
    %40 = vector.load %arg4[%c4, %c0_21, %c0_22] : memref<16x32x800xbf16, #tpu.memory_space<vmem>>, vector<1x32x800xbf16>
    %41 = vector.shape_cast %40 : vector<1x32x800xbf16> to vector<32x800xbf16>
    %cst_23 = arith.constant dense<0.000000e+00> : vector<2x800xf32>
    %42 = tpu.matmul %39, %41, %cst_23 {dimension_numbers = #tpu.dot_dimension_numbers<[1], [0], [0], [1], [0, 0, 1, 1], [], []>} : vector<2x32xbf16>, vector<32x800xbf16>, vector<2x800xf32> -> vector<2x800xf32>
    %43 = arith.addf %37, %42 : vector<2x800xf32>
    %44 = vector.extract_strided_slice %12 {offsets = [10, 0], sizes = [2, 32], strides = [1, 1]} : vector<32x32xf32> to vector<2x32xf32>
    %45 = arith.truncf %44 : vector<2x32xf32> to vector<2x32xbf16>
    %c5 = arith.constant 5 : index
    %c0_24 = arith.constant 0 : index
    %c0_25 = arith.constant 0 : index
    %46 = vector.load %arg4[%c5, %c0_24, %c0_25] : memref<16x32x800xbf16, #tpu.memory_space<vmem>>, vector<1x32x800xbf16>
    %47 = vector.shape_cast %46 : vector<1x32x800xbf16> to vector<32x800xbf16>
    %cst_26 = arith.constant dense<0.000000e+00> : vector<2x800xf32>
    %48 = tpu.matmul %45, %47, %cst_26 {dimension_numbers = #tpu.dot_dimension_numbers<[1], [0], [0], [1], [0, 0, 1, 1], [], []>} : vector<2x32xbf16>, vector<32x800xbf16>, vector<2x800xf32> -> vector<2x800xf32>
    %49 = arith.addf %43, %48 : vector<2x800xf32>
    %50 = vector.extract_strided_slice %12 {offsets = [12, 0], sizes = [2, 32], strides = [1, 1]} : vector<32x32xf32> to vector<2x32xf32>
    %51 = arith.truncf %50 : vector<2x32xf32> to vector<2x32xbf16>
    %c6 = arith.constant 6 : index
    %c0_27 = arith.constant 0 : index
    %c0_28 = arith.constant 0 : index
    %52 = vector.load %arg4[%c6, %c0_27, %c0_28] : memref<16x32x800xbf16, #tpu.memory_space<vmem>>, vector<1x32x800xbf16>
    %53 = vector.shape_cast %52 : vector<1x32x800xbf16> to vector<32x800xbf16>
    %cst_29 = arith.constant dense<0.000000e+00> : vector<2x800xf32>
    %54 = tpu.matmul %51, %53, %cst_29 {dimension_numbers = #tpu.dot_dimension_numbers<[1], [0], [0], [1], [0, 0, 1, 1], [], []>} : vector<2x32xbf16>, vector<32x800xbf16>, vector<2x800xf32> -> vector<2x800xf32>
    %55 = arith.addf %49, %54 : vector<2x800xf32>
    %56 = vector.extract_strided_slice %12 {offsets = [14, 0], sizes = [2, 32], strides = [1, 1]} : vector<32x32xf32> to vector<2x32xf32>
    %57 = arith.truncf %56 : vector<2x32xf32> to vector<2x32xbf16>
    %c7 = arith.constant 7 : index
    %c0_30 = arith.constant 0 : index
    %c0_31 = arith.constant 0 : index
    %58 = vector.load %arg4[%c7, %c0_30, %c0_31] : memref<16x32x800xbf16, #tpu.memory_space<vmem>>, vector<1x32x800xbf16>
    %59 = vector.shape_cast %58 : vector<1x32x800xbf16> to vector<32x800xbf16>
    %cst_32 = arith.constant dense<0.000000e+00> : vector<2x800xf32>
    %60 = tpu.matmul %57, %59, %cst_32 {dimension_numbers = #tpu.dot_dimension_numbers<[1], [0], [0], [1], [0, 0, 1, 1], [], []>} : vector<2x32xbf16>, vector<32x800xbf16>, vector<2x800xf32> -> vector<2x800xf32>
    %61 = arith.addf %55, %60 : vector<2x800xf32>
    %62 = vector.extract_strided_slice %12 {offsets = [16, 0], sizes = [2, 32], strides = [1, 1]} : vector<32x32xf32> to vector<2x32xf32>
    %63 = arith.truncf %62 : vector<2x32xf32> to vector<2x32xbf16>
    %c8 = arith.constant 8 : index
    %c0_33 = arith.constant 0 : index
    %c0_34 = arith.constant 0 : index
    %64 = vector.load %arg4[%c8, %c0_33, %c0_34] : memref<16x32x800xbf16, #tpu.memory_space<vmem>>, vector<1x32x800xbf16>
    %65 = vector.shape_cast %64 : vector<1x32x800xbf16> to vector<32x800xbf16>
    %cst_35 = arith.constant dense<0.000000e+00> : vector<2x800xf32>
    %66 = tpu.matmul %63, %65, %cst_35 {dimension_numbers = #tpu.dot_dimension_numbers<[1], [0], [0], [1], [0, 0, 1, 1], [], []>} : vector<2x32xbf16>, vector<32x800xbf16>, vector<2x800xf32> -> vector<2x800xf32>
    %67 = arith.addf %61, %66 : vector<2x800xf32>
    %68 = vector.extract_strided_slice %12 {offsets = [18, 0], sizes = [2, 32], strides = [1, 1]} : vector<32x32xf32> to vector<2x32xf32>
    %69 = arith.truncf %68 : vector<2x32xf32> to vector<2x32xbf16>
    %c9 = arith.constant 9 : index
    %c0_36 = arith.constant 0 : index
    %c0_37 = arith.constant 0 : index
    %70 = vector.load %arg4[%c9, %c0_36, %c0_37] : memref<16x32x800xbf16, #tpu.memory_space<vmem>>, vector<1x32x800xbf16>
    %71 = vector.shape_cast %70 : vector<1x32x800xbf16> to vector<32x800xbf16>
    %cst_38 = arith.constant dense<0.000000e+00> : vector<2x800xf32>
    %72 = tpu.matmul %69, %71, %cst_38 {dimension_numbers = #tpu.dot_dimension_numbers<[1], [0], [0], [1], [0, 0, 1, 1], [], []>} : vector<2x32xbf16>, vector<32x800xbf16>, vector<2x800xf32> -> vector<2x800xf32>
    %73 = arith.addf %67, %72 : vector<2x800xf32>
    %74 = vector.extract_strided_slice %12 {offsets = [20, 0], sizes = [2, 32], strides = [1, 1]} : vector<32x32xf32> to vector<2x32xf32>
    %75 = arith.truncf %74 : vector<2x32xf32> to vector<2x32xbf16>
    %c10 = arith.constant 10 : index
    %c0_39 = arith.constant 0 : index
    %c0_40 = arith.constant 0 : index
    %76 = vector.load %arg4[%c10, %c0_39, %c0_40] : memref<16x32x800xbf16, #tpu.memory_space<vmem>>, vector<1x32x800xbf16>
    %77 = vector.shape_cast %76 : vector<1x32x800xbf16> to vector<32x800xbf16>
    %cst_41 = arith.constant dense<0.000000e+00> : vector<2x800xf32>
    %78 = tpu.matmul %75, %77, %cst_41 {dimension_numbers = #tpu.dot_dimension_numbers<[1], [0], [0], [1], [0, 0, 1, 1], [], []>} : vector<2x32xbf16>, vector<32x800xbf16>, vector<2x800xf32> -> vector<2x800xf32>
    %79 = arith.addf %73, %78 : vector<2x800xf32>
    %80 = vector.extract_strided_slice %12 {offsets = [22, 0], sizes = [2, 32], strides = [1, 1]} : vector<32x32xf32> to vector<2x32xf32>
    %81 = arith.truncf %80 : vector<2x32xf32> to vector<2x32xbf16>
    %c11 = arith.constant 11 : index
    %c0_42 = arith.constant 0 : index
    %c0_43 = arith.constant 0 : index
    %82 = vector.load %arg4[%c11, %c0_42, %c0_43] : memref<16x32x800xbf16, #tpu.memory_space<vmem>>, vector<1x32x800xbf16>
    %83 = vector.shape_cast %82 : vector<1x32x800xbf16> to vector<32x800xbf16>
    %cst_44 = arith.constant dense<0.000000e+00> : vector<2x800xf32>
    %84 = tpu.matmul %81, %83, %cst_44 {dimension_numbers = #tpu.dot_dimension_numbers<[1], [0], [0], [1], [0, 0, 1, 1], [], []>} : vector<2x32xbf16>, vector<32x800xbf16>, vector<2x800xf32> -> vector<2x800xf32>
    %85 = arith.addf %79, %84 : vector<2x800xf32>
    %86 = vector.extract_strided_slice %12 {offsets = [24, 0], sizes = [2, 32], strides = [1, 1]} : vector<32x32xf32> to vector<2x32xf32>
    %87 = arith.truncf %86 : vector<2x32xf32> to vector<2x32xbf16>
    %c12 = arith.constant 12 : index
    %c0_45 = arith.constant 0 : index
    %c0_46 = arith.constant 0 : index
    %88 = vector.load %arg4[%c12, %c0_45, %c0_46] : memref<16x32x800xbf16, #tpu.memory_space<vmem>>, vector<1x32x800xbf16>
    %89 = vector.shape_cast %88 : vector<1x32x800xbf16> to vector<32x800xbf16>
    %cst_47 = arith.constant dense<0.000000e+00> : vector<2x800xf32>
    %90 = tpu.matmul %87, %89, %cst_47 {dimension_numbers = #tpu.dot_dimension_numbers<[1], [0], [0], [1], [0, 0, 1, 1], [], []>} : vector<2x32xbf16>, vector<32x800xbf16>, vector<2x800xf32> -> vector<2x800xf32>
    %91 = arith.addf %85, %90 : vector<2x800xf32>
    %92 = vector.extract_strided_slice %12 {offsets = [26, 0], sizes = [2, 32], strides = [1, 1]} : vector<32x32xf32> to vector<2x32xf32>
    %93 = arith.truncf %92 : vector<2x32xf32> to vector<2x32xbf16>
    %c13 = arith.constant 13 : index
    %c0_48 = arith.constant 0 : index
    %c0_49 = arith.constant 0 : index
    %94 = vector.load %arg4[%c13, %c0_48, %c0_49] : memref<16x32x800xbf16, #tpu.memory_space<vmem>>, vector<1x32x800xbf16>
    %95 = vector.shape_cast %94 : vector<1x32x800xbf16> to vector<32x800xbf16>
    %cst_50 = arith.constant dense<0.000000e+00> : vector<2x800xf32>
    %96 = tpu.matmul %93, %95, %cst_50 {dimension_numbers = #tpu.dot_dimension_numbers<[1], [0], [0], [1], [0, 0, 1, 1], [], []>} : vector<2x32xbf16>, vector<32x800xbf16>, vector<2x800xf32> -> vector<2x800xf32>
    %97 = arith.addf %91, %96 : vector<2x800xf32>
    %98 = vector.extract_strided_slice %12 {offsets = [28, 0], sizes = [2, 32], strides = [1, 1]} : vector<32x32xf32> to vector<2x32xf32>
    %99 = arith.truncf %98 : vector<2x32xf32> to vector<2x32xbf16>
    %c14 = arith.constant 14 : index
    %c0_51 = arith.constant 0 : index
    %c0_52 = arith.constant 0 : index
    %100 = vector.load %arg4[%c14, %c0_51, %c0_52] : memref<16x32x800xbf16, #tpu.memory_space<vmem>>, vector<1x32x800xbf16>
    %101 = vector.shape_cast %100 : vector<1x32x800xbf16> to vector<32x800xbf16>
    %cst_53 = arith.constant dense<0.000000e+00> : vector<2x800xf32>
    %102 = tpu.matmul %99, %101, %cst_53 {dimension_numbers = #tpu.dot_dimension_numbers<[1], [0], [0], [1], [0, 0, 1, 1], [], []>} : vector<2x32xbf16>, vector<32x800xbf16>, vector<2x800xf32> -> vector<2x800xf32>
    %103 = arith.addf %97, %102 : vector<2x800xf32>
    %104 = vector.extract_strided_slice %12 {offsets = [30, 0], sizes = [2, 32], strides = [1, 1]} : vector<32x32xf32> to vector<2x32xf32>
    %105 = arith.truncf %104 : vector<2x32xf32> to vector<2x32xbf16>
    %c15 = arith.constant 15 : index
    %c0_54 = arith.constant 0 : index
    %c0_55 = arith.constant 0 : index
    %106 = vector.load %arg4[%c15, %c0_54, %c0_55] : memref<16x32x800xbf16, #tpu.memory_space<vmem>>, vector<1x32x800xbf16>
    %107 = vector.shape_cast %106 : vector<1x32x800xbf16> to vector<32x800xbf16>
    %cst_56 = arith.constant dense<0.000000e+00> : vector<2x800xf32>
    %108 = tpu.matmul %105, %107, %cst_56 {dimension_numbers = #tpu.dot_dimension_numbers<[1], [0], [0], [1], [0, 0, 1, 1], [], []>} : vector<2x32xbf16>, vector<32x800xbf16>, vector<2x800xf32> -> vector<2x800xf32>
    %109 = arith.addf %103, %108 : vector<2x800xf32>
    %c0_57 = arith.constant 0 : index
    %c0_58 = arith.constant 0 : index
    %110 = vector.load %arg5[%c0_57, %c0_58] : memref<1x800xf32, #tpu.memory_space<vmem>>, vector<1x800xf32>
    %111 = vector.broadcast %110 : vector<1x800xf32> to vector<2x800xf32>
    %112 = arith.addf %109, %111 : vector<2x800xf32>
    %cst_59 = arith.constant 2.000000e+01 : f32
    %113 = vector.broadcast %cst_59 : f32 to vector<2x800xf32>
    %114 = arith.cmpf ogt, %112, %113 : vector<2x800xf32>
    %cst_60 = arith.constant 2.000000e+01 : f32
    %115 = vector.broadcast %cst_60 : f32 to vector<2x800xf32>
    %116 = arith.minimumf %112, %115 : vector<2x800xf32>
    %117 = math.exp %116 : vector<2x800xf32>
    %118 = math.log1p %117 : vector<2x800xf32>
    %119 = arith.select %114, %112, %118 : vector<2x800xi1>, vector<2x800xf32>
    %120 = arith.truncf %119 : vector<2x800xf32> to vector<2x800xbf16>
    %c0_61 = arith.constant 0 : index
    %c0_62 = arith.constant 0 : index
    %121 = vector.load %arg6[%c0_61, %c0_62] : memref<800x32xbf16, #tpu.memory_space<vmem>>, vector<800x32xbf16>
    %cst_63 = arith.constant dense<0.000000e+00> : vector<2x32xf32>
    %122 = tpu.matmul %120, %121, %cst_63 {dimension_numbers = #tpu.dot_dimension_numbers<[1], [0], [0], [1], [0, 0, 1, 1], [], []>} : vector<2x800xbf16>, vector<800x32xbf16>, vector<2x32xf32> -> vector<2x32xf32>
    %c0_64 = arith.constant 0 : index
    %c0_65 = arith.constant 0 : index
    %123 = vector.load %arg7[%c0_64, %c0_65] : memref<1x32xf32, #tpu.memory_space<vmem>>, vector<1x32xf32>
    %124 = vector.broadcast %123 : vector<1x32xf32> to vector<2x32xf32>
    %125 = arith.addf %122, %124 : vector<2x32xf32>
    %c0_66 = arith.constant 0 : index
    %c0_67 = arith.constant 0 : index
    %126 = vector.load %arg8[%c0_66, %c0_67] : memref<800x32xbf16, #tpu.memory_space<vmem>>, vector<800x32xbf16>
    %cst_68 = arith.constant dense<0.000000e+00> : vector<2x32xf32>
    %127 = tpu.matmul %120, %126, %cst_68 {dimension_numbers = #tpu.dot_dimension_numbers<[1], [0], [0], [1], [0, 0, 1, 1], [], []>} : vector<2x800xbf16>, vector<800x32xbf16>, vector<2x32xf32> -> vector<2x32xf32>
    %c0_69 = arith.constant 0 : index
    %c0_70 = arith.constant 0 : index
    %128 = vector.load %arg9[%c0_69, %c0_70] : memref<1x32xf32, #tpu.memory_space<vmem>>, vector<1x32xf32>
    %129 = vector.broadcast %128 : vector<1x32xf32> to vector<2x32xf32>
    %130 = arith.addf %127, %129 : vector<2x32xf32>
    %c0_71 = arith.constant 0 : index
    %c0_72 = arith.constant 0 : index
    %131 = vector.load %arg12[%c0_71, %c0_72] : memref<2x32xf32, #tpu.memory_space<vmem>>, vector<2x32xf32>
    tpu.vector_store %arg12[%c0_71, %c0_72], %125 {strides = array<i32>} : memref<2x32xf32, #tpu.memory_space<vmem>>, vector<2x32xf32>,
    %c0_73 = arith.constant 0 : index
    %c0_74 = arith.constant 0 : index
    %132 = vector.load %arg13[%c0_73, %c0_74] : memref<2x32xf32, #tpu.memory_space<vmem>>, vector<2x32xf32>
    tpu.vector_store %arg13[%c0_73, %c0_74], %130 {strides = array<i32>} : memref<2x32xf32, #tpu.memory_space<vmem>>, vector<2x32xf32>,
    %cst_75 = arith.constant 5.000000e-01 : f32
    %133 = vector.broadcast %cst_75 : f32 to vector<2x32xf32>
    %134 = arith.mulf %133, %130 : vector<2x32xf32>
    %135 = math.exp %134 : vector<2x32xf32>
    %c0_76 = arith.constant 0 : index
    %c0_77 = arith.constant 0 : index
    %136 = vector.load %arg10[%c0_76, %c0_77] : memref<2x32xf32, #tpu.memory_space<vmem>>, vector<2x32xf32>
    %137 = arith.mulf %135, %136 : vector<2x32xf32>
    %138 = arith.addf %125, %137 : vector<2x32xf32>
    %c0_78 = arith.constant 0 : index
    %c0_79 = arith.constant 0 : index
    %139 = vector.load %arg11[%c0_78, %c0_79] : memref<2x32xf32, #tpu.memory_space<vmem>>, vector<2x32xf32>
    tpu.vector_store %arg11[%c0_78, %c0_79], %138 {strides = array<i32>} : memref<2x32xf32, #tpu.memory_space<vmem>>, vector<2x32xf32>,
    return
  }
  func.func @transform_0(%arg0: i32) -> (i32, i32) {
    %c0_i32 = arith.constant 0 : i32
    %c0_i32_0 = arith.constant 0 : i32
    %c0_i32_1 = arith.constant 0 : i32
    return %c0_i32, %c0_i32_0 : i32, i32
  }
  func.func @transform_1(%arg0: i32) -> (i32, i32) {
    %c0_i32 = arith.constant 0 : i32
    %c0_i32_0 = arith.constant 0 : i32
    %c0_i32_1 = arith.constant 0 : i32
    return %c0_i32, %c0_i32_0 : i32, i32
  }
  func.func @transform_2(%arg0: i32) -> (i32, i32) {
    %c0_i32 = arith.constant 0 : i32
    %c0_i32_0 = arith.constant 0 : i32
    %c0_i32_1 = arith.constant 0 : i32
    return %c0_i32, %c0_i32_0 : i32, i32
  }
  func.func @transform_3(%arg0: i32) -> (i32, i32, i32) {
    %c0_i32 = arith.constant 0 : i32
    %c0_i32_0 = arith.constant 0 : i32
    %c0_i32_1 = arith.constant 0 : i32
    %c0_i32_2 = arith.constant 0 : i32
    return %c0_i32, %c0_i32_0, %c0_i32_1 : i32, i32, i32
  }
  func.func @transform_4(%arg0: i32) -> (i32, i32) {
    %c0_i32 = arith.constant 0 : i32
    %c0_i32_0 = arith.constant 0 : i32
    %c0_i32_1 = arith.constant 0 : i32
    return %c0_i32, %c0_i32_0 : i32, i32
  }
  func.func @transform_5(%arg0: i32) -> (i32, i32) {
    %c0_i32 = arith.constant 0 : i32
    %c0_i32_0 = arith.constant 0 : i32
    %c0_i32_1 = arith.constant 0 : i32
    return %c0_i32, %c0_i32_0 : i32, i32
  }
  func.func @transform_6(%arg0: i32) -> (i32, i32) {
    %c0_i32 = arith.constant 0 : i32
    %c0_i32_0 = arith.constant 0 : i32
    %c0_i32_1 = arith.constant 0 : i32
    return %c0_i32, %c0_i32_0 : i32, i32
  }
  func.func @transform_7(%arg0: i32) -> (i32, i32) {
    %c0_i32 = arith.constant 0 : i32
    %c0_i32_0 = arith.constant 0 : i32
    %c0_i32_1 = arith.constant 0 : i32
    return %c0_i32, %c0_i32_0 : i32, i32
  }
  func.func @transform_8(%arg0: i32) -> (i32, i32) {
    %c0_i32 = arith.constant 0 : i32
    %c0_i32_0 = arith.constant 0 : i32
    %c0_i32_1 = arith.constant 0 : i32
    return %c0_i32, %c0_i32_0 : i32, i32
  }
  func.func @transform_9(%arg0: i32) -> (i32, i32) {
    %c0_i32 = arith.constant 0 : i32
    %c0_i32_0 = arith.constant 0 : i32
    %c0_i32_1 = arith.constant 0 : i32
    return %c0_i32, %c0_i32_0 : i32, i32
  }
  func.func @transform_10(%arg0: i32) -> (i32, i32) {
    %c0_i32 = arith.constant 0 : i32
    %c0_i32_0 = arith.constant 0 : i32
    %c0_i32_1 = arith.constant 0 : i32
    return %c0_i32, %c0_i32_0 : i32, i32
  }
  func.func @transform_11(%arg0: i32) -> (i32, i32) {
    %c0_i32 = arith.constant 0 : i32
    %c0_i32_0 = arith.constant 0 : i32
    %c0_i32_1 = arith.constant 0 : i32
    return %c0_i32, %c0_i32_0 : i32, i32
  }
  func.func @transform_12(%arg0: i32) -> (i32, i32) {
    %c0_i32 = arith.constant 0 : i32
    %c0_i32_0 = arith.constant 0 : i32
    %c0_i32_1 = arith.constant 0 : i32
    return %c0_i32, %c0_i32_0 : i32, i32
  }
}

</mosaic_0001>

<bundles_post_ra>
// kernel: encoder_forward.3
= control target key start
LH: loop header
LB: loop body
LE: loop exit
PB: predicated region body
PF: predicated region fallthrough
CT: control target
= control target key end

     0   :  { %s600_s12 = smov 0   ;;  %s602_s13 = smov 0   ;;  %s689_s0 = inlined_call_operand.vmem [shape: bf16[16,32], index: 0, kind: input, shape index: {}]   ;;  %s690_s1 = inlined_call_operand.vmem [shape: f32[16,1], index: 1, kind: input, shape index: {}]   ;;  %s691_s2 = inlined_call_operand.vmem [shape: bf16[32,512], index: 2, kind: input, shape index: {}]   ;;  %s692_s3 = inlined_call_operand.vmem [shape: bf16[16,512], index: 3, kind: output, shape index: {}]  }
   0x1   :  { %s604_s14 = smov 0  }
   0x2 LB: > { %s479_s15 = sadd.s32 4294967295, %s577_s14   ;;  %s617_s16 = sadd.s32 1, %s577_s14   ;;  %s577_s14 = sphi %s604_s14, %s698_s14   ;;  %s573_s13 = sphi %s602_s13, %s697_s13   ;;  %s569_s12 = sphi %s600_s12, %s696_s12  }
   0x3   : > { %s59_s17 = ssub.s32 %s577_s14, %s617_s16  ;;  %s62_s18 = sadd.s32 1, %s573_s13 }
   0x4   : > { %p60_p0 = scmp.eq.s32.totalorder %s59_s17, 0  ;;  %p69_p1 = scmp.ne.s32.totalorder %s573_s13, %s569_s12 }
   0x5   : > { %p70_p2 = scmp.eq.s32.totalorder %s577_s14, 0  ;;  %p99_p3 = scmp.eq.s32.totalorder %s479_s15, 1 }
   0x6   : > { %s628_s19 = scalar_select %p60_p0, %s573_s13, %s62_s18  }
   0x7   : > { %p71_p4 = por %p70_p2, %p69_p1  ;;  %p630_p5 = por %p99_p3, %p69_p1 }
   0x8   : > { %p482_p6 = scmp.ge.s32.totalorder %s577_s14, 2 }
   0xa   : > { %127 = sbr.rel (%p482_p6) target bundleno = 21 (0x15), region = 24 }
   0xf   : > { %130 = sbr.rel (!%p71_p4) target bundleno = 21 (0x15), region = 28  ;;  %s132_s21 = sand.u32 (%p71_p4), 1, %s573_s13  }
  0x10   : > { %s502_s22 = sshll.u32 (%p71_p4), %s577_s14, 3  ;;  %s483_s23 = sshll.u32 (%p71_p4), %s132_s21, 5 }
  0x11   : > { %s137_s26 = scalar_lea.vmem (%p71_p4), %s691_s2, %s502_s22  ;;  %s134_s27 = scalar_lea.vmem (%p71_p4), [#allocation2], %s483_s23 }
  0x12   : > { %v172_v0 = vld [vmem:[%s137_s26] sm:$0xff] (%p71_p4)  ;;  %v174_v1 = vld [vmem:[%s137_s26 + $0x10] sm:$0xff] (%p71_p4) }
  0x13   : > { %v176_v2 = vld [vmem:[%s137_s26 + $0x20] sm:$0xff] (%p71_p4)  ;;  %173 = vst [vmem:[%s134_s27] sm:$0xff] (%p71_p4), %v172_v0  ;;  %175 = vst [vmem:[%s134_s27 + $0x8] sm:$0xff] (%p71_p4), %v174_v1  ;;  %v178_v3 = vld [vmem:[%s137_s26 + $0x30] sm:$0xff] (%p71_p4) }
  0x14   : > { %177 = vst [vmem:[%s134_s27 + $0x10] sm:$0xff] %v176_v2  ;;  %179 = vst [vmem:[%s134_s27 + $0x18] sm:$0xff] %v178_v3 }
  0x15 PF: > { %p486_p7 = scmp.ge.s32.totalorder %s577_s14, 1  ;;  %p184_p8 = scmp.lt.s32.totalorder %s577_s14, 3 }
  0x17   : > { %p185_p9 = pnand %p486_p7, %p184_p8 }
  0x18   : > { %s191_s28 = sand.u32 (!%p185_p9), 1, %s569_s12  }
  0x19   : > { %188 = sbr.rel (%p185_p9) target bundleno = 290 (0x122), region = 66  ;;  %s487_s29 = sshll.u32 (!%p185_p9), %s191_s28, 5 }
  0x1a   : > { %s193_s7 = scalar_lea.vmem (!%p185_p9), [#allocation2], %s487_s29  ;;  %s488_s10 = sshll.u32 (!%p185_p9), %s191_s28, 4 }
  0x1b   : > { %s212_s11 = scalar_lea.vmem (!%p185_p9), [#allocation3], %s488_s10 }
  0x1e   : > { %v579_v4 = vmov 0   ;;  %v222_v5 = vld [vmem:[%s690_s1] sm:$0xff]  ;;  %v223_v6 = vld [vmem:[%s690_s1 + $0x8] sm:$0xff]  ;;  %v532_v7 = vld [vmem:[%s193_s7 + $0x14] ss:$8 sps:$4 sm:$0xff]   ;;  %vm259_vm0 = vcmask 261120  }
  0x1f   : > { %295 = vmatprep.mubr.bf16.mxu0 %v579_v4  ;;  %531 = vset.pattern.permute.xlu0 %v579_v4  ;;  %v534_v8 = vld [vmem:[%s193_s7 + $0x10] ss:$8 sps:$4 sm:$0xff]   ;;  %v535_v9 = vld [vmem:[%s193_s7 + $0x4] ss:$8 sps:$4 sm:$0xff]   ;;  %v537_v10 = vld [vmem:[%s193_s7] ss:$8 sps:$4 sm:$0xff]  }
  0x20   : > { %226 = vperm.xlu0 %531, %v222_v5   ;;  %275 = vmatprep.subr.bf16.mxu0 %v532_v7  ;;  %v538_v11 = vld [vmem:[%s689_s0] sm:$0xff]   ;;  %s505_s12 = sshll.u32 (%p630_p5), %s479_s15, 3 }
  0x21   : > { %276 = vmatpush1.bf16.msra.mxu0 %v534_v8  ;;  %s385_s21 = scalar_lea.vmem (%p630_p5), %s692_s3, %s505_s12 }
  0x22   : > { %277 = vmatprep.subr.bf16.mxu0 %v535_v9 }
  0x24   : > { %231 = vperm.xlu0 %531, %v223_v6  }
  0x25   : > { %278 = vmatpush1.bf16.msra.mxu0 %v537_v10 }
  0x28   : > { %494 = vmatmul.mubr.msk.bf16.vlgmr.msra.gmra.mxu0 %vm259_vm0, %v538_v11 }
  0x9b   : > { %v227_v12 = vpop.permute.xlu0 %226 }
  0x9f   : > { %v232_v18 = vpop.permute.xlu0 %231 }
  0xe8   : > { %v297_v13 = vpop.f32.mrf.mxu0 }
  0xe9   : > { %v298_v14 = vadd.f32 %v297_v13, %v227_v12 }
  0xea   : > { %v299_v15 = vpop.f32.mrf.mxu0 }
  0xeb   : > { %v310_v16 = vmin.f32 %v298_v14, 20.0  ;;  %v300_v17 = vadd.f32 %v299_v15, %v227_v12  ;;  %vm306_vm2 = vcmp.gt.f32.partialorder %v298_v14, 20.0 }
  0xec   : > { %v301_v19 = vpop.f32.mrf.mxu0 }
  0xed   : > { %v314_v20 = vmul.f32 1.442695, %v310_v16  ;;  %v311_v21 = vmin.f32 %v300_v17, 20.0  ;;  %v654_v22 = vadd.f32 %v301_v19, %v232_v18  ;;  %vm307_vm4 = vcmp.gt.f32.partialorder %v300_v17, 20.0 }
  0xee   : > { %v303_v23 = vpop.f32.mrf.mxu0 }
  0xef   : > { %539 = vpow2.f32 %v314_v20  ;;  %v316_v24 = vmul.f32 1.442695, %v311_v21  ;;  %v312_v25 = vmin.f32 %v654_v22, 20.0  ;;  %v657_v26 = vadd.f32 %v303_v23, %v232_v18 }
  0xf0   : > { %vm308_vm7 = vcmp.gt.f32.partialorder %v654_v22, 20.0 }
  0xf1   : > { %541 = vpow2.f32 %v316_v24  ;;  %v318_v27 = vmul.f32 1.442695, %v312_v25  ;;  %v313_v28 = vmin.f32 %v657_v26, 20.0  ;;  %vm309_vm8 = vcmp.gt.f32.partialorder %v657_v26, 20.0 }
  0xf3   : > { %543 = vpow2.f32 %v318_v27  ;;  %v320_v29 = vmul.f32 1.442695, %v313_v28 }
  0xf5   : > { %545 = vpow2.f32 %v320_v29 }
  0xfc   : > { %v540_v30 = vpop.eup %539 }
  0xfd   : > { %v322_v31 = vadd.f32 1.0, %v540_v30  ;;  %v325_v38 = vmul.f32 -0.5, %v540_v30  ;;  %v328_v41 = vand.u32 2147483647, %v540_v30 }
  0xfe   : > { %v542_v32 = vpop.eup %541 }
  0xff   : > { %547 = vlog2.f32 %v322_v31  ;;  %v331_v33 = vadd.f32 1.0, %v542_v32  ;;  %v334_v39 = vmul.f32 -0.5, %v542_v32  ;;  %v326_v40 = vadd.f32 1.0, %v325_v38 }
 0x100   : > { %v544_v34 = vpop.eup %543  ;;  %v337_v45 = vand.u32 2147483647, %v542_v32  ;;  %vm660_vm1 = vcmp.lt.f32.partialorder %v328_v41, 0.0004427343 }
 0x101   : > { %549 = vlog2.f32 %v331_v33  ;;  %v340_v35 = vadd.f32 1.0, %v544_v34  ;;  %v343_v42 = vmul.f32 -0.5, %v544_v34  ;;  %v335_v43 = vadd.f32 1.0, %v334_v39 }
 0x102   : > { %v546_v36 = vpop.eup %545  ;;  %v327_v48 = vmul.f32 %v540_v30, %v326_v40  ;;  %v346_v55 = vand.u32 2147483647, %v544_v34  ;;  %vm338_vm3 = vcmp.lt.f32.partialorder %v337_v45, 0.0004427343 }
 0x103   : > { %551 = vlog2.f32 %v340_v35  ;;  %v349_v37 = vadd.f32 1.0, %v546_v36  ;;  %v352_v46 = vmul.f32 -0.5, %v546_v36  ;;  %v344_v51 = vadd.f32 1.0, %v343_v42 }
 0x104   : > { %v336_v54 = vmul.f32 %v542_v32, %v335_v43  ;;  %v355_v60 = vand.u32 2147483647, %v546_v36  ;;  %vm347_vm5 = vcmp.lt.f32.partialorder %v346_v55, 0.0004427343 }
 0x105   : > { %553 = vlog2.f32 %v349_v37  ;;  %v353_v57 = vadd.f32 1.0, %v352_v46  ;;  %v345_v63 = vmul.f32 %v544_v34, %v344_v51 }
 0x106   : > { %vm356_vm6 = vcmp.lt.f32.partialorder %v355_v60, 0.0004427343 }
 0x107   : > { %v354_v4 = vmul.f32 %v546_v36, %v353_v57 }
 0x10c   : > { %v548_v44 = vpop.eup %547 }
 0x10d   : > { %v324_v47 = vmul.f32 0.6931472, %v548_v44 }
 0x10e   : > { %v550_v49 = vpop.eup %549 }
 0x10f   : > { %v330_v52 = vsel %vm660_vm1, %v327_v48, %v324_v47  ;;  %v333_v53 = vmul.f32 0.6931472, %v550_v49 }
 0x110   : > { %v552_v56 = vpop.eup %551  ;;  %v358_v61 = vsel %vm306_vm2, %v298_v14, %v330_v52 }
 0x111   : > { %v339_v58 = vsel %vm338_vm3, %v336_v54, %v333_v53  ;;  %v342_v59 = vmul.f32 0.6931472, %v552_v56 }
 0x112   : > { %v359_v62 = vsel %vm307_vm4, %v300_v17, %v339_v58  ;;  %v554_v0 = vpop.eup %553 }
 0x113   : > { %v503_v1 = vpack.c.bf16 %v359_v62, %v358_v61  ;;  %v348_v2 = vsel %vm347_vm5, %v345_v63, %v342_v59  ;;  %v351_v3 = vmul.f32 0.6931472, %v554_v0 }
 0x114   : > { %v360_v6 = vsel %vm308_vm7, %v654_v22, %v348_v2 }
 0x115   : > { %374 = vst [vmem:[%s212_s11] sm:$0xff] %v503_v1  ;;  %v357_v5 = vsel %vm356_vm6, %v354_v4, %v351_v3  ;;  %382 = sbr.rel (!%p630_p5) target bundleno = 290 (0x122), region = 74 }
 0x116   : > { %v361_v7 = vsel %vm309_vm8, %v657_v26, %v357_v5 }
 0x117   : > { %v504_v8 = vpack.c.bf16 %v361_v7, %v360_v6 }
 0x119   : > { %375 = vst [vmem:[%s212_s11 + $0x8] sm:$0xff] %v504_v8 }
 0x11c   : > { %v416_v9 = vld [vmem:[%s212_s11] sm:$0xff] }
 0x11d   : > { %417 = vst [vmem:[%s385_s21] sm:$0xff] %v416_v9 }
 0x120   : > { %v418_v10 = vld [vmem:[%s212_s11 + $0x8] sm:$0xff] }
 0x121   : > { %419 = vst [vmem:[%s385_s21 + $0x10] sm:$0xff] %v418_v10 }
 0x122 PF: > { %p10_p10 = scmp.ge.s32.totalorder %s617_s16, 4   ;;  %s696_s12 = smov %s573_s13 }
 0x123   : > { %s697_s13 = smov %s628_s19  ;;  %s698_s14 = smov %s617_s16 }
 0x124   :  { %12 = sbr.rel (!%p10_p10) target bundleno = 2 (0x2), region = 143 }

// kernel: encoder_forward.4
= control target key start
LH: loop header
LB: loop body
LE: loop exit
PB: predicated region body
PF: predicated region fallthrough
CT: control target
= control target key end

     0   :  { %v608_v0 = vmov 0   ;;  %vm285_vm0 = vcmask 130048   ;;  %s769_s2 = inlined_call_operand.vmem [shape: bf16[400,128], index: 2, kind: input, shape index: {}]   ;;  %s770_s0 = inlined_call_operand.vmem [shape: bf16[32,400], index: 0, kind: input, shape index: {}]   ;;  %s771_s1 = inlined_call_operand.vmem [shape: f32[32,1], index: 1, kind: input, shape index: {}]   ;;  %s772_s3 = inlined_call_operand.vmem [shape: bf16[32,128], index: 3, kind: output, shape index: {}]  }
   0x1   :  { %341 = vmatprep.subr.bf16.mxu1 %v608_v0  ;;  %v555_v1 = vld [vmem:[%s769_s2 + $0x78] sm:$0xff]   ;;  %553 = vset.pattern.permute.xlu0 %v608_v0  ;;  %v558_v4 = vld [vmem:[%s769_s2 + $0x70] sm:$0xff]   ;;  %v561_v7 = vld [vmem:[%s769_s2 + $0x68] sm:$0xff]  }
   0x2   :  { %v556_v2 = vld [vmem:[%s769_s2 + $0xb8] sm:$0xff]   ;;  %554 = vset.pattern.permute.xlu1 %v608_v0  ;;  %524 = vmatprep.subr.bf16.mxu0 %v555_v1  ;;  %v559_v5 = vld [vmem:[%s769_s2 + $0xb0] sm:$0xff]   ;;  %v562_v8 = vld [vmem:[%s769_s2 + $0xa8] sm:$0xff]  }
   0x3   :  { %v557_v3 = vld [vmem:[%s769_s2 + $0x38] sm:$0xff]   ;;  %342 = vmatpush1.bf16.msra.mxu1 %v556_v2  ;;  %v560_v6 = vld [vmem:[%s769_s2 + $0x30] sm:$0xff]   ;;  %v563_v9 = vld [vmem:[%s769_s2 + $0x28] sm:$0xff]  }
   0x4   :  { %525 = vmatpush3.bf16.msra.mxu0 %v557_v3  ;;  %343 = vmatprep.subr.bf16.mxu1 %v608_v0  ;;  %v564_v10 = vld [vmem:[%s769_s2 + $0x60] sm:$0xff]   ;;  %v567_v13 = vld [vmem:[%s769_s2 + $0x58] sm:$0xff]   ;;  %v570_v16 = vld [vmem:[%s769_s2 + $0x50] sm:$0xff]  }
   0x5   :  { %526 = vmatprep.subr.bf16.mxu0 %v558_v4  ;;  %v565_v11 = vld [vmem:[%s769_s2 + $0xa0] sm:$0xff]   ;;  %v568_v14 = vld [vmem:[%s769_s2 + $0x98] sm:$0xff]   ;;  %v571_v17 = vld [vmem:[%s769_s2 + $0x90] sm:$0xff]  }
   0x6   :  { %v566_v12 = vld [vmem:[%s769_s2 + $0x20] sm:$0xff]   ;;  %v569_v15 = vld [vmem:[%s769_s2 + $0x18] sm:$0xff]   ;;  %v572_v18 = vld [vmem:[%s769_s2 + $0x10] sm:$0xff]  }
   0x7   :  { %344 = vmatpush1.bf16.msra.mxu1 %v559_v5  ;;  %v573_v19 = vld [vmem:[%s769_s2 + $0x48] sm:$0xff]   ;;  %v576_v22 = vld [vmem:[%s769_s2 + $0x40] sm:$0xff]   ;;  %v75_v28 = vld [vmem:[%s771_s1 + $0x10] sm:$0xff] }
   0x8   :  { %527 = vmatpush3.bf16.msra.mxu0 %v560_v6  ;;  %345 = vmatprep.subr.bf16.mxu1 %v608_v0  ;;  %v574_v20 = vld [vmem:[%s769_s2 + $0x88] sm:$0xff]   ;;  %v581_v23 = vld [vmem:[%s770_s0 + $0x4] ss:$16 sps:$4 sm:$0xff]   ;;  %v579_v29 = vld [vmem:[%s770_s0] ss:$16 sps:$4 sm:$0xff]  }
   0x9   :  { %528 = vmatprep.subr.bf16.mxu0 %v561_v7  ;;  %v575_v21 = vld [vmem:[%s769_s2 + $0x8] sm:$0xff]   ;;  %v577_v24 = vld [vmem:[%s769_s2 + $0x80] sm:$0xff]   ;;  %324 = vmatprep.mubr.bf16.mxu0 %v581_v23  ;;  %v76_v34 = vld [vmem:[%s771_s1 + $0x18] sm:$0xff] }
   0xa   :  { %v585_v25 = vld [vmem:[%s770_s0 + $0xc] ss:$16 sps:$4 sm:$0xff]   ;;  %v578_v26 = vld [vmem:[%s769_s2] sm:$0xff]   ;;  %89 = vperm.xlu1 %554, %v75_v28   ;;  %v583_v33 = vld [vmem:[%s770_s0 + $0x8] ss:$16 sps:$4 sm:$0xff]  }
   0xb   :  { %346 = vmatpush1.bf16.msra.mxu1 %v562_v8  ;;  %503 = vmatprep.mubr.msk.bf16.mxu1 %vm285_vm0, %v585_v25  ;;  %v73_v27 = vld [vmem:[%s771_s1] sm:$0xff]  ;;  %v74_v32 = vld [vmem:[%s771_s1 + $0x8] sm:$0xff] }
   0xc   :  { %529 = vmatpush3.bf16.msra.mxu0 %v563_v9  ;;  %347 = vmatprep.subr.bf16.mxu1 %v608_v0  ;;  %v582_v30 = vld [vmem:[%s769_s2 + $0xc0] sm:$0xff]   ;;  %v589_v35 = vld [vmem:[%s770_s0 + $0x2c] ss:$16 sps:$4 sm:$0xff]   ;;  %v591_v37 = vld [vmem:[%s770_s0 + $0x28] ss:$16 sps:$4 sm:$0xff]  }
   0xd   :  { %530 = vmatprep.subr.bf16.mxu0 %v564_v10  ;;  %79 = vperm.xlu0 %553, %v73_v27   ;;  %v586_v31 = vld [vmem:[%s770_s0 + $0x24] ss:$16 sps:$4 sm:$0xff]   ;;  %v588_v36 = vld [vmem:[%s770_s0 + $0x20] ss:$16 sps:$4 sm:$0xff]  }
   0xe   :  { %94 = vperm.xlu1 %554, %v76_v34  }
   0xf   :  { %348 = vmatpush1.bf16.msra.mxu1 %v565_v11 }
  0x10   :  { %531 = vmatpush3.bf16.msra.mxu0 %v566_v12  ;;  %349 = vmatprep.subr.bf16.mxu1 %v608_v0 }
  0x11   :  { %532 = vmatprep.subr.bf16.mxu0 %v567_v13  ;;  %84 = vperm.xlu0 %553, %v74_v32  }
  0x13   :  { %350 = vmatpush1.bf16.msra.mxu1 %v568_v14 }
  0x14   :  { %533 = vmatpush3.bf16.msra.mxu0 %v569_v15  ;;  %351 = vmatprep.subr.bf16.mxu1 %v608_v0 }
  0x15   :  { %534 = vmatprep.subr.bf16.mxu0 %v570_v16 }
  0x17   :  { %352 = vmatpush1.bf16.msra.mxu1 %v571_v17 }
  0x18   :  { %535 = vmatpush3.bf16.msra.mxu0 %v572_v18  ;;  %353 = vmatprep.subr.bf16.mxu1 %v608_v0 }
  0x19   :  { %536 = vmatprep.subr.bf16.mxu0 %v573_v19 }
  0x1b   :  { %354 = vmatpush1.bf16.msra.mxu1 %v574_v20 }
  0x1c   :  { %537 = vmatpush3.bf16.msra.mxu0 %v575_v21  ;;  %355 = vmatprep.subr.bf16.mxu1 %v608_v0 }
  0x1d   :  { %538 = vmatprep.subr.bf16.mxu0 %v576_v22 }
  0x1f   :  { %356 = vmatpush1.bf16.msra.mxu1 %v577_v24 }
  0x20   :  { %539 = vmatpush3.bf16.msra.mxu0 %v578_v26  ;;  %371 = vmatprep.subr.bf16.mxu1 %v608_v0 }
  0x23   :  { %325 = vmatmul.mubr.bf16.vlgmr.msra.gmra.mxu0 %v579_v29  ;;  %372 = vmatpush2.bf16.msra.mxu1 %v582_v30 }
  0x24   :  { %332 = vmatprep.mubr.bf16.mxu0 %v586_v31 }
  0x26   :  { %374 = vmatmul.mubr.bf16.vlgmr.msra.gmra.mxu1 %v583_v33 }
  0x27   :  { %504 = vmatprep.mubr.msk.bf16.mxu1 %vm285_vm0, %v589_v35 }
  0x2b   :  { %333 = vmatmul.mubr.bf16.gmra.mxu0 %v588_v36 }
  0x2e   :  { %382 = vmatmul.mubr.bf16.gmra.mxu1 %v591_v37 }
  0x85   :  { %v90_v55 = vpop.permute.xlu1 %89 }
  0x88   :  { %v80_v39 = vpop.permute.xlu0 %79 }
  0x89   :  { %v95_v6 = vpop.permute.xlu1 %94 }
  0x8c   :  { %v85_v47 = vpop.permute.xlu0 %84 }
  0xe3   :  { %v540_v38 = vpop.f32.mrf.mxu0 }
  0xe5   :  { %v541_v40 = vpop.f32.mrf.mxu0 }
  0xe6   :  { %v542_v41 = vadd.f32 %v541_v40, %v540_v38  ;;  %v375_v42 = vpop.f32.mrf.mxu1 }
  0xe7   :  { %v543_v43 = vpop.f32.mrf.mxu0 }
  0xe8   :  { %v327_v44 = vadd.f32 %v542_v41, %v80_v39  ;;  %v377_v45 = vpop.f32.mrf.mxu1 }
  0xe9   :  { %v544_v46 = vpop.f32.mrf.mxu0 }
  0xea   :  { %v753_v48 = vadd.f32 %v375_v42, %v327_v44  ;;  %v545_v49 = vadd.f32 %v544_v46, %v543_v43  ;;  %v378_v50 = vpop.f32.mrf.mxu1 }
  0xeb   :  { %v546_v51 = vpop.f32.mrf.mxu0 }
  0xec   :  { %v394_v52 = vmin.f32 %v753_v48, 20.0  ;;  %v330_v53 = vadd.f32 %v545_v49, %v85_v47  ;;  %v380_v54 = vpop.f32.mrf.mxu1  ;;  %vm390_vm3 = vcmp.gt.f32.partialorder %v753_v48, 20.0 }
  0xed   :  { %v547_v56 = vpop.f32.mrf.mxu0 }
  0xee   :  { %v398_v57 = vmul.f32 1.442695, %v394_v52  ;;  %v379_v58 = vadd.f32 %v378_v50, %v330_v53  ;;  %v548_v59 = vadd.f32 %v547_v56, %v546_v51  ;;  %v383_v60 = vpop.f32.mrf.mxu1 }
  0xef   :  { %v549_v61 = vpop.f32.mrf.mxu0 }
  0xf0   :  { %592 = vpow2.f32 %v398_v57  ;;  %v395_v62 = vmin.f32 %v379_v58, 20.0  ;;  %v335_v63 = vadd.f32 %v548_v59, %v90_v55  ;;  %v385_v0 = vpop.f32.mrf.mxu1  ;;  %vm391_vm4 = vcmp.gt.f32.partialorder %v379_v58, 20.0 }
  0xf1   :  { %v550_v1 = vpop.f32.mrf.mxu0 }
  0xf2   :  { %v400_v2 = vmul.f32 1.442695, %v395_v62  ;;  %v756_v3 = vadd.f32 %v383_v60, %v335_v63  ;;  %v551_v4 = vadd.f32 %v550_v1, %v549_v61  ;;  %v386_v5 = vpop.f32.mrf.mxu1 }
  0xf4   :  { %594 = vpow2.f32 %v400_v2  ;;  %v396_v7 = vmin.f32 %v756_v3, 20.0  ;;  %v338_v8 = vadd.f32 %v551_v4, %v95_v6  ;;  %v388_v9 = vpop.f32.mrf.mxu1  ;;  %vm392_vm7 = vcmp.gt.f32.partialorder %v756_v3, 20.0 }
  0xf6   :  { %v402_v10 = vmul.f32 1.442695, %v396_v7  ;;  %v387_v11 = vadd.f32 %v386_v5, %v338_v8 }
  0xf8   :  { %596 = vpow2.f32 %v402_v10  ;;  %v397_v12 = vmin.f32 %v387_v11, 20.0  ;;  %vm393_vm8 = vcmp.gt.f32.partialorder %v387_v11, 20.0 }
  0xfa   :  { %v404_v13 = vmul.f32 1.442695, %v397_v12 }
  0xfc   :  { %598 = vpow2.f32 %v404_v13 }
  0xfd   :  { %v593_v14 = vpop.eup %592 }
  0xfe   :  { %v406_v15 = vadd.f32 1.0, %v593_v14  ;;  %v409_v20 = vmul.f32 -0.5, %v593_v14  ;;  %v412_v26 = vand.u32 2147483647, %v593_v14 }
 0x100   :  { %600 = vlog2.f32 %v406_v15  ;;  %v410_v24 = vadd.f32 1.0, %v409_v20  ;;  %vm413_vm1 = vcmp.lt.f32.partialorder %v412_v26, 0.0004427343 }
 0x101   :  { %v595_v16 = vpop.eup %594 }
 0x102   :  { %v415_v17 = vadd.f32 1.0, %v595_v16  ;;  %v418_v22 = vmul.f32 -0.5, %v595_v16  ;;  %v421_v29 = vand.u32 2147483647, %v595_v16  ;;  %v411_v30 = vmul.f32 %v593_v14, %v410_v24 }
 0x104   :  { %602 = vlog2.f32 %v415_v17  ;;  %v419_v28 = vadd.f32 1.0, %v418_v22  ;;  %vm422_vm2 = vcmp.lt.f32.partialorder %v421_v29, 0.0004427343 }
 0x105   :  { %v597_v18 = vpop.eup %596 }
 0x106   :  { %v424_v19 = vadd.f32 1.0, %v597_v18  ;;  %v427_v31 = vmul.f32 -0.5, %v597_v18  ;;  %v420_v35 = vmul.f32 %v595_v16, %v419_v28  ;;  %v430_v42 = vand.u32 2147483647, %v597_v18 }
 0x108   :  { %604 = vlog2.f32 %v424_v19  ;;  %v428_v38 = vadd.f32 1.0, %v427_v31  ;;  %vm431_vm5 = vcmp.lt.f32.partialorder %v430_v42, 0.0004427343 }
 0x109   :  { %v599_v21 = vpop.eup %598 }
 0x10a   :  { %v433_v23 = vadd.f32 1.0, %v599_v21  ;;  %v436_v36 = vmul.f32 -0.5, %v599_v21  ;;  %v439_v46 = vand.u32 2147483647, %v599_v21  ;;  %v429_v47 = vmul.f32 %v597_v18, %v428_v38 }
 0x10c   :  { %606 = vlog2.f32 %v433_v23  ;;  %v437_v45 = vadd.f32 1.0, %v436_v36  ;;  %vm440_vm6 = vcmp.lt.f32.partialorder %v439_v46, 0.0004427343 }
 0x10d   :  { %v601_v25 = vpop.eup %600 }
 0x10e   :  { %v408_v27 = vmul.f32 0.6931472, %v601_v25  ;;  %v438_v52 = vmul.f32 %v599_v21, %v437_v45 }
 0x110   :  { %v414_v33 = vsel %vm413_vm1, %v411_v30, %v408_v27 }
 0x111   :  { %v603_v32 = vpop.eup %602  ;;  %v442_v40 = vsel %vm390_vm3, %v753_v48, %v414_v33 }
 0x112   :  { %v417_v34 = vmul.f32 0.6931472, %v603_v32 }
 0x114   :  { %v423_v37 = vsel %vm422_vm2, %v420_v35, %v417_v34 }
 0x115   :  { %v605_v39 = vpop.eup %604  ;;  %v443_v41 = vsel %vm391_vm4, %v379_v58, %v423_v37 }
 0x116   :  { %v516_v43 = vpack.c.bf16 %v443_v41, %v442_v40  ;;  %v426_v44 = vmul.f32 0.6931472, %v605_v39 }
 0x118   :  { %517 = vst [vmem:[%s772_s3] sm:$0xff] %v516_v43   ;;  %v432_v50 = vsel %vm431_vm5, %v429_v47, %v426_v44 }
 0x119   :  { %v607_v49 = vpop.eup %606  ;;  %v444_v53 = vsel %vm392_vm7, %v756_v3, %v432_v50 }
 0x11a   :  { %v435_v51 = vmul.f32 0.6931472, %v607_v49 }
 0x11c   :  { %v441_v48 = vsel %vm440_vm6, %v438_v52, %v435_v51 }
 0x11d   :  { %v445_v54 = vsel %vm393_vm8, %v387_v11, %v441_v48 }
 0x11e   :  { %v521_v55 = vpack.c.bf16 %v445_v54, %v444_v53 }
 0x120   :  { %523 = vst [vmem:[%s772_s3 + $0x8] sm:$0xff] %v521_v55  }

// kernel: encoder_forward.5
= control target key start
LH: loop header
LB: loop body
LE: loop exit
PB: predicated region body
PF: predicated region fallthrough
CT: control target
= control target key end

     0   :  { %18 = vsyncpa [#allocation3], 0  ;;  %vm534_vm0 = vcmask 261120   ;;  %vm8060_vm1 = vmmov 0   ;;  %s9805_s0 = inlined_call_operand.vmem [shape: bf16[32,800], index: 0, kind: input, shape index: {}]   ;;  %s9806_s1 = inlined_call_operand.vmem [shape: bf16[800,32], index: 1, kind: input, shape index: {}]   ;;  %s9807_s2 = inlined_call_operand.vmem [shape: f32[1,32], index: 2, kind: input, shape index: {}]   ;;  %s9808_s3 = inlined_call_operand.vmem [shape: bf16[16,32,800], index: 3, kind: input, shape index: {}]   ;;  %s9809_s4 = inlined_call_operand.vmem [shape: f32[1,800], index: 4, kind: input, shape index: {}]   ;;  %s9810_s5 = inlined_call_operand.vmem [shape: bf16[800,32], index: 5, kind: input, shape index: {}]   ;;  %s9811_s6 = inlined_call_operand.vmem [shape: f32[1,32], index: 6, kind: input, shape index: {}]   ;;  %s9812_s7 = inlined_call_operand.vmem [shape: bf16[800,32], index: 7, kind: input, shape index: {}]   ;;  %s9813_s8 = inlined_call_operand.vmem [shape: f32[1,32], index: 8, kind: input, shape index: {}]   ;;  %s9814_s9 = inlined_call_operand.vmem [shape: f32[2,32], index: 9, kind: input, shape index: {}]   ;;  %s9815_s10 = inlined_call_operand.hbm [shape: f32[2,32], index: 10, kind: output, shape index: {0}]   ;;  %s9816_s11 = inlined_call_operand.hbm [shape: f32[2,32], index: 11, kind: output, shape index: {1}]   ;;  %s9817_s12 = inlined_call_operand.hbm [shape: f32[2,32], index: 12, kind: output, shape index: {2}]  }
   0x1   :  { %v7458_v0 = vld [vmem:[%s9806_s1 + $0x78] sm:$0xff]   ;;  %v7462_v4 = vld [vmem:[%s9806_s1 + $0x70] sm:$0xff]   ;;  %v7466_v8 = vld [vmem:[%s9806_s1 + $0x68] sm:$0xff]  }
   0x2   :  { %v7459_v1 = vld [vmem:[%s9806_s1 + $0x38] sm:$0xff]   ;;  %7026 = vmatprep.subr.bf16.mxu0 %v7458_v0  ;;  %v7463_v5 = vld [vmem:[%s9806_s1 + $0x30] sm:$0xff]   ;;  %v7467_v9 = vld [vmem:[%s9806_s1 + $0x28] sm:$0xff]  }
   0x3   :  { %v7460_v2 = vld [vmem:[%s9806_s1 + $0xf8] sm:$0xff]   ;;  %7027 = vmatpush3.bf16.msra.mxu0 %v7459_v1  ;;  %v7464_v6 = vld [vmem:[%s9806_s1 + $0xf0] sm:$0xff]   ;;  %v7468_v10 = vld [vmem:[%s9806_s1 + $0xe8] sm:$0xff]  }
   0x4   :  { %v7461_v3 = vld [vmem:[%s9806_s1 + $0xb8] sm:$0xff]   ;;  %7054 = vmatprep.subr.bf16.mxu1 %v7460_v2  ;;  %7028 = vmatprep.subr.bf16.mxu0 %v7462_v4  ;;  %v7465_v7 = vld [vmem:[%s9806_s1 + $0xb0] sm:$0xff]   ;;  %v7469_v11 = vld [vmem:[%s9806_s1 + $0xa8] sm:$0xff]  }
   0x5   :  { %7055 = vmatpush3.bf16.msra.mxu1 %v7461_v3  ;;  %v7470_v12 = vld [vmem:[%s9806_s1 + $0x60] sm:$0xff]   ;;  %v7474_v16 = vld [vmem:[%s9806_s1 + $0x58] sm:$0xff]   ;;  %v7478_v20 = vld [vmem:[%s9806_s1 + $0x50] sm:$0xff]   ;;  %v8058_v3 = vmov 0.0  }
   0x6   :  { %7056 = vmatprep.subr.bf16.mxu1 %v7464_v6  ;;  %v7471_v13 = vld [vmem:[%s9806_s1 + $0x20] sm:$0xff]   ;;  %v7475_v17 = vld [vmem:[%s9806_s1 + $0x18] sm:$0xff]   ;;  %v7479_v21 = vld [vmem:[%s9806_s1 + $0x10] sm:$0xff]  }
   0x7   :  { %7029 = vmatpush3.bf16.msra.mxu0 %v7463_v5  ;;  %v7472_v14 = vld [vmem:[%s9806_s1 + $0xe0] sm:$0xff]   ;;  %v7476_v18 = vld [vmem:[%s9806_s1 + $0xd8] sm:$0xff]   ;;  %v7480_v22 = vld [vmem:[%s9806_s1 + $0xd0] sm:$0xff]  }
   0x8   :  { %7030 = vmatprep.subr.bf16.mxu0 %v7466_v8  ;;  %v7473_v15 = vld [vmem:[%s9806_s1 + $0xa0] sm:$0xff]   ;;  %v7477_v19 = vld [vmem:[%s9806_s1 + $0x98] sm:$0xff]   ;;  %v7481_v23 = vld [vmem:[%s9806_s1 + $0x90] sm:$0xff]  }
   0x9   :  { %7057 = vmatpush3.bf16.msra.mxu1 %v7465_v7  ;;  %v7482_v24 = vld [vmem:[%s9806_s1 + $0x48] sm:$0xff]   ;;  %v7486_v28 = vld [vmem:[%s9806_s1 + $0x40] sm:$0xff]   ;;  %v7493_v34 = vld [vmem:[%s9806_s1 + $0x178] sm:$0xff]  }
   0xa   :  { %7058 = vmatprep.subr.bf16.mxu1 %v7468_v10  ;;  %v7483_v25 = vld [vmem:[%s9806_s1 + $0x8] sm:$0xff]   ;;  %v7487_v29 = vld [vmem:[%s9806_s1] sm:$0xff]   ;;  %v7497_v37 = vld [vmem:[%s9806_s1 + $0x138] sm:$0xff]  }
   0xb   :  { %7031 = vmatpush3.bf16.msra.mxu0 %v7467_v9  ;;  %v7484_v26 = vld [vmem:[%s9806_s1 + $0xc8] sm:$0xff]   ;;  %v7488_v30 = vld [vmem:[%s9806_s1 + $0xc0] sm:$0xff]   ;;  %v7498_v38 = vld [vmem:[%s9806_s1 + $0x170] sm:$0xff]   ;;  %v8059_v9 = vmov 0  }
   0xc   :  { %7032 = vmatprep.subr.bf16.mxu0 %v7470_v12  ;;  %v7485_v27 = vld [vmem:[%s9806_s1 + $0x88] sm:$0xff]   ;;  %v7489_v31 = vld [vmem:[%s9805_s0] ss:$28 sps:$4 sm:$0xff]   ;;  %v7499_v39 = vld [vmem:[%s9806_s1 + $0x130] sm:$0xff]  }
   0xd   :  { %7059 = vmatpush3.bf16.msra.mxu1 %v7469_v11  ;;  %v7491_v32 = vld [vmem:[%s9805_s0 + $0x4] ss:$28 sps:$4 sm:$0xff]   ;;  %v7496_v36 = vld [vmem:[%s9805_s0 + $0xc] ss:$28 sps:$4 sm:$0xff]   ;;  %v7505_v44 = vld [vmem:[%s9805_s0 + $0x3c] ss:$28 sps:$4 sm:$0xff]  }
   0xe   :  { %7060 = vmatprep.subr.bf16.mxu1 %v7472_v14  ;;  %v7492_v33 = vld [vmem:[%s9806_s1 + $0x80] sm:$0xff]   ;;  %573 = vmatprep.mubr.bf16.mxu0 %v7491_v32  ;;  %v7500_v40 = vld [vmem:[%s9806_s1 + $0x168] sm:$0xff]   ;;  %v7504_v45 = vld [vmem:[%s9806_s1 + $0x158] sm:$0xff]  }
   0xf   :  { %7033 = vmatpush3.bf16.msra.mxu0 %v7471_v13  ;;  %v7494_v35 = vld [vmem:[%s9805_s0 + $0x8] ss:$28 sps:$4 sm:$0xff]   ;;  %622 = vmatprep.mubr.bf16.mxu1 %v7496_v36  ;;  %v7508_v46 = vld [vmem:[%s9805_s0 + $0x38] ss:$28 sps:$4 sm:$0xff]   ;;  %v7511_v48 = vld [vmem:[%s9805_s0 + $0x40] ss:$28 sps:$4 sm:$0xff]  }
  0x10   :  { %7034 = vmatprep.subr.bf16.mxu0 %v7474_v16  ;;  %v7501_v41 = vld [vmem:[%s9806_s1 + $0x128] sm:$0xff]   ;;  %v7502_v42 = vld [vmem:[%s9806_s1 + $0x160] sm:$0xff]   ;;  %v7507_v50 = vld [vmem:[%s9806_s1 + $0x118] sm:$0xff]  }
  0x11   :  { %7061 = vmatpush3.bf16.msra.mxu1 %v7473_v15  ;;  %v7503_v43 = vld [vmem:[%s9806_s1 + $0x120] sm:$0xff]   ;;  %v7513_v49 = vld [vmem:[%s9806_s1 + $0x188] sm:$0xff]   ;;  %v7512_v51 = vld [vmem:[%s9806_s1 + $0x150] sm:$0xff]  }
  0x12   :  { %7062 = vmatprep.subr.bf16.mxu1 %v7476_v18  ;;  %v7509_v47 = vld [vmem:[%s9805_s0 + $0x44] ss:$28 sps:$4 sm:$0xff]   ;;  %v7514_v53 = vld [vmem:[%s9806_s1 + $0x110] sm:$0xff]   ;;  %v7515_v54 = vld [vmem:[%s9806_s1 + $0x148] sm:$0xff]  }
  0x13   :  { %7035 = vmatpush3.bf16.msra.mxu0 %v7475_v17  ;;  %v7517_v52 = vld [vmem:[%s9806_s1 + $0x180] sm:$0xff]   ;;  %v7520_v55 = vld [vmem:[%s9805_s0 + $0x18] ss:$28 sps:$4 sm:$0xff]   ;;  %v7521_v56 = vld [vmem:[%s9805_s0 + $0x50] ss:$28 sps:$4 sm:$0xff]  }
  0x14   :  { %7036 = vmatprep.subr.bf16.mxu0 %v7478_v20  ;;  %v7516_v57 = vld [vmem:[%s9806_s1 + $0x108] sm:$0xff]   ;;  %v7524_v58 = vld [vmem:[%s9805_s0 + $0x14] ss:$28 sps:$4 sm:$0xff]   ;;  %v7518_v59 = vld [vmem:[%s9806_s1 + $0x140] sm:$0xff]  }
  0x15   :  { %7063 = vmatpush3.bf16.msra.mxu1 %v7477_v19  ;;  %v7519_v60 = vld [vmem:[%s9806_s1 + $0x100] sm:$0xff]   ;;  %v7522_v61 = vld [vmem:[%s9805_s0 + $0x10] ss:$28 sps:$4 sm:$0xff]  }
  0x16   :  { %7064 = vmatprep.subr.bf16.mxu1 %v7480_v22  ;;  %v7525_v62 = vld [vmem:[%s9805_s0 + $0x4c] ss:$28 sps:$4 sm:$0xff]   ;;  %v7531_v2 = vld [vmem:[%s9808_s3 + $0xc0] ss:$28 sps:$4 sm:$0xff]   ;;  %v7534_v4 = vld [vmem:[%s9808_s3 + $0x74] ss:$28 sps:$4 sm:$0xff]  }
  0x17   :  { %7037 = vmatpush3.bf16.msra.mxu0 %v7479_v21  ;;  %v7527_v63 = vld [vmem:[%s9805_s0 + $0x48] ss:$28 sps:$4 sm:$0xff]   ;;  %v7532_v5 = vld [vmem:[%s9808_s3 + $0x70] ss:$28 sps:$4 sm:$0xff]  }
  0x18   :  { %7038 = vmatprep.subr.bf16.mxu0 %v7482_v24  ;;  %v7530_v0 = vld [vmem:[%s9808_s3 + $0xac] ss:$28 sps:$4 sm:$0xff]   ;;  %v7538_v7 = vld [vmem:[%s9808_s3 + $0xb4] ss:$28 sps:$4 sm:$0xff]   ;;  %v7541_v8 = vld [vmem:[%s9808_s3 + $0x44] ss:$28 sps:$4 sm:$0xff]  }
  0x19   :  { %7065 = vmatpush3.bf16.msra.mxu1 %v7481_v23  ;;  %v7528_v1 = vld [vmem:[%s9808_s3 + $0xa8] ss:$28 sps:$4 sm:$0xff]  }
  0x1a   :  { %7066 = vmatprep.subr.bf16.mxu1 %v7484_v26  ;;  %v7535_v6 = vld [vmem:[%s9808_s3 + $0x88] ss:$28 sps:$4 sm:$0xff]  }
  0x1b   :  { %7039 = vmatpush3.bf16.msra.mxu0 %v7483_v25 }
  0x1c   :  { %7040 = vmatprep.subr.bf16.mxu0 %v7486_v28 }
  0x1d   :  { %7067 = vmatpush3.bf16.msra.mxu1 %v7485_v27 }
  0x1e   :  { %7068 = vmatprep.subr.bf16.mxu1 %v7488_v30 }
  0x1f   :  { %7041 = vmatpush3.bf16.msra.mxu0 %v7487_v29 }
  0x20   :  { %7082 = vmatprep.subr.bf16.mxu0 %v7493_v34 }
  0x21   :  { %7069 = vmatpush3.bf16.msra.mxu1 %v7492_v33 }
  0x22   :  { %574 = vmatmul.mubr.bf16.vlgmr.msra.gmra.mxu0 %v7489_v31  ;;  %7300 = vmatprep.subr.bf16.mxu1 %v7513_v49 }
  0x23   :  { %7083 = vmatpush3.bf16.msra.mxu0 %v7497_v37  ;;  %581 = vmatprep.mubr.bf16.mxu0 %v7505_v44 }
  0x24   :  { %623 = vmatmul.mubr.bf16.vlgmr.msra.gmra.mxu1 %v7494_v35  ;;  %7084 = vmatprep.subr.bf16.mxu0 %v7498_v38 }
  0x25   :  { %630 = vmatprep.mubr.bf16.mxu1 %v7509_v47  ;;  %7301 = vmatpush3.bf16.msra.mxu1 %v7513_v49 }
  0x26   :  { %7302 = vmatprep.subr.bf16.mxu1 %v7517_v52 }
  0x27   :  { %7085 = vmatpush3.bf16.msra.mxu0 %v7499_v39 }
  0x28   :  { %7086 = vmatprep.subr.bf16.mxu0 %v7500_v40 }
  0x29   :  { %7303 = vmatpush3.bf16.msra.mxu1 %v7517_v52 }
  0x2a   :  { %582 = vmatmul.mubr.bf16.gmra.mxu0 %v7508_v46  ;;  %916 = vmatprep.subr.bf16.mxu1 %v7530_v0 }
  0x2b   :  { %7087 = vmatpush3.bf16.msra.mxu0 %v7501_v41  ;;  %671 = vmatprep.mubr.bf16.mxu0 %v7524_v58 }
  0x2c   :  { %7088 = vmatprep.subr.bf16.mxu0 %v7502_v42  ;;  %631 = vmatmul.mubr.bf16.gmra.mxu1 %v7511_v48 }
  0x2d   :  { %7304 = vmatprep.mubr.msk.bf16.mxu1 %vm534_vm0, %v7520_v55 }
  0x2f   :  { %7089 = vmatpush3.bf16.msra.mxu0 %v7503_v43 }
  0x30   :  { %7090 = vmatprep.subr.bf16.mxu0 %v7504_v45 }
  0x33   :  { %7091 = vmatpush3.bf16.msra.mxu0 %v7507_v50 }
  0x34   :  { %7092 = vmatprep.subr.bf16.mxu0 %v7512_v51  ;;  %7305 = vmatmul.mubr.msk.bf16.vlgmr.msra.gmra.mxu1 %vm534_vm0, %v7521_v56 }
  0x35   :  { %917 = vmatpush1.bf16.msra.mxu1 %v7528_v1  ;;  %936 = vmatprep.mubr.bf16.mxu1 %v8059_v9 }
  0x36   :  { %918 = vmatprep.subr.bf16.mxu1 %v7534_v4 }
  0x37   :  { %7093 = vmatpush3.bf16.msra.mxu0 %v7514_v53 }
  0x38   :  { %7094 = vmatprep.subr.bf16.mxu0 %v7515_v54 }
  0x39   :  { %919 = vmatpush1.bf16.msra.mxu1 %v7532_v5 }
  0x3a   :  { %957 = vmatprep.subr.bf16.mxu1 %v7538_v7 }
  0x3b   :  { %7095 = vmatpush3.bf16.msra.mxu0 %v7516_v57 }
  0x3c   :  { %7096 = vmatprep.subr.bf16.mxu0 %v7518_v59 }
  0x3f   :  { %7097 = vmatpush3.bf16.msra.mxu0 %v7519_v60 }
  0x40   :  { %7308 = vmatprep.subr.bf16.mxu0 %v8058_v3 }
  0x42   :  { %672 = vmatmul.mubr.bf16.vlgmr.msra.gmra.mxu0 %v7522_v61 }
  0x43   :  { %679 = vmatprep.mubr.bf16.mxu0 %v7525_v62  ;;  %7309 = vmatpush3.bf16.msra.mxu0 %v7531_v2 }
  0x44   :  { %7310 = vmatprep.subr.bf16.mxu0 %v8058_v3 }
  0x47   :  { %7311 = vmatpush3.bf16.msra.mxu0 %v7535_v6 }
  0x48   :  { %1195 = vmatprep.subr.bf16.mxu0 %v7541_v8 }
  0x4a   :  { %680 = vmatmul.mubr.bf16.gmra.mxu0 %v7527_v63 }
  0x4b   :  { %7312 = vmatprep.mubr.msk.bf16.mxu0 %vm8060_vm1, %v8058_v3 }
  0xe2   :  { %v7042_v10 = vpop.f32.mrf.mxu0 }
  0xe4   :  { %v7043_v11 = vpop.f32.mrf.mxu0 }
  0xe5   :  { %19 = vsyncpa [#allocation5], 0  ;;  %v7070_v12 = vpop.f32.mrf.mxu1  ;;  %v6327_v18 = vld [vmem:[%s9807_s2] ss:$0 sm:$0xff]  ;;  %v7044_v39 = vadd.f32 %v7043_v11, %v7042_v10  ;;  %s8061_s27 = smov [#allocation4]  }
  0xe6   :  { %v7045_v13 = vpop.f32.mrf.mxu0  ;;  %s6302_s0 = sshll.u32 %s8061_s27, 4  ;;  %s6303_s0 = int_to_ptr.vmem [resolvable:$true] %s6302_s0 }
  0xe7   :  { %v7071_v14 = vpop.f32.mrf.mxu1  ;;  %v576_v40 = vadd.f32 %v7044_v39, %v6327_v18  ;;  %v7562_v39 = vld [vmem:[%s9808_s3] ss:$28 sps:$4 sm:$0xff]   ;;  %s7994_s28 = scalar_lea.vmem %s6303_s0, 32  ;;  %p7999_p1 = scmp.lt.s32.totalorder %s6303_s0, %s6303_s0 }
  0xe8   :  { %v7046_v15 = vpop.f32.mrf.mxu0  ;;  %v7072_v41 = vadd.f32 %v7071_v14, %v7070_v12  ;;  %p7995_p0 = scmp.ne.s32.totalorder %s6303_s0, %s7994_s28  ;;  %p8000_p2 = scmp.lt.s32.totalorder %s7994_s28, %s7994_s28 }
  0xe9   :  { %v7047_v16 = vadd.f32 %v7046_v15, %v7045_v13  ;;  %v7073_v17 = vpop.f32.mrf.mxu1 }
  0xea   :  { %v7048_v23 = vpop.f32.mrf.mxu0  ;;  %v625_v45 = vadd.f32 %v7072_v41, %v576_v40  ;;  %v7565_v40 = vld [vmem:[%s9808_s3 + $0xe8] ss:$28 sps:$4 sm:$0xff]   ;;  %p8001_p3 = por %p8000_p2, %p7999_p1 }
  0xeb   :  { %v579_v19 = vadd.f32 %v7047_v16, %v6327_v18  ;;  %v7074_v20 = vpop.f32.mrf.mxu1  ;;  %v7570_v41 = vld [vmem:[%s9808_s3 + $0x4c] ss:$28 sps:$4 sm:$0xff]  }
  0xec   :  { %v7075_v21 = vadd.f32 %v7074_v20, %v7073_v17  ;;  %v7049_v24 = vpop.f32.mrf.mxu0  ;;  %p8002_p4 = pnand %p8001_p3, %p7995_p0 }
  0xed   :  { %v7076_v25 = vpop.f32.mrf.mxu1  ;;  %v7050_v26 = vadd.f32 %v7049_v24, %v7048_v23  ;;  %v7542_v24 = vld [vmem:[%s9808_s3 + $0x78] ss:$28 sps:$4 sm:$0xff]  }
  0xee   :  { %v628_v22 = vadd.f32 %v7075_v21, %v579_v19  ;;  %v7051_v27 = vpop.f32.mrf.mxu0  ;;  %v7539_v19 = vld [vmem:[%s9808_s3 + $0x40] ss:$28 sps:$4 sm:$0xff]  }
  0xef   :  { %v7077_v28 = vpop.f32.mrf.mxu1  ;;  %v584_v29 = vadd.f32 %v7050_v26, %v6327_v18  ;;  %v7544_v21 = vld [vmem:[%s9808_s3 + $0x7c] ss:$28 sps:$4 sm:$0xff]  }
  0xf0   :  { %v7078_v30 = vadd.f32 %v7077_v28, %v7076_v25  ;;  %v7052_v31 = vpop.f32.mrf.mxu0  ;;  %v7545_v25 = vld [vmem:[%s9808_s3 + $0x8] ss:$28 sps:$4 sm:$0xff]   ;;  %v7550_v26 = vld [vmem:[%s9808_s3 + $0xbc] ss:$28 sps:$4 sm:$0xff]  }
  0xf1   :  { %v7079_v32 = vpop.f32.mrf.mxu1  ;;  %v7053_v34 = vadd.f32 %v7052_v31, %v7051_v27  ;;  %v7548_v28 = vld [vmem:[%s9808_s3 + $0xb8] ss:$28 sps:$4 sm:$0xff]   ;;  %v7552_v31 = vld [vmem:[%s9808_s3 + $0x80] ss:$28 sps:$4 sm:$0xff]  }
  0xf2   :  { %v633_v33 = vadd.f32 %v7078_v30, %v584_v29  ;;  %v7551_v29 = vld [vmem:[%s9808_s3 + $0x50] ss:$28 sps:$4 sm:$0xff]   ;;  %v7554_v30 = vld [vmem:[%s9808_s3 + $0x84] ss:$28 sps:$4 sm:$0xff]  }
  0xf3   :  { %v7080_v35 = vpop.f32.mrf.mxu1  ;;  %v587_v36 = vadd.f32 %v7053_v34, %v6327_v18  ;;  %v7536_v18 = vld [vmem:[%s9808_s3 + $0xb0] ss:$28 sps:$4 sm:$0xff]   ;;  %v7561_v34 = vld [vmem:[%s9808_s3 + $0x124] ss:$28 sps:$4 sm:$0xff]  }
  0xf4   :  { %v7081_v37 = vadd.f32 %v7080_v35, %v7079_v32  ;;  %v7555_v32 = vld [vmem:[%s9808_s3 + $0x18] ss:$28 sps:$4 sm:$0xff]  }
  0xf5   :  { %v7306_v43 = vpop.f32.mrf.mxu1  ;;  %v7556_v35 = vld [vmem:[%s9808_s3 + $0x38] ss:$28 sps:$4 sm:$0xff]  }
  0xf6   :  { %v636_v38 = vadd.f32 %v7081_v37, %v587_v36  ;;  %v7559_v36 = vld [vmem:[%s9808_s3 + $0x120] ss:$28 sps:$4 sm:$0xff]  }
  0xf7   :  { %v722_v49 = vpop.f32.mrf.mxu1  ;;  %v7564_v37 = vld [vmem:[%s9808_s3 + $0x4] ss:$28 sps:$4 sm:$0xff]  }
  0xf9   :  { %v7307_v63 = vpop.f32.mrf.mxu1 }
  0xfb   :  { %v725_v15 = vpop.f32.mrf.mxu1 }
 0x102   :  { %v7098_v42 = vpop.f32.mrf.mxu0 }
 0x104   :  { %v7099_v44 = vpop.f32.mrf.mxu0 }
 0x105   :  { %v7100_v46 = vadd.f32 %v7099_v44, %v7098_v42  ;;  %v7571_v44 = vld [vmem:[%s9808_s3 + $0x130] ss:$28 sps:$4 sm:$0xff]  }
 0x106   :  { %v7101_v47 = vpop.f32.mrf.mxu0 }
 0x107   :  { %v674_v48 = vadd.f32 %v7100_v46, %v625_v45  ;;  %v7574_v46 = vld [vmem:[%s9808_s3 + $0x14] ss:$28 sps:$4 sm:$0xff]  }
 0x108   :  { %v7102_v50 = vpop.f32.mrf.mxu0 }
 0x109   :  { %v723_v51 = vadd.f32 %v722_v49, %v674_v48  ;;  %v7103_v6 = vadd.f32 %v7102_v50, %v7101_v47  ;;  %v7572_v48 = vld [vmem:[%s9808_s3 + $0x10] ss:$28 sps:$4 sm:$0xff]   ;;  %v7575_v49 = vld [vmem:[%s9808_s3 + $0xf8] ss:$28 sps:$4 sm:$0xff]  }
 0x10a   :  { %v7104_v52 = vpop.f32.mrf.mxu0  ;;  %v7578_v50 = vld [vmem:[%s9808_s3 + $0x11c] ss:$28 sps:$4 sm:$0xff]  }
 0x10b   :  { %v741_v53 = vmin.f32 %v723_v51, 20.0  ;;  %v677_v12 = vadd.f32 %v7103_v6, %v628_v22  ;;  %vm737_vm3 = vcmp.gt.f32.partialorder %v723_v51, 20.0  ;;  %v7547_v22 = vld [vmem:[%s9808_s3 + $0xc] ss:$28 sps:$4 sm:$0xff]  }
 0x10c   :  { %v7105_v54 = vpop.f32.mrf.mxu0 }
 0x10d   :  { %v745_v55 = vmul.f32 1.442695, %v741_v53  ;;  %v7106_v56 = vadd.f32 %v7105_v54, %v7104_v52  ;;  %v8361_v17 = vadd.f32 %v725_v15, %v677_v12  ;;  %v7576_v52 = vld [vmem:[%s9808_s3 + $0x118] ss:$28 sps:$4 sm:$0xff]   ;;  %v7579_v53 = vld [vmem:[%s9808_s3 + $0x190] ss:$28 sps:$4 sm:$0xff]  }
 0x10e   :  { %v7107_v57 = vpop.f32.mrf.mxu0  ;;  %v7584_v54 = vld [vmem:[%s9808_s3 + $0xe4] ss:$28 sps:$4 sm:$0xff]   ;;  %v7604_v15 = vld [vmem:[%s9808_s3 + $0x154] ss:$28 sps:$4 sm:$0xff]  }
 0x10f   :  { %7948 = vpow2.f32 %v745_v55  ;;  %v682_v58 = vadd.f32 %v7106_v56, %v633_v33  ;;  %v742_v23 = vmin.f32 %v8361_v17, 20.0  ;;  %v7558_v33 = vld [vmem:[%s9808_s3 + $0x3c] ss:$28 sps:$4 sm:$0xff]   ;;  %v7596_v12 = vld [vmem:[%s9808_s3 + $0x188] ss:$28 sps:$4 sm:$0xff]   ;;  %vm738_vm5 = vcmp.gt.f32.partialorder %v8361_v17, 20.0 }
 0x110   :  { %v7108_v59 = vpop.f32.mrf.mxu0  ;;  %v7587_v55 = vld [vmem:[%s9808_s3 + $0x15c] ss:$28 sps:$4 sm:$0xff]  }
 0x111   :  { %v8355_v60 = vadd.f32 %v7306_v43, %v682_v58  ;;  %v7109_v61 = vadd.f32 %v7108_v59, %v7107_v57  ;;  %v747_v27 = vmul.f32 1.442695, %v742_v23  ;;  %v7568_v43 = vld [vmem:[%s9808_s3 + $0x48] ss:$28 sps:$4 sm:$0xff]   ;;  %v7582_v56 = vld [vmem:[%s9808_s3 + $0xe0] ss:$28 sps:$4 sm:$0xff]  }
 0x112   :  { %v7585_v57 = vld [vmem:[%s9808_s3 + $0x158] ss:$28 sps:$4 sm:$0xff]   ;;  %v7590_v58 = vld [vmem:[%s9808_s3 + $0x12c] ss:$28 sps:$4 sm:$0xff]  }
 0x113   :  { %v685_v62 = vadd.f32 %v7109_v61, %v636_v38  ;;  %v7567_v38 = vld [vmem:[%s9808_s3 + $0xec] ss:$28 sps:$4 sm:$0xff]   ;;  %v7591_v61 = vld [vmem:[%s9808_s3 + $0x1a0] ss:$28 sps:$4 sm:$0xff]   ;;  %v7608_v23 = vld [vmem:[%s9808_s3 + $0x198] ss:$28 sps:$4 sm:$0xff]  }
 0x114   :  { %v7588_v59 = vld [vmem:[%s9808_s3 + $0x128] ss:$28 sps:$4 sm:$0xff]   ;;  %vm739_vm7 = vcmp.gt.f32.partialorder %v8355_v60, 20.0 }
 0x115   :  { %v8357_v0 = vadd.f32 %v7307_v63, %v685_v62 }
 0x117   :  { %vm740_vm9 = vcmp.gt.f32.partialorder %v8357_v0, 20.0 }
 0x11c   :  { %v7949_v1 = vpop.eup %7948 }
 0x11d   :  { %v753_v2 = vadd.f32 1.0, %v7949_v1  ;;  %v756_v4 = vmul.f32 -0.5, %v7949_v1  ;;  %v759_v7 = vand.u32 2147483647, %v7949_v1 }
 0x11f   :  { %7950 = vlog2.f32 %v753_v2  ;;  %v757_v5 = vadd.f32 1.0, %v756_v4  ;;  %vm760_vm2 = vcmp.lt.f32.partialorder %v759_v7, 0.0004427343  ;;  %v7592_v4 = vld [vmem:[%s9808_s3 + $0xf0] ss:$28 sps:$4 sm:$0xff]  }
 0x120   :  { %7952 = vpow2.f32 %v747_v27  ;;  %v7598_v7 = vld [vmem:[%s9808_s3 + $0x18c] ss:$28 sps:$4 sm:$0xff]   ;;  %v7615_v27 = vld [vmem:[%s9808_s3 + $0x1d8] ss:$28 sps:$4 sm:$0xff]  }
 0x121   :  { %v758_v11 = vmul.f32 %v7949_v1, %v757_v5  ;;  %v7594_v1 = vld [vmem:[%s9808_s3 + $0xf4] ss:$28 sps:$4 sm:$0xff]   ;;  %v7595_v5 = vld [vmem:[%s9808_s3 + $0x168] ss:$28 sps:$4 sm:$0xff]  }
 0x12c   :  { %v7951_v8 = vpop.eup %7950 }
 0x12d   :  { %v755_v10 = vmul.f32 0.6931472, %v7951_v8  ;;  %v8445_v42 = vpop.eup %7952  ;;  %v7601_v8 = vld [vmem:[%s9808_s3 + $0x204] ss:$28 sps:$4 sm:$0xff]  }
 0x12e   :  { %v762_v47 = vadd.f32 1.0, %v8445_v42  ;;  %v765_v62 = vmul.f32 -0.5, %v8445_v42 }
 0x12f   :  { %v761_v13 = vsel %vm760_vm2, %v758_v11, %v755_v10  ;;  %v768_v10 = vand.u32 2147483647, %v8445_v42 }
 0x130   :  { %v789_v14 = vsel %vm737_vm3, %v723_v51, %v761_v13  ;;  %v7581_v51 = vld [vmem:[%s9808_s3 + $0x194] ss:$28 sps:$4 sm:$0xff]   ;;  %7954 = vlog2.f32 %v762_v47  ;;  %v766_v6 = vadd.f32 1.0, %v765_v62  ;;  %v7599_v13 = vld [vmem:[%s9808_s3 + $0x200] ss:$28 sps:$4 sm:$0xff]  }
 0x131   :  { %v8359_v16 = vpack.c.bf16 %v789_v14, %v789_v14  ;;  %vm769_vm4 = vcmp.lt.f32.partialorder %v768_v10, 0.0004427343  ;;  %v7636_v47 = vld [vmem:[%s9808_s3 + $0x268] ss:$28 sps:$4 sm:$0xff]   ;;  %v7655_v62 = vld [vmem:[%s9808_s3 + $0x2b8] ss:$28 sps:$4 sm:$0xff]  }
 0x132   :  { %v767_v14 = vmul.f32 %v8445_v42, %v766_v6  ;;  %v7634_v42 = vld [vmem:[%s9808_s3 + $0x1d4] ss:$28 sps:$4 sm:$0xff]   ;;  %v7667_v6 = vld [vmem:[%s9808_s3 + $0x31c] ss:$28 sps:$4 sm:$0xff]   ;;  %v7670_v10 = vld [vmem:[%s9808_s3 + $0x2ec] ss:$28 sps:$4 sm:$0xff]  }
 0x133   :  { %v828_v20 = vrot.slane %v8359_v16, 1  ;;  %v8454_v45 = vrot.slane %v8359_v16, 2  ;;  %v8516_v63 = vrot.slane %v8359_v16, 3 }
 0x135   :  { %6424 = vmatmul.mubr.msk.bf16.vlgmr.msra.gmra.mxu1 %vm534_vm0, %v828_v20  ;;  %7313 = vmatmul.mubr.msk.bf16.vlgmr.msra.gmra.mxu0 %vm534_vm0, %v828_v20 }
 0x136   :  { %958 = vmatpush1.bf16.msra.mxu1 %v7536_v18  ;;  %1196 = vmatpush1.bf16.msra.mxu0 %v7539_v19  ;;  %v7602_v19 = vld [vmem:[%s9808_s3 + $0x150] ss:$28 sps:$4 sm:$0xff]  }
 0x137   :  { %959 = vmatprep.subr.bf16.mxu1 %v7544_v21  ;;  %1197 = vmatprep.subr.bf16.mxu0 %v7547_v22  ;;  %v7610_v21 = vld [vmem:[%s9808_s3 + $0x19c] ss:$28 sps:$4 sm:$0xff]  }
 0x138   :  { %977 = vmatprep.mubr.bf16.mxu1 %v8059_v9  ;;  %1215 = vmatprep.mubr.bf16.mxu0 %v8059_v9 }
 0x13a   :  { %960 = vmatpush1.bf16.msra.mxu1 %v7542_v24  ;;  %1198 = vmatpush1.bf16.msra.mxu0 %v7545_v25  ;;  %v7611_v24 = vld [vmem:[%s9808_s3 + $0x210] ss:$28 sps:$4 sm:$0xff]  }
 0x13b   :  { %998 = vmatprep.subr.bf16.mxu1 %v7550_v26  ;;  %7316 = vmatprep.subr.bf16.mxu0 %v8058_v3  ;;  %v7612_v26 = vld [vmem:[%s9808_s3 + $0x160] ss:$28 sps:$4 sm:$0xff]  }
 0x13d   :  { %6425 = vmatmul.mubr.msk.bf16.vlgmr.msra.gmra.mxu1 %vm534_vm0, %v828_v20  ;;  %6443 = vmatmul.mubr.msk.bf16.vlgmr.msra.gmra.mxu0 %vm534_vm0, %v8359_v16  ;;  %v7955_v2 = vpop.eup %7954 }
 0x13e   :  { %999 = vmatpush1.bf16.msra.mxu1 %v7548_v28  ;;  %7317 = vmatpush3.bf16.msra.mxu0 %v7551_v29  ;;  %v764_v11 = vmul.f32 0.6931472, %v7955_v2  ;;  %v7618_v28 = vld [vmem:[%s9808_s3 + $0x1fc] ss:$28 sps:$4 sm:$0xff]   ;;  %v7621_v29 = vld [vmem:[%s9808_s3 + $0x274] ss:$28 sps:$4 sm:$0xff]  }
 0x13f   :  { %1000 = vmatprep.subr.bf16.mxu1 %v7554_v30  ;;  %7318 = vmatprep.subr.bf16.mxu0 %v8058_v3  ;;  %v7616_v30 = vld [vmem:[%s9808_s3 + $0x1f8] ss:$28 sps:$4 sm:$0xff]  }
 0x140   :  { %1018 = vmatprep.mubr.bf16.mxu1 %v8059_v9  ;;  %7320 = vmatprep.mubr.msk.bf16.mxu0 %vm8060_vm1, %v8058_v3  ;;  %v770_v18 = vsel %vm769_vm4, %v767_v14, %v764_v11  ;;  %v7656_v2 = vld [vmem:[%s9808_s3 + $0x2d8] ss:$28 sps:$4 sm:$0xff]   ;;  %v7668_v11 = vld [vmem:[%s9808_s3 + $0x2e8] ss:$28 sps:$4 sm:$0xff]  }
 0x141   :  { %v790_v22 = vsel %vm738_vm5, %v8361_v17, %v770_v18  ;;  %v7614_v17 = vld [vmem:[%s9808_s3 + $0x164] ss:$28 sps:$4 sm:$0xff]   ;;  %v7672_v18 = vld [vmem:[%s9808_s3 + $0x2b0] ss:$28 sps:$4 sm:$0xff]  }
 0x142   :  { %1001 = vmatpush1.bf16.msra.mxu1 %v7552_v31  ;;  %7319 = vmatpush3.bf16.msra.mxu0 %v7555_v32  ;;  %v8579_v25 = vpack.c.bf16 %v790_v22, %v790_v22  ;;  %v7619_v31 = vld [vmem:[%s9808_s3 + $0x270] ss:$28 sps:$4 sm:$0xff]   ;;  %v7624_v32 = vld [vmem:[%s9808_s3 + $0x1c4] ss:$28 sps:$4 sm:$0xff]  }
 0x143   :  { %1154 = vmatprep.subr.bf16.mxu1 %v7558_v33  ;;  %1451 = vmatprep.subr.bf16.mxu0 %v7561_v34  ;;  %v7627_v33 = vld [vmem:[%s9808_s3 + $0x23c] ss:$28 sps:$4 sm:$0xff]   ;;  %v743_v34 = vmin.f32 %v8355_v60, 20.0  ;;  %v7681_v22 = vld [vmem:[%s9808_s3 + $0x3c4] ss:$28 sps:$4 sm:$0xff]  }
 0x144   :  { %v8764_v14 = vrot.slane %v8579_v25, 3 }
 0x145   :  { %6426 = vmatmul.mubr.msk.bf16.vlgmr.msra.gmra.mxu1 %vm534_vm0, %v828_v20  ;;  %7321 = vmatmul.mubr.msk.bf16.vlgmr.msra.gmra.mxu0 %vm534_vm0, %v8359_v16  ;;  %v7605_v20 = vld [vmem:[%s9808_s3 + $0x1c8] ss:$28 sps:$4 sm:$0xff]  }
 0x146   :  { %1155 = vmatpush1.bf16.msra.mxu1 %v7556_v35  ;;  %1452 = vmatpush1.bf16.msra.mxu0 %v7559_v36  ;;  %v7622_v35 = vld [vmem:[%s9808_s3 + $0x1c0] ss:$28 sps:$4 sm:$0xff]   ;;  %v7625_v36 = vld [vmem:[%s9808_s3 + $0x238] ss:$28 sps:$4 sm:$0xff]  }
 0x147   :  { %1156 = vmatprep.subr.bf16.mxu1 %v7564_v37  ;;  %1453 = vmatprep.subr.bf16.mxu0 %v7567_v38  ;;  %v7630_v37 = vld [vmem:[%s9808_s3 + $0x20c] ss:$28 sps:$4 sm:$0xff]   ;;  %v749_v38 = vmul.f32 1.442695, %v743_v34  ;;  %v7688_v34 = vld [vmem:[%s9808_s3 + $0x358] ss:$28 sps:$4 sm:$0xff]  }
 0x148   :  { %1174 = vmatprep.mubr.bf16.mxu1 %v8059_v9  ;;  %1471 = vmatprep.mubr.bf16.mxu0 %v8059_v9 }
 0x149   :  { %7956 = vpow2.f32 %v749_v38  ;;  %v7695_v38 = vld [vmem:[%s9808_s3 + $0x398] ss:$28 sps:$4 sm:$0xff]  }
 0x14a   :  { %1157 = vmatpush1.bf16.msra.mxu1 %v7562_v39  ;;  %1454 = vmatpush1.bf16.msra.mxu0 %v7565_v40  ;;  %v7628_v39 = vld [vmem:[%s9808_s3 + $0x208] ss:$28 sps:$4 sm:$0xff]   ;;  %v7631_v40 = vld [vmem:[%s9808_s3 + $0x280] ss:$28 sps:$4 sm:$0xff]  }
 0x14b   :  { %1236 = vmatprep.subr.bf16.mxu1 %v7570_v41  ;;  %7324 = vmatprep.subr.bf16.mxu0 %v8058_v3  ;;  %v8640_v41 = vrot.slane %v8579_v25, 1 }
 0x14d   :  { %6442 = vmatmul.mubr.msk.bf16.vlgmr.msra.gmra.mxu1 %vm534_vm0, %v8359_v16  ;;  %6477 = vmatmul.mubr.msk.bf16.vlgmr.msra.gmra.mxu0 %vm534_vm0, %v8454_v45 }
 0x14e   :  { %1237 = vmatpush1.bf16.msra.mxu1 %v7568_v43  ;;  %7325 = vmatpush3.bf16.msra.mxu0 %v7571_v44  ;;  %v7632_v43 = vld [vmem:[%s9808_s3 + $0x1d0] ss:$28 sps:$4 sm:$0xff]   ;;  %v7635_v44 = vld [vmem:[%s9808_s3 + $0x248] ss:$28 sps:$4 sm:$0xff]  }
 0x14f   :  { %1238 = vmatprep.subr.bf16.mxu1 %v7574_v46  ;;  %7326 = vmatprep.subr.bf16.mxu0 %v8058_v3  ;;  %v7641_v46 = vld [vmem:[%s9808_s3 + $0x2e4] ss:$28 sps:$4 sm:$0xff]  }
 0x150   :  { %1256 = vmatprep.mubr.bf16.mxu1 %v8059_v9  ;;  %7328 = vmatprep.mubr.msk.bf16.mxu0 %vm8060_vm1, %v8058_v3 }
 0x152   :  { %1239 = vmatpush1.bf16.msra.mxu1 %v7572_v48  ;;  %7327 = vmatpush3.bf16.msra.mxu0 %v7575_v49  ;;  %v7639_v48 = vld [vmem:[%s9808_s3 + $0x2e0] ss:$28 sps:$4 sm:$0xff]   ;;  %v7644_v49 = vld [vmem:[%s9808_s3 + $0x234] ss:$28 sps:$4 sm:$0xff]  }
 0x153   :  { %1410 = vmatprep.subr.bf16.mxu1 %v7578_v50  ;;  %1714 = vmatprep.subr.bf16.mxu0 %v7581_v51  ;;  %v7647_v50 = vld [vmem:[%s9808_s3 + $0x2ac] ss:$28 sps:$4 sm:$0xff]  }
 0x154   :  { %v7642_v51 = vld [vmem:[%s9808_s3 + $0x230] ss:$28 sps:$4 sm:$0xff]  }
 0x155   :  { %6444 = vmatmul.mubr.msk.bf16.vlgmr.msra.gmra.mxu1 %vm534_vm0, %v8359_v16  ;;  %7329 = vmatmul.mubr.msk.bf16.vlgmr.msra.gmra.mxu0 %vm534_vm0, %v8454_v45  ;;  %v7607_v16 = vld [vmem:[%s9808_s3 + $0x1cc] ss:$28 sps:$4 sm:$0xff]  }
 0x156   :  { %1411 = vmatpush1.bf16.msra.mxu1 %v7576_v52  ;;  %1715 = vmatpush1.bf16.msra.mxu0 %v7579_v53  ;;  %v7645_v52 = vld [vmem:[%s9808_s3 + $0x2a8] ss:$28 sps:$4 sm:$0xff]   ;;  %v7650_v53 = vld [vmem:[%s9808_s3 + $0x27c] ss:$28 sps:$4 sm:$0xff]  }
 0x157   :  { %1412 = vmatprep.subr.bf16.mxu1 %v7584_v54  ;;  %1716 = vmatprep.subr.bf16.mxu0 %v7587_v55  ;;  %v8693_v54 = vpop.eup %7956  ;;  %v7648_v55 = vld [vmem:[%s9808_s3 + $0x278] ss:$28 sps:$4 sm:$0xff]  }
 0x158   :  { %1430 = vmatprep.mubr.bf16.mxu1 %v8059_v9  ;;  %1734 = vmatprep.mubr.bf16.mxu0 %v8059_v9 }
 0x15a   :  { %1413 = vmatpush1.bf16.msra.mxu1 %v7582_v56  ;;  %1717 = vmatpush1.bf16.msra.mxu0 %v7585_v57  ;;  %v7651_v56 = vld [vmem:[%s9808_s3 + $0x2f0] ss:$28 sps:$4 sm:$0xff]   ;;  %v8702_v57 = vrot.slane %v8579_v25, 2 }
 0x15b   :  { %1492 = vmatprep.subr.bf16.mxu1 %v7590_v58  ;;  %7332 = vmatprep.subr.bf16.mxu0 %v8058_v3  ;;  %v7654_v58 = vld [vmem:[%s9808_s3 + $0x244] ss:$28 sps:$4 sm:$0xff]  }
 0x15d   :  { %6476 = vmatmul.mubr.msk.bf16.vlgmr.msra.gmra.mxu1 %vm534_vm0, %v8454_v45  ;;  %6511 = vmatmul.mubr.msk.bf16.vlgmr.msra.gmra.mxu0 %vm534_vm0, %v8516_v63 }
 0x15e   :  { %1493 = vmatpush1.bf16.msra.mxu1 %v7588_v59  ;;  %7333 = vmatpush3.bf16.msra.mxu0 %v7591_v61  ;;  %v771_v59 = vadd.f32 1.0, %v8693_v54  ;;  %v7652_v61 = vld [vmem:[%s9808_s3 + $0x240] ss:$28 sps:$4 sm:$0xff]  }
 0x15f   :  { %1494 = vmatprep.subr.bf16.mxu1 %v7594_v1  ;;  %7334 = vmatprep.subr.bf16.mxu0 %v8058_v3  ;;  %v7661_v1 = vld [vmem:[%s9808_s3 + $0x354] ss:$28 sps:$4 sm:$0xff]  }
 0x160   :  { %1512 = vmatprep.mubr.bf16.mxu1 %v8059_v9  ;;  %7336 = vmatprep.mubr.msk.bf16.mxu0 %vm8060_vm1, %v8058_v3  ;;  %7958 = vlog2.f32 %v771_v59  ;;  %v7719_v59 = vld [vmem:[%s9808_s3 + $0x4a0] ss:$28 sps:$4 sm:$0xff]  }
 0x162   :  { %1495 = vmatpush1.bf16.msra.mxu1 %v7592_v4  ;;  %7335 = vmatpush3.bf16.msra.mxu0 %v7595_v5  ;;  %v7659_v4 = vld [vmem:[%s9808_s3 + $0x350] ss:$28 sps:$4 sm:$0xff]   ;;  %v7664_v5 = vld [vmem:[%s9808_s3 + $0x2a4] ss:$28 sps:$4 sm:$0xff]  }
 0x163   :  { %1673 = vmatprep.subr.bf16.mxu1 %v7598_v7  ;;  %1977 = vmatprep.subr.bf16.mxu0 %v7601_v8  ;;  %v7662_v7 = vld [vmem:[%s9808_s3 + $0x2a0] ss:$28 sps:$4 sm:$0xff]   ;;  %v7665_v8 = vld [vmem:[%s9808_s3 + $0x318] ss:$28 sps:$4 sm:$0xff]  }
 0x165   :  { %6478 = vmatmul.mubr.msk.bf16.vlgmr.msra.gmra.mxu1 %vm534_vm0, %v8454_v45  ;;  %7337 = vmatmul.mubr.msk.bf16.vlgmr.msra.gmra.mxu0 %vm534_vm0, %v8516_v63  ;;  %v7638_v45 = vld [vmem:[%s9808_s3 + $0x26c] ss:$28 sps:$4 sm:$0xff]  }
 0x166   :  { %1674 = vmatpush1.bf16.msra.mxu1 %v7596_v12  ;;  %1978 = vmatpush1.bf16.msra.mxu0 %v7599_v13  ;;  %v7671_v12 = vld [vmem:[%s9808_s3 + $0x360] ss:$28 sps:$4 sm:$0xff]   ;;  %v774_v13 = vmul.f32 -0.5, %v8693_v54 }
 0x167   :  { %1675 = vmatprep.subr.bf16.mxu1 %v7604_v15  ;;  %1979 = vmatprep.subr.bf16.mxu0 %v7607_v16  ;;  %v7674_v15 = vld [vmem:[%s9808_s3 + $0x2b4] ss:$28 sps:$4 sm:$0xff]  }
 0x168   :  { %1693 = vmatprep.mubr.bf16.mxu1 %v8059_v9  ;;  %1997 = vmatprep.mubr.bf16.mxu0 %v8059_v9 }
 0x16a   :  { %1676 = vmatpush1.bf16.msra.mxu1 %v7602_v19  ;;  %1980 = vmatpush1.bf16.msra.mxu0 %v7605_v20  ;;  %v7675_v19 = vld [vmem:[%s9808_s3 + $0x328] ss:$28 sps:$4 sm:$0xff]   ;;  %v775_v20 = vadd.f32 1.0, %v774_v13  ;;  %v7738_v13 = vld [vmem:[%s9808_s3 + $0x49c] ss:$28 sps:$4 sm:$0xff]  }
 0x16b   :  { %1755 = vmatprep.subr.bf16.mxu1 %v7610_v21  ;;  %7340 = vmatprep.subr.bf16.mxu0 %v8058_v3  ;;  %v7678_v21 = vld [vmem:[%s9808_s3 + $0x34c] ss:$28 sps:$4 sm:$0xff]  }
 0x16d   :  { %6510 = vmatmul.mubr.msk.bf16.vlgmr.msra.gmra.mxu1 %vm534_vm0, %v8516_v63  ;;  %6545 = vmatmul.mubr.msk.bf16.vlgmr.msra.gmra.mxu0 %vm534_vm0, %v8579_v25  ;;  %v7959_v16 = vpop.eup %7958 }
 0x16e   :  { %1756 = vmatpush1.bf16.msra.mxu1 %v7608_v23  ;;  %7341 = vmatpush3.bf16.msra.mxu0 %v7611_v24  ;;  %v777_v23 = vand.u32 2147483647, %v8693_v54  ;;  %v773_v24 = vmul.f32 0.6931472, %v7959_v16  ;;  %v7739_v16 = vld [vmem:[%s9808_s3 + $0x510] ss:$28 sps:$4 sm:$0xff]  }
 0x16f   :  { %1757 = vmatprep.subr.bf16.mxu1 %v7614_v17  ;;  %7342 = vmatprep.subr.bf16.mxu0 %v8058_v3  ;;  %v7679_v17 = vld [vmem:[%s9808_s3 + $0x3c0] ss:$28 sps:$4 sm:$0xff]  }
 0x170   :  { %1775 = vmatprep.mubr.bf16.mxu1 %v8059_v9  ;;  %7344 = vmatprep.mubr.msk.bf16.mxu0 %vm8060_vm1, %v8058_v3  ;;  %vm778_vm6 = vcmp.lt.f32.partialorder %v777_v23, 0.0004427343  ;;  %v7748_v23 = vld [vmem:[%s9808_s3 + $0x4a8] ss:$28 sps:$4 sm:$0xff]  }
 0x172   :  { %1758 = vmatpush1.bf16.msra.mxu1 %v7612_v26  ;;  %7343 = vmatpush3.bf16.msra.mxu0 %v7615_v27  ;;  %v776_v26 = vmul.f32 %v8693_v54, %v775_v20  ;;  %v7684_v27 = vld [vmem:[%s9808_s3 + $0x314] ss:$28 sps:$4 sm:$0xff]   ;;  %v7742_v20 = vld [vmem:[%s9808_s3 + $0x460] ss:$28 sps:$4 sm:$0xff]  }
 0x173   :  { %1936 = vmatprep.subr.bf16.mxu1 %v7618_v28  ;;  %2241 = vmatprep.subr.bf16.mxu0 %v7621_v29  ;;  %v7687_v28 = vld [vmem:[%s9808_s3 + $0x38c] ss:$28 sps:$4 sm:$0xff]  }
 0x174   :  { %v779_v29 = vsel %vm778_vm6, %v776_v26, %v773_v24  ;;  %v7712_v54 = vld [vmem:[%s9808_s3 + $0x390] ss:$28 sps:$4 sm:$0xff]   ;;  %v7751_v24 = vld [vmem:[%s9808_s3 + $0x520] ss:$28 sps:$4 sm:$0xff]  }
 0x175   :  { %6512 = vmatmul.mubr.msk.bf16.vlgmr.msra.gmra.mxu1 %vm534_vm0, %v8516_v63  ;;  %7345 = vmatmul.mubr.msk.bf16.vlgmr.msra.gmra.mxu0 %vm534_vm0, %v8579_v25  ;;  %v7658_v63 = vld [vmem:[%s9808_s3 + $0x2dc] ss:$28 sps:$4 sm:$0xff]   ;;  %v7754_v26 = vld [vmem:[%s9808_s3 + $0x474] ss:$28 sps:$4 sm:$0xff]  }
 0x176   :  { %1937 = vmatpush1.bf16.msra.mxu1 %v7616_v30  ;;  %2242 = vmatpush1.bf16.msra.mxu0 %v7619_v31  ;;  %v7682_v30 = vld [vmem:[%s9808_s3 + $0x310] ss:$28 sps:$4 sm:$0xff]   ;;  %v7685_v31 = vld [vmem:[%s9808_s3 + $0x388] ss:$28 sps:$4 sm:$0xff]  }
 0x177   :  { %1938 = vmatprep.subr.bf16.mxu1 %v7624_v32  ;;  %2243 = vmatprep.subr.bf16.mxu0 %v7627_v33  ;;  %v7690_v32 = vld [vmem:[%s9808_s3 + $0x35c] ss:$28 sps:$4 sm:$0xff]   ;;  %v791_v33 = vsel %vm739_vm7, %v8355_v60, %v779_v29  ;;  %v7694_v60 = vld [vmem:[%s9808_s3 + $0x324] ss:$28 sps:$4 sm:$0xff]  }
 0x178   :  { %1956 = vmatprep.mubr.bf16.mxu1 %v8059_v9  ;;  %2261 = vmatprep.mubr.bf16.mxu0 %v8059_v9  ;;  %v7755_v29 = vld [vmem:[%s9808_s3 + $0x4e8] ss:$28 sps:$4 sm:$0xff]  }
 0x17a   :  { %1939 = vmatpush1.bf16.msra.mxu1 %v7622_v35  ;;  %2244 = vmatpush1.bf16.msra.mxu0 %v7625_v36  ;;  %v7691_v35 = vld [vmem:[%s9808_s3 + $0x3d0] ss:$28 sps:$4 sm:$0xff]   ;;  %v8827_v36 = vpack.c.bf16 %v791_v33, %v791_v33 }
 0x17b   :  { %2018 = vmatprep.subr.bf16.mxu1 %v7630_v37  ;;  %7348 = vmatprep.subr.bf16.mxu0 %v8058_v3  ;;  %v7692_v37 = vld [vmem:[%s9808_s3 + $0x320] ss:$28 sps:$4 sm:$0xff]  }
 0x17d   :  { %6544 = vmatmul.mubr.msk.bf16.vlgmr.msra.gmra.mxu1 %vm534_vm0, %v8579_v25  ;;  %6579 = vmatmul.mubr.msk.bf16.vlgmr.msra.gmra.mxu0 %vm534_vm0, %v8640_v41 }
 0x17e   :  { %2019 = vmatpush1.bf16.msra.mxu1 %v7628_v39  ;;  %7349 = vmatpush3.bf16.msra.mxu0 %v7631_v40  ;;  %v7698_v39 = vld [vmem:[%s9808_s3 + $0x3bc] ss:$28 sps:$4 sm:$0xff]   ;;  %v7701_v40 = vld [vmem:[%s9808_s3 + $0x434] ss:$28 sps:$4 sm:$0xff]  }
 0x17f   :  { %2020 = vmatprep.subr.bf16.mxu1 %v7634_v42  ;;  %7350 = vmatprep.subr.bf16.mxu0 %v8058_v3  ;;  %v7699_v42 = vld [vmem:[%s9808_s3 + $0x430] ss:$28 sps:$4 sm:$0xff]  }
 0x180   :  { %2038 = vmatprep.mubr.bf16.mxu1 %v8059_v9  ;;  %7352 = vmatprep.mubr.msk.bf16.mxu0 %vm8060_vm1, %v8058_v3 }
 0x182   :  { %2021 = vmatpush1.bf16.msra.mxu1 %v7632_v43  ;;  %7351 = vmatpush3.bf16.msra.mxu0 %v7635_v44  ;;  %v7704_v43 = vld [vmem:[%s9808_s3 + $0x384] ss:$28 sps:$4 sm:$0xff]   ;;  %v7707_v44 = vld [vmem:[%s9808_s3 + $0x3fc] ss:$28 sps:$4 sm:$0xff]  }
 0x183   :  { %2200 = vmatprep.subr.bf16.mxu1 %v7638_v45  ;;  %2504 = vmatprep.subr.bf16.mxu0 %v7641_v46  ;;  %v744_v45 = vmin.f32 %v8357_v0, 20.0  ;;  %v7702_v46 = vld [vmem:[%s9808_s3 + $0x380] ss:$28 sps:$4 sm:$0xff]  }
 0x185   :  { %6546 = vmatmul.mubr.msk.bf16.vlgmr.msra.gmra.mxu1 %vm534_vm0, %v8579_v25  ;;  %7353 = vmatmul.mubr.msk.bf16.vlgmr.msra.gmra.mxu0 %vm534_vm0, %v8640_v41  ;;  %v7676_v25 = vld [vmem:[%s9808_s3 + $0x348] ss:$28 sps:$4 sm:$0xff]  }
 0x186   :  { %2201 = vmatpush1.bf16.msra.mxu1 %v7636_v47  ;;  %2505 = vmatpush1.bf16.msra.mxu0 %v7639_v48  ;;  %v7705_v47 = vld [vmem:[%s9808_s3 + $0x3f8] ss:$28 sps:$4 sm:$0xff]   ;;  %v7710_v48 = vld [vmem:[%s9808_s3 + $0x3cc] ss:$28 sps:$4 sm:$0xff]  }
 0x187   :  { %2202 = vmatprep.subr.bf16.mxu1 %v7644_v49  ;;  %2506 = vmatprep.subr.bf16.mxu0 %v7647_v50  ;;  %v751_v49 = vmul.f32 1.442695, %v744_v45  ;;  %v7708_v50 = vld [vmem:[%s9808_s3 + $0x3c8] ss:$28 sps:$4 sm:$0xff]   ;;  %v7771_v45 = vld [vmem:[%s9808_s3 + $0x590] ss:$28 sps:$4 sm:$0xff]  }
 0x188   :  { %2220 = vmatprep.mubr.bf16.mxu1 %v8059_v9  ;;  %2524 = vmatprep.mubr.bf16.mxu0 %v8059_v9 }
 0x189   :  { %7960 = vpow2.f32 %v751_v49  ;;  %v7778_v49 = vld [vmem:[%s9808_s3 + $0x57c] ss:$28 sps:$4 sm:$0xff]  }
 0x18a   :  { %2203 = vmatpush1.bf16.msra.mxu1 %v7642_v51  ;;  %2507 = vmatpush1.bf16.msra.mxu0 %v7645_v52  ;;  %v7711_v51 = vld [vmem:[%s9808_s3 + $0x440] ss:$28 sps:$4 sm:$0xff]   ;;  %v8888_v52 = vrot.slane %v8827_v36, 1 }
 0x18b   :  { %2282 = vmatprep.subr.bf16.mxu1 %v7650_v53  ;;  %7356 = vmatprep.subr.bf16.mxu0 %v8058_v3  ;;  %v7714_v53 = vld [vmem:[%s9808_s3 + $0x394] ss:$28 sps:$4 sm:$0xff]  }
 0x18d   :  { %6578 = vmatmul.mubr.msk.bf16.vlgmr.msra.gmra.mxu1 %vm534_vm0, %v8640_v41  ;;  %6613 = vmatmul.mubr.msk.bf16.vlgmr.msra.gmra.mxu0 %vm534_vm0, %v8702_v57 }
 0x18e   :  { %2283 = vmatpush1.bf16.msra.mxu1 %v7648_v55  ;;  %7357 = vmatpush3.bf16.msra.mxu0 %v7651_v56  ;;  %v7715_v55 = vld [vmem:[%s9808_s3 + $0x408] ss:$28 sps:$4 sm:$0xff]  }
 0x18f   :  { %2284 = vmatprep.subr.bf16.mxu1 %v7654_v58  ;;  %7358 = vmatprep.subr.bf16.mxu0 %v8058_v3  ;;  %v7718_v56 = vld [vmem:[%s9808_s3 + $0x42c] ss:$28 sps:$4 sm:$0xff]  }
 0x190   :  { %2302 = vmatprep.mubr.bf16.mxu1 %v8059_v9  ;;  %7360 = vmatprep.mubr.msk.bf16.mxu0 %vm8060_vm1, %v8058_v3  ;;  %v7716_v58 = vld [vmem:[%s9808_s3 + $0x428] ss:$28 sps:$4 sm:$0xff]  }
 0x192   :  { %2285 = vmatpush1.bf16.msra.mxu1 %v7652_v61  ;;  %7359 = vmatpush3.bf16.msra.mxu0 %v7655_v62  ;;  %v7724_v61 = vld [vmem:[%s9808_s3 + $0x3f4] ss:$28 sps:$4 sm:$0xff]   ;;  %v7727_v62 = vld [vmem:[%s9808_s3 + $0x46c] ss:$28 sps:$4 sm:$0xff]  }
 0x193   :  { %2463 = vmatprep.subr.bf16.mxu1 %v7658_v63  ;;  %2767 = vmatprep.subr.bf16.mxu0 %v7661_v1  ;;  %v7722_v63 = vld [vmem:[%s9808_s3 + $0x3f0] ss:$28 sps:$4 sm:$0xff]   ;;  %v7725_v1 = vld [vmem:[%s9808_s3 + $0x468] ss:$28 sps:$4 sm:$0xff]  }
 0x195   :  { %6580 = vmatmul.mubr.msk.bf16.vlgmr.msra.gmra.mxu1 %vm534_vm0, %v8640_v41  ;;  %7361 = vmatmul.mubr.msk.bf16.vlgmr.msra.gmra.mxu0 %vm534_vm0, %v8702_v57  ;;  %v7696_v41 = vld [vmem:[%s9808_s3 + $0x3b8] ss:$28 sps:$4 sm:$0xff]  }
 0x196   :  { %2464 = vmatpush1.bf16.msra.mxu1 %v7656_v2  ;;  %2768 = vmatpush1.bf16.msra.mxu0 %v7659_v4  ;;  %v7730_v2 = vld [vmem:[%s9808_s3 + $0x43c] ss:$28 sps:$4 sm:$0xff]   ;;  %v8941_v4 = vpop.eup %7960 }
 0x197   :  { %2465 = vmatprep.subr.bf16.mxu1 %v7664_v5  ;;  %2769 = vmatprep.subr.bf16.mxu0 %v7667_v6  ;;  %v7728_v5 = vld [vmem:[%s9808_s3 + $0x438] ss:$28 sps:$4 sm:$0xff]   ;;  %v7731_v6 = vld [vmem:[%s9808_s3 + $0x4b0] ss:$28 sps:$4 sm:$0xff]   ;;  %v786_v33 = vand.u32 2147483647, %v8941_v4 }
 0x198   :  { %2483 = vmatprep.mubr.bf16.mxu1 %v8059_v9  ;;  %2787 = vmatprep.mubr.bf16.mxu0 %v8059_v9 }
 0x199   :  { %vm787_vm8 = vcmp.lt.f32.partialorder %v786_v33, 0.0004427343 }
 0x19a   :  { %2466 = vmatpush1.bf16.msra.mxu1 %v7662_v7  ;;  %2770 = vmatpush1.bf16.msra.mxu0 %v7665_v8  ;;  %v8950_v7 = vrot.slane %v8827_v36, 2  ;;  %v7734_v8 = vld [vmem:[%s9808_s3 + $0x404] ss:$28 sps:$4 sm:$0xff]  }
 0x19b   :  { %2545 = vmatprep.subr.bf16.mxu1 %v7670_v10  ;;  %7364 = vmatprep.subr.bf16.mxu0 %v8058_v3  ;;  %v780_v10 = vadd.f32 1.0, %v8941_v4 }
 0x19d   :  { %6612 = vmatmul.mubr.msk.bf16.vlgmr.msra.gmra.mxu1 %vm534_vm0, %v8702_v57  ;;  %6647 = vmatmul.mubr.msk.bf16.vlgmr.msra.gmra.mxu0 %vm534_vm0, %v8764_v14  ;;  %7962 = vlog2.f32 %v780_v10 }
 0x19e   :  { %2546 = vmatpush1.bf16.msra.mxu1 %v7668_v11  ;;  %7365 = vmatpush3.bf16.msra.mxu0 %v7671_v12  ;;  %v7732_v11 = vld [vmem:[%s9808_s3 + $0x400] ss:$28 sps:$4 sm:$0xff]   ;;  %v7735_v12 = vld [vmem:[%s9808_s3 + $0x478] ss:$28 sps:$4 sm:$0xff]  }
 0x19f   :  { %2547 = vmatprep.subr.bf16.mxu1 %v7674_v15  ;;  %7366 = vmatprep.subr.bf16.mxu0 %v8058_v3  ;;  %v7736_v15 = vld [vmem:[%s9808_s3 + $0x498] ss:$28 sps:$4 sm:$0xff]  }
 0x1a0   :  { %2565 = vmatprep.mubr.bf16.mxu1 %v8059_v9  ;;  %7368 = vmatprep.mubr.msk.bf16.mxu0 %vm8060_vm1, %v8058_v3 }
 0x1a2   :  { %2548 = vmatpush1.bf16.msra.mxu1 %v7672_v18  ;;  %7367 = vmatpush3.bf16.msra.mxu0 %v7675_v19  ;;  %v7744_v18 = vld [vmem:[%s9808_s3 + $0x464] ss:$28 sps:$4 sm:$0xff]   ;;  %v7747_v19 = vld [vmem:[%s9808_s3 + $0x4dc] ss:$28 sps:$4 sm:$0xff]  }
 0x1a3   :  { %2726 = vmatprep.subr.bf16.mxu1 %v7678_v21  ;;  %3030 = vmatprep.subr.bf16.mxu0 %v7681_v22  ;;  %v7745_v21 = vld [vmem:[%s9808_s3 + $0x4d8] ss:$28 sps:$4 sm:$0xff]   ;;  %v7750_v22 = vld [vmem:[%s9808_s3 + $0x4ac] ss:$28 sps:$4 sm:$0xff]  }
 0x1a5   :  { %6614 = vmatmul.mubr.msk.bf16.vlgmr.msra.gmra.mxu1 %vm534_vm0, %v8702_v57  ;;  %7369 = vmatmul.mubr.msk.bf16.vlgmr.msra.gmra.mxu0 %vm534_vm0, %v8764_v14  ;;  %v7721_v57 = vld [vmem:[%s9808_s3 + $0x4a4] ss:$28 sps:$4 sm:$0xff]  }
 0x1a6   :  { %2727 = vmatpush1.bf16.msra.mxu1 %v7676_v25  ;;  %3031 = vmatpush1.bf16.msra.mxu0 %v7679_v17  ;;  %v783_v25 = vmul.f32 -0.5, %v8941_v4  ;;  %v9012_v17 = vrot.slane %v8827_v36, 3 }
 0x1a7   :  { %2728 = vmatprep.subr.bf16.mxu1 %v7684_v27  ;;  %3032 = vmatprep.subr.bf16.mxu0 %v7687_v28  ;;  %v7752_v28 = vld [vmem:[%s9808_s3 + $0x470] ss:$28 sps:$4 sm:$0xff]  }
 0x1a8   :  { %2746 = vmatprep.mubr.bf16.mxu1 %v8059_v9  ;;  %3050 = vmatprep.mubr.bf16.mxu0 %v8059_v9 }
 0x1aa   :  { %2729 = vmatpush1.bf16.msra.mxu1 %v7682_v30  ;;  %3033 = vmatpush1.bf16.msra.mxu0 %v7685_v31  ;;  %v7963_v27 = vpop.eup %7962  ;;  %v784_v30 = vadd.f32 1.0, %v783_v25  ;;  %v7758_v31 = vld [vmem:[%s9808_s3 + $0x50c] ss:$28 sps:$4 sm:$0xff]  }
 0x1ab   :  { %2808 = vmatprep.subr.bf16.mxu1 %v7690_v32  ;;  %7372 = vmatprep.subr.bf16.mxu0 %v8058_v3  ;;  %v7761_v32 = vld [vmem:[%s9808_s3 + $0x584] ss:$28 sps:$4 sm:$0xff]  }
 0x1ad   :  { %6646 = vmatmul.mubr.msk.bf16.vlgmr.msra.gmra.mxu1 %vm534_vm0, %v8764_v14  ;;  %6681 = vmatmul.mubr.msk.bf16.vlgmr.msra.gmra.mxu0 %vm534_vm0, %v8827_v36 }
 0x1ae   :  { %2809 = vmatpush1.bf16.msra.mxu1 %v7688_v34  ;;  %7373 = vmatpush3.bf16.msra.mxu0 %v7691_v35  ;;  %v782_v34 = vmul.f32 0.6931472, %v7963_v27  ;;  %v7756_v35 = vld [vmem:[%s9808_s3 + $0x508] ss:$28 sps:$4 sm:$0xff]  }
 0x1af   :  { %2810 = vmatprep.subr.bf16.mxu1 %v7694_v60  ;;  %7374 = vmatprep.subr.bf16.mxu0 %v8058_v3  ;;  %v785_v60 = vmul.f32 %v8941_v4, %v784_v30  ;;  %v7791_v4 = vld [vmem:[%s9808_s3 + $0x600] ss:$28 sps:$4 sm:$0xff]   ;;  %v7807_v27 = vld [vmem:[%s9808_s3 + $0x62c] ss:$28 sps:$4 sm:$0xff]  }
 0x1b0   :  { %2828 = vmatprep.mubr.bf16.mxu1 %v8059_v9  ;;  %7376 = vmatprep.mubr.msk.bf16.mxu0 %vm8060_vm1, %v8058_v3 }
 0x1b2   :  { %2811 = vmatpush1.bf16.msra.mxu1 %v7692_v37  ;;  %7375 = vmatpush3.bf16.msra.mxu0 %v7695_v38  ;;  %v7764_v37 = vld [vmem:[%s9808_s3 + $0x4d4] ss:$28 sps:$4 sm:$0xff]   ;;  %v7767_v38 = vld [vmem:[%s9808_s3 + $0x54c] ss:$28 sps:$4 sm:$0xff]  }
 0x1b3   :  { %2989 = vmatprep.subr.bf16.mxu1 %v7698_v39  ;;  %3294 = vmatprep.subr.bf16.mxu0 %v7701_v40  ;;  %v788_v39 = vsel %vm787_vm8, %v785_v60, %v782_v34  ;;  %v7762_v40 = vld [vmem:[%s9808_s3 + $0x4d0] ss:$28 sps:$4 sm:$0xff]  }
 0x1b5   :  { %6648 = vmatmul.mubr.msk.bf16.vlgmr.msra.gmra.mxu1 %vm534_vm0, %v8764_v14  ;;  %7377 = vmatmul.mubr.msk.bf16.vlgmr.msra.gmra.mxu0 %vm534_vm0, %v8827_v36  ;;  %v7741_v14 = vld [vmem:[%s9808_s3 + $0x514] ss:$28 sps:$4 sm:$0xff]  }
 0x1b6   :  { %2990 = vmatpush1.bf16.msra.mxu1 %v7696_v41  ;;  %3295 = vmatpush1.bf16.msra.mxu0 %v7699_v42  ;;  %v7765_v41 = vld [vmem:[%s9808_s3 + $0x548] ss:$28 sps:$4 sm:$0xff]   ;;  %v7770_v42 = vld [vmem:[%s9808_s3 + $0x51c] ss:$28 sps:$4 sm:$0xff]  }
 0x1b7   :  { %2991 = vmatprep.subr.bf16.mxu1 %v7704_v43  ;;  %3296 = vmatprep.subr.bf16.mxu0 %v7707_v44  ;;  %v792_v43 = vsel %vm740_vm9, %v8357_v0, %v788_v39  ;;  %v7768_v44 = vld [vmem:[%s9808_s3 + $0x518] ss:$28 sps:$4 sm:$0xff]   ;;  %v7774_v0 = vld [vmem:[%s9808_s3 + $0x4e4] ss:$28 sps:$4 sm:$0xff]  }
 0x1b8   :  { %3009 = vmatprep.mubr.bf16.mxu1 %v8059_v9  ;;  %3314 = vmatprep.mubr.bf16.mxu0 %v8059_v9 }
 0x1ba   :  { %2992 = vmatpush1.bf16.msra.mxu1 %v7702_v46  ;;  %3297 = vmatpush1.bf16.msra.mxu0 %v7705_v47  ;;  %v9075_v46 = vpack.c.bf16 %v792_v43, %v792_v43  ;;  %v7772_v47 = vld [vmem:[%s9808_s3 + $0x4e0] ss:$28 sps:$4 sm:$0xff]  }
 0x1bb   :  { %3071 = vmatprep.subr.bf16.mxu1 %v7710_v48  ;;  %7380 = vmatprep.subr.bf16.mxu0 %v8058_v3  ;;  %v7775_v48 = vld [vmem:[%s9808_s3 + $0x558] ss:$28 sps:$4 sm:$0xff]  }
 0x1bd   :  { %6680 = vmatmul.mubr.msk.bf16.vlgmr.msra.gmra.mxu1 %vm534_vm0, %v8827_v36  ;;  %6715 = vmatmul.mubr.msk.bf16.vlgmr.msra.gmra.mxu0 %vm534_vm0, %v8888_v52 }
 0x1be   :  { %3072 = vmatpush1.bf16.msra.mxu1 %v7708_v50  ;;  %7381 = vmatpush3.bf16.msra.mxu0 %v7711_v51  ;;  %v7781_v50 = vld [vmem:[%s9808_s3 + $0x5f4] ss:$28 sps:$4 sm:$0xff]  }
 0x1bf   :  { %3073 = vmatprep.subr.bf16.mxu1 %v7714_v53  ;;  %7382 = vmatprep.subr.bf16.mxu0 %v8058_v3  ;;  %v7776_v51 = vld [vmem:[%s9808_s3 + $0x578] ss:$28 sps:$4 sm:$0xff]   ;;  %v7784_v53 = vld [vmem:[%s9808_s3 + $0x544] ss:$28 sps:$4 sm:$0xff]  }
 0x1c0   :  { %3091 = vmatprep.mubr.bf16.mxu1 %v8059_v9  ;;  %7384 = vmatprep.mubr.msk.bf16.mxu0 %vm8060_vm1, %v8058_v3 }
 0x1c2   :  { %3074 = vmatpush1.bf16.msra.mxu1 %v7712_v54  ;;  %7383 = vmatpush3.bf16.msra.mxu0 %v7715_v55  ;;  %v7787_v54 = vld [vmem:[%s9808_s3 + $0x5bc] ss:$28 sps:$4 sm:$0xff]  }
 0x1c3   :  { %3253 = vmatprep.subr.bf16.mxu1 %v7718_v56  ;;  %3557 = vmatprep.subr.bf16.mxu0 %v7721_v57  ;;  %v7782_v57 = vld [vmem:[%s9808_s3 + $0x540] ss:$28 sps:$4 sm:$0xff]  }
 0x1c5   :  { %6682 = vmatmul.mubr.msk.bf16.vlgmr.msra.gmra.mxu1 %vm534_vm0, %v8827_v36  ;;  %7385 = vmatmul.mubr.msk.bf16.vlgmr.msra.gmra.mxu0 %vm534_vm0, %v8888_v52  ;;  %v7759_v36 = vld [vmem:[%s9808_s3 + $0x580] ss:$28 sps:$4 sm:$0xff]  }
 0x1c6   :  { %3254 = vmatpush1.bf16.msra.mxu1 %v7716_v58  ;;  %3558 = vmatpush1.bf16.msra.mxu0 %v7719_v59  ;;  %v7785_v58 = vld [vmem:[%s9808_s3 + $0x5b8] ss:$28 sps:$4 sm:$0xff]  }
 0x1c7   :  { %3255 = vmatprep.subr.bf16.mxu1 %v7724_v61  ;;  %3559 = vmatprep.subr.bf16.mxu0 %v7727_v62  ;;  %v7790_v62 = vld [vmem:[%s9808_s3 + $0x58c] ss:$28 sps:$4 sm:$0xff]  }
 0x1c8   :  { %3273 = vmatprep.mubr.bf16.mxu1 %v8059_v9  ;;  %3577 = vmatprep.mubr.bf16.mxu0 %v8059_v9 }
 0x1ca   :  { %3256 = vmatpush1.bf16.msra.mxu1 %v7722_v63  ;;  %3560 = vmatpush1.bf16.msra.mxu0 %v7725_v1 }
 0x1cb   :  { %3335 = vmatprep.subr.bf16.mxu1 %v7730_v2  ;;  %7388 = vmatprep.subr.bf16.mxu0 %v8058_v3  ;;  %v7788_v2 = vld [vmem:[%s9808_s3 + $0x588] ss:$28 sps:$4 sm:$0xff]  }
 0x1cd   :  { %6714 = vmatmul.mubr.msk.bf16.vlgmr.msra.gmra.mxu1 %vm534_vm0, %v8888_v52  ;;  %6749 = vmatmul.mubr.msk.bf16.vlgmr.msra.gmra.mxu0 %vm534_vm0, %v8950_v7 }
 0x1ce   :  { %3336 = vmatpush1.bf16.msra.mxu1 %v7728_v5  ;;  %7389 = vmatpush3.bf16.msra.mxu0 %v7731_v6 }
 0x1cf   :  { %3337 = vmatprep.subr.bf16.mxu1 %v7734_v8  ;;  %7390 = vmatprep.subr.bf16.mxu0 %v8058_v3  ;;  %v7794_v8 = vld [vmem:[%s9808_s3 + $0x554] ss:$28 sps:$4 sm:$0xff]  }
 0x1d0   :  { %3355 = vmatprep.mubr.bf16.mxu1 %v8059_v9  ;;  %7392 = vmatprep.mubr.msk.bf16.mxu0 %vm8060_vm1, %v8058_v3 }
 0x1d2   :  { %3338 = vmatpush1.bf16.msra.mxu1 %v7732_v11  ;;  %7391 = vmatpush3.bf16.msra.mxu0 %v7735_v12 }
 0x1d3   :  { %3516 = vmatprep.subr.bf16.mxu1 %v7738_v13  ;;  %3820 = vmatprep.subr.bf16.mxu0 %v7741_v14  ;;  %v7792_v13 = vld [vmem:[%s9808_s3 + $0x550] ss:$28 sps:$4 sm:$0xff]   ;;  %v7795_v14 = vld [vmem:[%s9808_s3 + $0x5c8] ss:$28 sps:$4 sm:$0xff]  }
 0x1d5   :  { %6716 = vmatmul.mubr.msk.bf16.vlgmr.msra.gmra.mxu1 %vm534_vm0, %v8888_v52  ;;  %7393 = vmatmul.mubr.msk.bf16.vlgmr.msra.gmra.mxu0 %vm534_vm0, %v8950_v7  ;;  %v7779_v52 = vld [vmem:[%s9808_s3 + $0x5f0] ss:$28 sps:$4 sm:$0xff]  }
 0x1d6   :  { %3517 = vmatpush1.bf16.msra.mxu1 %v7736_v15  ;;  %3821 = vmatpush1.bf16.msra.mxu0 %v7739_v16 }
 0x1d7   :  { %3518 = vmatprep.subr.bf16.mxu1 %v7744_v18  ;;  %3822 = vmatprep.subr.bf16.mxu0 %v7747_v19  ;;  %v7798_v18 = vld [vmem:[%s9808_s3 + $0x5ec] ss:$28 sps:$4 sm:$0xff]   ;;  %v7801_v19 = vld [vmem:[%s9808_s3 + $0x664] ss:$28 sps:$4 sm:$0xff]  }
 0x1d8   :  { %3536 = vmatprep.mubr.bf16.mxu1 %v8059_v9  ;;  %3840 = vmatprep.mubr.bf16.mxu0 %v8059_v9 }
 0x1da   :  { %3519 = vmatpush1.bf16.msra.mxu1 %v7742_v20  ;;  %3823 = vmatpush1.bf16.msra.mxu0 %v7745_v21 }
 0x1db   :  { %3598 = vmatprep.subr.bf16.mxu1 %v7750_v22  ;;  %7396 = vmatprep.subr.bf16.mxu0 %v8058_v3 }
 0x1dd   :  { %6748 = vmatmul.mubr.msk.bf16.vlgmr.msra.gmra.mxu1 %vm534_vm0, %v8950_v7  ;;  %6783 = vmatmul.mubr.msk.bf16.vlgmr.msra.gmra.mxu0 %vm534_vm0, %v9012_v17 }
 0x1de   :  { %3599 = vmatpush1.bf16.msra.mxu1 %v7748_v23  ;;  %7397 = vmatpush3.bf16.msra.mxu0 %v7751_v24  ;;  %v7796_v23 = vld [vmem:[%s9808_s3 + $0x5e8] ss:$28 sps:$4 sm:$0xff]   ;;  %v7799_v24 = vld [vmem:[%s9808_s3 + $0x660] ss:$28 sps:$4 sm:$0xff]  }
 0x1df   :  { %3600 = vmatprep.subr.bf16.mxu1 %v7754_v26  ;;  %7398 = vmatprep.subr.bf16.mxu0 %v8058_v3  ;;  %v7804_v26 = vld [vmem:[%s9808_s3 + $0x5b4] ss:$28 sps:$4 sm:$0xff]  }
 0x1e0   :  { %3618 = vmatprep.mubr.bf16.mxu1 %v8059_v9  ;;  %7400 = vmatprep.mubr.msk.bf16.mxu0 %vm8060_vm1, %v8058_v3 }
 0x1e2   :  { %3601 = vmatpush1.bf16.msra.mxu1 %v7752_v28  ;;  %7399 = vmatpush3.bf16.msra.mxu0 %v7755_v29 }
 0x1e3   :  { %3779 = vmatprep.subr.bf16.mxu1 %v7758_v31  ;;  %4083 = vmatprep.subr.bf16.mxu0 %v7761_v32  ;;  %v7802_v31 = vld [vmem:[%s9808_s3 + $0x5b0] ss:$28 sps:$4 sm:$0xff]   ;;  %v7805_v32 = vld [vmem:[%s9808_s3 + $0x628] ss:$28 sps:$4 sm:$0xff]  }
 0x1e5   :  { %6750 = vmatmul.mubr.msk.bf16.vlgmr.msra.gmra.mxu1 %vm534_vm0, %v8950_v7  ;;  %7401 = vmatmul.mubr.msk.bf16.vlgmr.msra.gmra.mxu0 %vm534_vm0, %v9012_v17  ;;  %v9139_v7 = vrot.slane %v9075_v46, 1 }
 0x1e6   :  { %3780 = vmatpush1.bf16.msra.mxu1 %v7756_v35  ;;  %4084 = vmatpush1.bf16.msra.mxu0 %v7759_v36  ;;  %v7810_v35 = vld [vmem:[%s9808_s3 + $0x5fc] ss:$28 sps:$4 sm:$0xff]  }
 0x1e7   :  { %3781 = vmatprep.subr.bf16.mxu1 %v7764_v37  ;;  %4085 = vmatprep.subr.bf16.mxu0 %v7767_v38  ;;  %v7808_v37 = vld [vmem:[%s9808_s3 + $0x5f8] ss:$28 sps:$4 sm:$0xff]   ;;  %v7811_v38 = vld [vmem:[%s9808_s3 + $0x670] ss:$28 sps:$4 sm:$0xff]  }
 0x1e8   :  { %3799 = vmatprep.mubr.bf16.mxu1 %v8059_v9  ;;  %4103 = vmatprep.mubr.bf16.mxu0 %v8059_v9 }
 0x1ea   :  { %3782 = vmatpush1.bf16.msra.mxu1 %v7762_v40  ;;  %4086 = vmatpush1.bf16.msra.mxu0 %v7765_v41  ;;  %v9203_v41 = vrot.slane %v9075_v46, 2 }
 0x1eb   :  { %3861 = vmatprep.subr.bf16.mxu1 %v7770_v42  ;;  %7404 = vmatprep.subr.bf16.mxu0 %v8058_v3  ;;  %v7814_v42 = vld [vmem:[%s9808_s3 + $0x5c4] ss:$28 sps:$4 sm:$0xff]  }
 0x1ed   :  { %6782 = vmatmul.mubr.msk.bf16.vlgmr.msra.gmra.mxu1 %vm534_vm0, %v9012_v17  ;;  %6817 = vmatmul.mubr.msk.bf16.vlgmr.msra.gmra.mxu0 %vm534_vm0, %v9075_v46 }
 0x1ee   :  { %3862 = vmatpush1.bf16.msra.mxu1 %v7768_v44  ;;  %7405 = vmatpush3.bf16.msra.mxu0 %v7771_v45 }
 0x1ef   :  { %3863 = vmatprep.subr.bf16.mxu1 %v7774_v0  ;;  %7406 = vmatprep.subr.bf16.mxu0 %v8058_v3 }
 0x1f0   :  { %3881 = vmatprep.mubr.bf16.mxu1 %v8059_v9  ;;  %7408 = vmatprep.mubr.msk.bf16.mxu0 %vm8060_vm1, %v8058_v3 }
 0x1f2   :  { %3864 = vmatpush1.bf16.msra.mxu1 %v7772_v47  ;;  %7407 = vmatpush3.bf16.msra.mxu0 %v7775_v48  ;;  %v7812_v47 = vld [vmem:[%s9808_s3 + $0x5c0] ss:$28 sps:$4 sm:$0xff]   ;;  %v7815_v48 = vld [vmem:[%s9808_s3 + $0x638] ss:$28 sps:$4 sm:$0xff]  }
 0x1f3   :  { %4042 = vmatprep.subr.bf16.mxu1 %v7778_v49  ;;  %4347 = vmatprep.subr.bf16.mxu0 %v7781_v50 }
 0x1f5   :  { %v9113_v55 = vpop.f32.mrf.mxu1  ;;  %v1061_v56 = vpop.f32.mrf.mxu0  ;;  %6784 = vmatmul.mubr.msk.bf16.vlgmr.msra.gmra.mxu1 %vm534_vm0, %v9012_v17  ;;  %7409 = vmatmul.mubr.msk.bf16.vlgmr.msra.gmra.mxu0 %vm534_vm0, %v9075_v46 }
 0x1f6   :  { %4043 = vmatpush1.bf16.msra.mxu1 %v7776_v51  ;;  %4348 = vmatpush1.bf16.msra.mxu0 %v7779_v52  ;;  %v7818_v51 = vld [vmem:[%s9808_s3 + $0x65c] ss:$28 sps:$4 sm:$0xff]   ;;  %v7821_v52 = vld [vmem:[%s9808_s3 + $0x6d4] ss:$28 sps:$4 sm:$0xff]  }
 0x1f7   :  { %v9125_v59 = vpop.f32.mrf.mxu1  ;;  %v7314_v61 = vpop.f32.mrf.mxu0  ;;  %4044 = vmatprep.subr.bf16.mxu1 %v7784_v53  ;;  %4349 = vmatprep.subr.bf16.mxu0 %v7787_v54 }
 0x1f8   :  { %4062 = vmatprep.mubr.bf16.mxu1 %v8059_v9  ;;  %4367 = vmatprep.mubr.bf16.mxu0 %v8059_v9 }
 0x1f9   :  { %v942_v63 = vpop.f32.mrf.mxu1  ;;  %v1064_v1 = vpop.f32.mrf.mxu0 }
 0x1fa   :  { %4045 = vmatpush1.bf16.msra.mxu1 %v7782_v57  ;;  %4350 = vmatpush1.bf16.msra.mxu0 %v7785_v58  ;;  %v7816_v57 = vld [vmem:[%s9808_s3 + $0x658] ss:$28 sps:$4 sm:$0xff]   ;;  %v7819_v58 = vld [vmem:[%s9808_s3 + $0x6d0] ss:$28 sps:$4 sm:$0xff]  }
 0x1fb   :  { %v943_v5 = vpop.f32.mrf.mxu1  ;;  %v7315_v6 = vpop.f32.mrf.mxu0  ;;  %4124 = vmatprep.subr.bf16.mxu1 %v7790_v62  ;;  %7412 = vmatprep.subr.bf16.mxu0 %v8058_v3  ;;  %v7824_v62 = vld [vmem:[%s9808_s3 + $0x624] ss:$28 sps:$4 sm:$0xff]   ;;  %v7827_v63 = vld [vmem:[%s9808_s3 + $0x69c] ss:$28 sps:$4 sm:$0xff]  }
 0x1fc   :  { %v7822_v6 = vld [vmem:[%s9808_s3 + $0x620] ss:$28 sps:$4 sm:$0xff]  }
 0x1fd   :  { %v979_v10 = vpop.f32.mrf.mxu1  ;;  %v1217_v11 = vpop.f32.mrf.mxu0  ;;  %6816 = vmatmul.mubr.msk.bf16.vlgmr.msra.gmra.mxu1 %vm534_vm0, %v9075_v46  ;;  %6851 = vmatmul.mubr.msk.bf16.vlgmr.msra.gmra.mxu0 %vm534_vm0, %v9139_v7 }
 0x1fe   :  { %v1218_v12 = vadd.f32 %v1217_v11, %v979_v10  ;;  %4125 = vmatpush1.bf16.msra.mxu1 %v7788_v2  ;;  %7413 = vmatpush3.bf16.msra.mxu0 %v7791_v4 }
 0x1ff   :  { %v981_v15 = vpop.f32.mrf.mxu1  ;;  %v1219_v16 = vpop.f32.mrf.mxu0  ;;  %4126 = vmatprep.subr.bf16.mxu1 %v7794_v8  ;;  %7414 = vmatprep.subr.bf16.mxu0 %v8058_v3  ;;  %v7825_v8 = vld [vmem:[%s9808_s3 + $0x698] ss:$28 sps:$4 sm:$0xff]  }
 0x200   :  { %v1220_v20 = vadd.f32 %v1219_v16, %v981_v15  ;;  %4144 = vmatprep.mubr.bf16.mxu1 %v8059_v9  ;;  %7416 = vmatprep.mubr.msk.bf16.mxu0 %vm8060_vm1, %v8058_v3  ;;  %v7828_v15 = vld [vmem:[%s9808_s3 + $0x668] ss:$28 sps:$4 sm:$0xff]   ;;  %v7831_v16 = vld [vmem:[%s9808_s3 + $0x6e0] ss:$28 sps:$4 sm:$0xff]  }
 0x201   :  { %v983_v21 = vpop.f32.mrf.mxu1  ;;  %v1221_v22 = vpop.f32.mrf.mxu0 }
 0x202   :  { %4127 = vmatpush1.bf16.msra.mxu1 %v7792_v13  ;;  %7415 = vmatpush3.bf16.msra.mxu0 %v7795_v14  ;;  %v7834_v21 = vld [vmem:[%s9808_s3 + $0x634] ss:$28 sps:$4 sm:$0xff]  }
 0x203   :  { %v984_v25 = vpop.f32.mrf.mxu1  ;;  %v1222_v17 = vpop.f32.mrf.mxu0  ;;  %4306 = vmatprep.subr.bf16.mxu1 %v7798_v18  ;;  %4610 = vmatprep.subr.bf16.mxu0 %v7801_v19 }
 0x204   :  { %v7835_v17 = vld [vmem:[%s9808_s3 + $0x6a8] ss:$28 sps:$4 sm:$0xff]  }
 0x205   :  { %v9177_v28 = vpop.f32.mrf.mxu1  ;;  %v1299_v29 = vpop.f32.mrf.mxu0  ;;  %6818 = vmatmul.mubr.msk.bf16.vlgmr.msra.gmra.mxu1 %vm534_vm0, %v9075_v46  ;;  %7417 = vmatmul.mubr.msk.bf16.vlgmr.msra.gmra.mxu0 %vm534_vm0, %v9139_v7 }
 0x206   :  { %v1300_v30 = vadd.f32 %v1299_v29, %v1061_v56  ;;  %4307 = vmatpush1.bf16.msra.mxu1 %v7796_v23  ;;  %4611 = vmatpush1.bf16.msra.mxu0 %v7799_v24 }
 0x207   :  { %v9189_v33 = vpop.f32.mrf.mxu1  ;;  %v7322_v34 = vpop.f32.mrf.mxu0  ;;  %4308 = vmatprep.subr.bf16.mxu1 %v7804_v26  ;;  %4612 = vmatprep.subr.bf16.mxu0 %v7807_v27 }
 0x208   :  { %4326 = vmatprep.mubr.bf16.mxu1 %v8059_v9  ;;  %4630 = vmatprep.mubr.bf16.mxu0 %v8059_v9 }
 0x209   :  { %v1024_v36 = vpop.f32.mrf.mxu1  ;;  %v1302_v60 = vpop.f32.mrf.mxu0 }
 0x20a   :  { %4309 = vmatpush1.bf16.msra.mxu1 %v7802_v31  ;;  %4613 = vmatpush1.bf16.msra.mxu0 %v7805_v32  ;;  %v7841_v36 = vld [vmem:[%s9808_s3 + $0x694] ss:$28 sps:$4 sm:$0xff]  }
 0x20b   :  { %v1025_v39 = vpop.f32.mrf.mxu1  ;;  %v7323_v40 = vpop.f32.mrf.mxu0  ;;  %4388 = vmatprep.subr.bf16.mxu1 %v7810_v35  ;;  %7420 = vmatprep.subr.bf16.mxu0 %v8058_v3 }
 0x20c   :  { %v7839_v40 = vld [vmem:[%s9808_s3 + $0x690] ss:$28 sps:$4 sm:$0xff]  }
 0x20d   :  { %v1176_v43 = vpop.f32.mrf.mxu1  ;;  %v1473_v44 = vpop.f32.mrf.mxu0  ;;  %6850 = vmatmul.mubr.msk.bf16.vlgmr.msra.gmra.mxu1 %vm534_vm0, %v9139_v7  ;;  %6885 = vmatmul.mubr.msk.bf16.vlgmr.msra.gmra.mxu0 %vm534_vm0, %v9203_v41 }
 0x20e   :  { %v1177_v45 = vadd.f32 %v1176_v43, %v9113_v55  ;;  %v1563_v0 = vadd.f32 %v1473_v44, %v1218_v12  ;;  %4389 = vmatpush1.bf16.msra.mxu1 %v7808_v37  ;;  %7421 = vmatpush3.bf16.msra.mxu0 %v7811_v38  ;;  %v7844_v44 = vld [vmem:[%s9808_s3 + $0x6dc] ss:$28 sps:$4 sm:$0xff]  }
 0x20f   :  { %v1178_v49 = vpop.f32.mrf.mxu1  ;;  %v1475_v50 = vpop.f32.mrf.mxu0  ;;  %4390 = vmatprep.subr.bf16.mxu1 %v7814_v42  ;;  %7422 = vmatprep.subr.bf16.mxu0 %v8058_v3 }
 0x210   :  { %v1179_v53 = vadd.f32 %v1178_v49, %v9125_v59  ;;  %v1564_v54 = vadd.f32 %v1475_v50, %v1220_v20  ;;  %4408 = vmatprep.mubr.bf16.mxu1 %v8059_v9  ;;  %7424 = vmatprep.mubr.msk.bf16.mxu0 %vm8060_vm1, %v8058_v3  ;;  %v9267_v20 = vrot.slane %v9075_v46, 3  ;;  %v7832_v46 = vld [vmem:[%s9808_s3 + $0x630] ss:$28 sps:$4 sm:$0xff]   ;;  %v7847_v50 = vld [vmem:[%s9808_s3 + $0x6a4] ss:$28 sps:$4 sm:$0xff]  }
 0x211   :  { %v1180_v55 = vpop.f32.mrf.mxu1  ;;  %v1477_v56 = vpop.f32.mrf.mxu0 }
 0x212   :  { %4391 = vmatpush1.bf16.msra.mxu1 %v7812_v47  ;;  %7423 = vmatpush3.bf16.msra.mxu0 %v7815_v48  ;;  %v7842_v47 = vld [vmem:[%s9808_s3 + $0x6d8] ss:$28 sps:$4 sm:$0xff]   ;;  %v7845_v55 = vld [vmem:[%s9808_s3 + $0x6a0] ss:$28 sps:$4 sm:$0xff]  }
 0x213   :  { %v1181_v61 = vpop.f32.mrf.mxu1  ;;  %v1478_v59 = vpop.f32.mrf.mxu0  ;;  %4569 = vmatprep.subr.bf16.mxu1 %v7818_v51  ;;  %4873 = vmatprep.subr.bf16.mxu0 %v7821_v52 }
 0x215   :  { %v1258_v1 = vpop.f32.mrf.mxu1  ;;  %v1555_v2 = vpop.f32.mrf.mxu0  ;;  %6852 = vmatmul.mubr.msk.bf16.vlgmr.msra.gmra.mxu1 %vm534_vm0, %v9139_v7  ;;  %7425 = vmatmul.mubr.msk.bf16.vlgmr.msra.gmra.mxu0 %vm534_vm0, %v9203_v41  ;;  %v7830_v7 = vld [vmem:[%s9808_s3 + $0x66c] ss:$28 sps:$4 sm:$0xff]  }
 0x216   :  { %v1259_v4 = vadd.f32 %v1258_v1, %v9177_v28  ;;  %v1567_v5 = vadd.f32 %v1555_v2, %v1300_v30  ;;  %4570 = vmatpush1.bf16.msra.mxu1 %v7816_v57  ;;  %4874 = vmatpush1.bf16.msra.mxu0 %v7819_v58  ;;  %v7838_v28 = vld [vmem:[%s9808_s3 + $0x6cc] ss:$28 sps:$4 sm:$0xff]  }
 0x217   :  { %v1260_v10 = vpop.f32.mrf.mxu1  ;;  %v7330_v11 = vpop.f32.mrf.mxu0  ;;  %4571 = vmatprep.subr.bf16.mxu1 %v7824_v62  ;;  %4875 = vmatprep.subr.bf16.mxu0 %v7827_v63 }
 0x218   :  { %v1261_v12 = vadd.f32 %v1260_v10, %v9189_v33  ;;  %4589 = vmatprep.mubr.bf16.mxu1 %v8059_v9  ;;  %4893 = vmatprep.mubr.bf16.mxu0 %v8059_v9  ;;  %v7836_v33 = vld [vmem:[%s9808_s3 + $0x6c8] ss:$28 sps:$4 sm:$0xff]  }
 0x219   :  { %v1262_v13 = vpop.f32.mrf.mxu1  ;;  %v1558_v14 = vpop.f32.mrf.mxu0 }
 0x21a   :  { %4572 = vmatpush1.bf16.msra.mxu1 %v7822_v6  ;;  %4876 = vmatpush1.bf16.msra.mxu0 %v7825_v8 }
 0x21b   :  { %v1263_v18 = vpop.f32.mrf.mxu1  ;;  %v7331_v19 = vpop.f32.mrf.mxu0  ;;  %4651 = vmatprep.subr.bf16.mxu1 %v7830_v7  ;;  %7428 = vmatprep.subr.bf16.mxu0 %v8058_v3 }
 0x21d   :  { %v1432_v22 = vpop.f32.mrf.mxu1  ;;  %v1736_v23 = vpop.f32.mrf.mxu0  ;;  %6884 = vmatmul.mubr.msk.bf16.vlgmr.msra.gmra.mxu1 %vm534_vm0, %v9203_v41  ;;  %6919 = vmatmul.mubr.msk.bf16.vlgmr.msra.gmra.mxu0 %vm534_vm0, %v9267_v20 }
 0x21e   :  { %v1561_v24 = vadd.f32 %v1432_v22, %v1177_v45  ;;  %v1826_v25 = vadd.f32 %v1736_v23, %v1563_v0  ;;  %4652 = vmatpush1.bf16.msra.mxu1 %v7828_v15  ;;  %7429 = vmatpush3.bf16.msra.mxu0 %v7831_v16 }
 0x21f   :  { %v1434_v26 = vpop.f32.mrf.mxu1  ;;  %v1738_v27 = vpop.f32.mrf.mxu0  ;;  %4653 = vmatprep.subr.bf16.mxu1 %v7834_v21  ;;  %7430 = vmatprep.subr.bf16.mxu0 %v8058_v3 }
 0x220   :  { %v1562_v29 = vadd.f32 %v1434_v26, %v1179_v53  ;;  %v1827_v30 = vadd.f32 %v1738_v27, %v1564_v54  ;;  %4671 = vmatprep.mubr.bf16.mxu1 %v8059_v9  ;;  %7432 = vmatprep.mubr.msk.bf16.mxu0 %vm8060_vm1, %v8058_v3 }
 0x221   :  { %v1436_v31 = vpop.f32.mrf.mxu1  ;;  %v1740_v32 = vpop.f32.mrf.mxu0 }
 0x222   :  { %4654 = vmatpush1.bf16.msra.mxu1 %v7832_v46  ;;  %7431 = vmatpush3.bf16.msra.mxu0 %v7835_v17 }
 0x223   :  { %v1437_v34 = vpop.f32.mrf.mxu1  ;;  %v1741_v35 = vpop.f32.mrf.mxu0  ;;  %4832 = vmatprep.subr.bf16.mxu1 %v7838_v28 }
 0x225   :  { %v1514_v60 = vpop.f32.mrf.mxu1  ;;  %v1818_v37 = vpop.f32.mrf.mxu0  ;;  %6886 = vmatmul.mubr.msk.bf16.vlgmr.msra.gmra.mxu1 %vm534_vm0, %v9203_v41  ;;  %7433 = vmatmul.mubr.msk.bf16.vlgmr.msra.gmra.mxu0 %vm534_vm0, %v9267_v20 }
 0x226   :  { %v1565_v38 = vadd.f32 %v1514_v60, %v1259_v4  ;;  %v1830_v39 = vadd.f32 %v1818_v37, %v1567_v5  ;;  %4833 = vmatpush1.bf16.msra.mxu1 %v7836_v33  ;;  %4852 = vmatprep.mubr.bf16.mxu1 %v8059_v9 }
 0x227   :  { %v1516_v42 = vpop.f32.mrf.mxu1  ;;  %v7338_v43 = vpop.f32.mrf.mxu0  ;;  %4834 = vmatprep.subr.bf16.mxu1 %v7841_v36 }
 0x228   :  { %v1566_v41 = vadd.f32 %v1516_v42, %v1261_v12 }
 0x229   :  { %v1518_v45 = vpop.f32.mrf.mxu1  ;;  %v1821_v0 = vpop.f32.mrf.mxu0 }
 0x22a   :  { %4835 = vmatpush1.bf16.msra.mxu1 %v7839_v40 }
 0x22b   :  { %v1519_v48 = vpop.f32.mrf.mxu1  ;;  %v7339_v49 = vpop.f32.mrf.mxu0  ;;  %4914 = vmatprep.subr.bf16.mxu1 %v7844_v44 }
 0x22d   :  { %v1695_v51 = vpop.f32.mrf.mxu1  ;;  %v1999_v52 = vpop.f32.mrf.mxu0  ;;  %6918 = vmatmul.mubr.msk.bf16.vlgmr.msra.gmra.mxu1 %vm534_vm0, %v9267_v20 }
 0x22e   :  { %v1824_v53 = vadd.f32 %v1695_v51, %v1561_v24  ;;  %v2089_v54 = vadd.f32 %v1999_v52, %v1826_v25  ;;  %4915 = vmatpush1.bf16.msra.mxu1 %v7842_v47  ;;  %4934 = vmatprep.mubr.bf16.mxu1 %v8059_v9 }
 0x22f   :  { %v1697_v56 = vpop.f32.mrf.mxu1  ;;  %v2001_v57 = vpop.f32.mrf.mxu0  ;;  %4916 = vmatprep.subr.bf16.mxu1 %v7847_v50 }
 0x230   :  { %v1825_v58 = vadd.f32 %v1697_v56, %v1562_v29  ;;  %v2090_v61 = vadd.f32 %v2001_v57, %v1827_v30 }
 0x231   :  { %v1699_v59 = vpop.f32.mrf.mxu1  ;;  %v2003_v62 = vpop.f32.mrf.mxu0 }
 0x232   :  { %4917 = vmatpush1.bf16.msra.mxu1 %v7845_v55 }
 0x233   :  { %v1700_v63 = vpop.f32.mrf.mxu1  ;;  %v2004_v1 = vpop.f32.mrf.mxu0 }
 0x235   :  { %v1777_v2 = vpop.f32.mrf.mxu1  ;;  %v2081_v4 = vpop.f32.mrf.mxu0  ;;  %6920 = vmatmul.mubr.msk.bf16.vlgmr.msra.gmra.mxu1 %vm534_vm0, %v9267_v20 }
 0x236   :  { %v1828_v5 = vadd.f32 %v1777_v2, %v1565_v38  ;;  %v2093_v6 = vadd.f32 %v2081_v4, %v1830_v39 }
 0x237   :  { %v1779_v8 = vpop.f32.mrf.mxu1  ;;  %v7346_v10 = vpop.f32.mrf.mxu0 }
 0x238   :  { %v1829_v9 = vadd.f32 %v1779_v8, %v1566_v41 }
 0x239   :  { %v1781_v11 = vpop.f32.mrf.mxu1  ;;  %v2084_v7 = vpop.f32.mrf.mxu0 }
 0x23b   :  { %v1782_v12 = vpop.f32.mrf.mxu1  ;;  %v7347_v13 = vpop.f32.mrf.mxu0 }
 0x23d   :  { %v1958_v14 = vpop.f32.mrf.mxu1  ;;  %v2263_v15 = vpop.f32.mrf.mxu0 }
 0x23e   :  { %v2087_v16 = vadd.f32 %v1958_v14, %v1824_v53  ;;  %v2353_v18 = vadd.f32 %v2263_v15, %v2089_v54 }
 0x23f   :  { %v1960_v19 = vpop.f32.mrf.mxu1  ;;  %v2265_v21 = vpop.f32.mrf.mxu0 }
 0x240   :  { %v2088_v22 = vadd.f32 %v1960_v19, %v1825_v58  ;;  %v2354_v23 = vadd.f32 %v2265_v21, %v2090_v61  ;;  %v7848_v19 = vld [vmem:[%s9810_s5 + $0xf8] sm:$0xff]  }
 0x241   :  { %v1962_v24 = vpop.f32.mrf.mxu1  ;;  %v2267_v25 = vpop.f32.mrf.mxu0  ;;  %7184 = vmatprep.subr.bf16.mxu0 %v7848_v19  ;;  %v7868_v19 = vld [vmem:[%s9810_s5 + $0x60] sm:$0xff]  }
 0x243   :  { %v1963_v20 = vpop.f32.mrf.mxu1  ;;  %v2268_v46 = vpop.f32.mrf.mxu0 }
 0x245   :  { %v2040_v17 = vpop.f32.mrf.mxu1  ;;  %v2345_v26 = vpop.f32.mrf.mxu0 }
 0x246   :  { %v2091_v27 = vadd.f32 %v2040_v17, %v1828_v5  ;;  %v2357_v28 = vadd.f32 %v2345_v26, %v2093_v6 }
 0x247   :  { %v2042_v29 = vpop.f32.mrf.mxu1  ;;  %v7354_v30 = vpop.f32.mrf.mxu0 }
 0x248   :  { %v2092_v31 = vadd.f32 %v2042_v29, %v1829_v9  ;;  %v7851_v30 = vld [vmem:[%s9810_s5 + $0xb0] sm:$0xff]  }
 0x249   :  { %v2044_v32 = vpop.f32.mrf.mxu1  ;;  %v2348_v33 = vpop.f32.mrf.mxu0 }
 0x24b   :  { %v2045_v34 = vpop.f32.mrf.mxu1  ;;  %v7355_v35 = vpop.f32.mrf.mxu0 }
 0x24c   :  { %v7852_v35 = vld [vmem:[%s9810_s5 + $0xe8] sm:$0xff]  }
 0x24d   :  { %v2222_v36 = vpop.f32.mrf.mxu1  ;;  %v2526_v60 = vpop.f32.mrf.mxu0 }
 0x24e   :  { %v2351_v37 = vadd.f32 %v2222_v36, %v2087_v16  ;;  %v2616_v38 = vadd.f32 %v2526_v60, %v2353_v18  ;;  %v7853_v36 = vld [vmem:[%s9810_s5 + $0xa8] sm:$0xff]  }
 0x24f   :  { %v2224_v39 = vpop.f32.mrf.mxu1  ;;  %v2528_v40 = vpop.f32.mrf.mxu0 }
 0x250   :  { %v2352_v42 = vadd.f32 %v2224_v39, %v2088_v22  ;;  %v2617_v43 = vadd.f32 %v2528_v40, %v2354_v23  ;;  %v7849_v23 = vld [vmem:[%s9810_s5 + $0xb8] sm:$0xff]  }
 0x251   :  { %v2226_v44 = vpop.f32.mrf.mxu1  ;;  %v2530_v41 = vpop.f32.mrf.mxu0  ;;  %7185 = vmatpush3.bf16.msra.mxu0 %v7849_v23  ;;  %v7870_v23 = vld [vmem:[%s9810_s5 + $0x20] sm:$0xff]  }
 0x252   :  { %v7855_v41 = vld [vmem:[%s9810_s5 + $0xa0] sm:$0xff]  }
 0x253   :  { %v2227_v45 = vpop.f32.mrf.mxu1  ;;  %v2531_v0 = vpop.f32.mrf.mxu0 }
 0x255   :  { %v2304_v47 = vpop.f32.mrf.mxu1  ;;  %v2608_v48 = vpop.f32.mrf.mxu0 }
 0x256   :  { %v2355_v49 = vadd.f32 %v2304_v47, %v2091_v27  ;;  %v2620_v50 = vadd.f32 %v2608_v48, %v2357_v28  ;;  %v7850_v27 = vld [vmem:[%s9810_s5 + $0xf0] sm:$0xff]  }
 0x257   :  { %v2306_v51 = vpop.f32.mrf.mxu1  ;;  %v7362_v52 = vpop.f32.mrf.mxu0  ;;  %7186 = vmatprep.subr.bf16.mxu0 %v7850_v27 }
 0x258   :  { %v2356_v53 = vadd.f32 %v2306_v51, %v2092_v31  ;;  %7187 = vmatpush3.bf16.msra.mxu0 %v7851_v30  ;;  %v7858_v51 = vld [vmem:[%s9810_s5 + $0x38] sm:$0xff]  }
 0x259   :  { %v2308_v54 = vpop.f32.mrf.mxu1  ;;  %v2611_v55 = vpop.f32.mrf.mxu0  ;;  %7188 = vmatprep.subr.bf16.mxu0 %v7852_v35  ;;  %v7859_v52 = vld [vmem:[%s9810_s5 + $0x98] sm:$0xff]  }
 0x25b   :  { %v2309_v56 = vpop.f32.mrf.mxu1  ;;  %v7363_v57 = vpop.f32.mrf.mxu0 }
 0x25c   :  { %7189 = vmatpush3.bf16.msra.mxu0 %v7853_v36 }
 0x25d   :  { %v2485_v58 = vpop.f32.mrf.mxu1  ;;  %v2789_v61 = vpop.f32.mrf.mxu0 }
 0x25e   :  { %v2614_v59 = vadd.f32 %v2485_v58, %v2351_v37  ;;  %v2879_v62 = vadd.f32 %v2789_v61, %v2616_v38  ;;  %v7860_v61 = vld [vmem:[%s9810_s5 + $0x70] sm:$0xff]  }
 0x25f   :  { %v2487_v63 = vpop.f32.mrf.mxu1  ;;  %v2791_v1 = vpop.f32.mrf.mxu0 }
 0x260   :  { %v2615_v2 = vadd.f32 %v2487_v63, %v2352_v42  ;;  %v2880_v4 = vadd.f32 %v2791_v1, %v2617_v43  ;;  %v7854_v43 = vld [vmem:[%s9810_s5 + $0xe0] sm:$0xff]   ;;  %v7862_v1 = vld [vmem:[%s9810_s5 + $0x30] sm:$0xff]  }
 0x261   :  { %v2489_v5 = vpop.f32.mrf.mxu1  ;;  %v2793_v6 = vpop.f32.mrf.mxu0  ;;  %7190 = vmatprep.subr.bf16.mxu0 %v7854_v43 }
 0x262   :  { %7191 = vmatpush3.bf16.msra.mxu0 %v7855_v41 }
 0x263   :  { %v2490_v8 = vpop.f32.mrf.mxu1  ;;  %v2794_v10 = vpop.f32.mrf.mxu0 }
 0x264   :  { %v7864_v10 = vld [vmem:[%s9810_s5 + $0x68] sm:$0xff]  }
 0x265   :  { %v2567_v9 = vpop.f32.mrf.mxu1  ;;  %v2871_v11 = vpop.f32.mrf.mxu0 }
 0x266   :  { %v2618_v7 = vadd.f32 %v2567_v9, %v2355_v49  ;;  %v2883_v12 = vadd.f32 %v2871_v11, %v2620_v50  ;;  %v7856_v49 = vld [vmem:[%s9810_s5 + $0x78] sm:$0xff]   ;;  %v7865_v9 = vld [vmem:[%s9810_s5 + $0xc8] sm:$0xff]  }
 0x267   :  { %v2569_v13 = vpop.f32.mrf.mxu1  ;;  %v7370_v14 = vpop.f32.mrf.mxu0  ;;  %v7857_v50 = vld [vmem:[%s9810_s5 + $0xd8] sm:$0xff]   ;;  %7162 = vmatprep.subr.bf16.mxu1 %v7856_v49  ;;  %v7866_v11 = vld [vmem:[%s9810_s5 + $0x28] sm:$0xff]  }
 0x268   :  { %v2619_v15 = vadd.f32 %v2569_v13, %v2356_v53  ;;  %7192 = vmatprep.subr.bf16.mxu0 %v7857_v50  ;;  %7163 = vmatpush3.bf16.msra.mxu1 %v7858_v51 }
 0x269   :  { %v2571_v16 = vpop.f32.mrf.mxu1  ;;  %v2874_v18 = vpop.f32.mrf.mxu0  ;;  %7193 = vmatpush3.bf16.msra.mxu0 %v7859_v52  ;;  %7164 = vmatprep.subr.bf16.mxu1 %v7860_v61  ;;  %v7882_v52 = vld [vmem:[%s9810_s5 + $0x40] sm:$0xff]  }
 0x26b   :  { %v2572_v21 = vpop.f32.mrf.mxu1  ;;  %v7371_v22 = vpop.f32.mrf.mxu0 }
 0x26c   :  { %7165 = vmatpush3.bf16.msra.mxu1 %v7862_v1  ;;  %v7869_v21 = vld [vmem:[%s9810_s5 + $0xc0] sm:$0xff]  }
 0x26d   :  { %v2748_v24 = vpop.f32.mrf.mxu1  ;;  %v3052_v25 = vpop.f32.mrf.mxu0  ;;  %7166 = vmatprep.subr.bf16.mxu1 %v7864_v10 }
 0x26e   :  { %v2877_v20 = vadd.f32 %v2748_v24, %v2614_v59  ;;  %v3142_v46 = vadd.f32 %v3052_v25, %v2879_v62  ;;  %v7861_v59 = vld [vmem:[%s9810_s5 + $0xd0] sm:$0xff]   ;;  %v7871_v24 = vld [vmem:[%s9810_s5 + $0x80] sm:$0xff]  }
 0x26f   :  { %v2750_v17 = vpop.f32.mrf.mxu1  ;;  %v3054_v26 = vpop.f32.mrf.mxu0  ;;  %7194 = vmatprep.subr.bf16.mxu0 %v7861_v59 }
 0x270   :  { %v2878_v28 = vadd.f32 %v2750_v17, %v2615_v2  ;;  %v3143_v29 = vadd.f32 %v3054_v26, %v2880_v4  ;;  %v7863_v2 = vld [vmem:[%s9810_s5 + $0x90] sm:$0xff]   ;;  %7167 = vmatpush3.bf16.msra.mxu1 %v7866_v11  ;;  %v7872_v26 = vld [vmem:[%s9810_s5 + $0x58] sm:$0xff]  }
 0x271   :  { %v2752_v31 = vpop.f32.mrf.mxu1  ;;  %v3056_v32 = vpop.f32.mrf.mxu0  ;;  %7195 = vmatpush3.bf16.msra.mxu0 %v7863_v2  ;;  %7168 = vmatprep.subr.bf16.mxu1 %v7868_v19 }
 0x272   :  { %7196 = vmatprep.subr.bf16.mxu0 %v7865_v9  ;;  %v7873_v31 = vld [vmem:[%s9810_s5 + $0x18] sm:$0xff]  }
 0x273   :  { %v2753_v33 = vpop.f32.mrf.mxu1  ;;  %v3057_v34 = vpop.f32.mrf.mxu0 }
 0x274   :  { %7169 = vmatpush3.bf16.msra.mxu1 %v7870_v23 }
 0x275   :  { %v2830_v60 = vpop.f32.mrf.mxu1  ;;  %v3134_v37 = vpop.f32.mrf.mxu0  ;;  %7170 = vmatprep.subr.bf16.mxu1 %v7872_v26 }
 0x276   :  { %v2881_v38 = vadd.f32 %v2830_v60, %v2618_v7  ;;  %v3146_v39 = vadd.f32 %v3134_v37, %v2883_v12  ;;  %v7867_v7 = vld [vmem:[%s9810_s5 + $0x88] sm:$0xff]   ;;  %v7875_v37 = vld [vmem:[%s9810_s5 + $0x50] sm:$0xff]  }
 0x277   :  { %v2832_v40 = vpop.f32.mrf.mxu1  ;;  %v7378_v42 = vpop.f32.mrf.mxu0  ;;  %7197 = vmatpush3.bf16.msra.mxu0 %v7867_v7 }
 0x278   :  { %v2882_v44 = vadd.f32 %v2832_v40, %v2619_v15  ;;  %7198 = vmatprep.subr.bf16.mxu0 %v7869_v21  ;;  %7171 = vmatpush3.bf16.msra.mxu1 %v7873_v31 }
 0x279   :  { %v2834_v45 = vpop.f32.mrf.mxu1  ;;  %v3137_v0 = vpop.f32.mrf.mxu0  ;;  %7172 = vmatprep.subr.bf16.mxu1 %v7875_v37 }
 0x27a   :  { %v7880_v0 = vld [vmem:[%s9810_s5 + $0x8] sm:$0xff]  }
 0x27b   :  { %v2835_v47 = vpop.f32.mrf.mxu1  ;;  %v7379_v48 = vpop.f32.mrf.mxu0  ;;  %7199 = vmatpush3.bf16.msra.mxu0 %v7871_v24 }
 0x27c   :  { %7436 = vmatprep.subr.bf16.mxu0 %v8058_v3 }
 0x27d   :  { %v3011_v53 = vpop.f32.mrf.mxu1  ;;  %v3316_v54 = vpop.f32.mrf.mxu0 }
 0x27e   :  { %v3140_v55 = vadd.f32 %v3011_v53, %v2877_v20  ;;  %v3406_v56 = vadd.f32 %v3316_v54, %v3142_v46  ;;  %v7884_v53 = vld [vmem:[%s9810_s5] sm:$0xff]  }
 0x27f   :  { %v3013_v57 = vpop.f32.mrf.mxu1  ;;  %v3318_v58 = vpop.f32.mrf.mxu0 }
 0x280   :  { %v3141_v62 = vadd.f32 %v3013_v57, %v2878_v28  ;;  %v3407_v63 = vadd.f32 %v3318_v58, %v3143_v29  ;;  %v7886_v58 = vld [vmem:[%s9810_s5 + $0x178] sm:$0xff]  }
 0x281   :  { %v3015_v4 = vpop.f32.mrf.mxu1  ;;  %v3320_v5 = vpop.f32.mrf.mxu0 }
 0x283   :  { %v3016_v6 = vpop.f32.mrf.mxu1  ;;  %v3321_v8 = vpop.f32.mrf.mxu0 }
 0x285   :  { %v3093_v12 = vpop.f32.mrf.mxu1  ;;  %v3398_v13 = vpop.f32.mrf.mxu0 }
 0x286   :  { %v3144_v14 = vadd.f32 %v3093_v12, %v2881_v38  ;;  %v3410_v15 = vadd.f32 %v3398_v13, %v3146_v39  ;;  %v7876_v38 = vld [vmem:[%s9810_s5 + $0x10] sm:$0xff]  }
 0x287   :  { %v3095_v16 = vpop.f32.mrf.mxu1  ;;  %v7386_v18 = vpop.f32.mrf.mxu0  ;;  %7173 = vmatpush3.bf16.msra.mxu1 %v7876_v38 }
 0x288   :  { %v3145_v22 = vadd.f32 %v3095_v16, %v2882_v44  ;;  %v7878_v44 = vld [vmem:[%s9810_s5 + $0x48] sm:$0xff]  }
 0x289   :  { %v3097_v25 = vpop.f32.mrf.mxu1  ;;  %v3401_v20 = vpop.f32.mrf.mxu0  ;;  %7174 = vmatprep.subr.bf16.mxu1 %v7878_v44 }
 0x28b   :  { %v3098_v46 = vpop.f32.mrf.mxu1  ;;  %v7387_v17 = vpop.f32.mrf.mxu0  ;;  %7175 = vmatpush3.bf16.msra.mxu1 %v7880_v0 }
 0x28c   :  { %7176 = vmatprep.subr.bf16.mxu1 %v7882_v52 }
 0x28d   :  { %v3275_v27 = vpop.f32.mrf.mxu1  ;;  %v3579_v28 = vpop.f32.mrf.mxu0 }
 0x28e   :  { %v3404_v29 = vadd.f32 %v3275_v27, %v3140_v55  ;;  %v9397_v30 = vadd.f32 %v3579_v28, %v3406_v56 }
 0x28f   :  { %v3277_v32 = vpop.f32.mrf.mxu1  ;;  %v3581_v33 = vpop.f32.mrf.mxu0  ;;  %7177 = vmatpush3.bf16.msra.mxu1 %v7884_v53 }
 0x290   :  { %v3405_v34 = vadd.f32 %v3277_v32, %v3141_v62  ;;  %v9402_v35 = vadd.f32 %v3581_v33, %v3407_v63  ;;  %7206 = vmatprep.subr.bf16.mxu1 %v7886_v58 }
 0x291   :  { %v3279_v36 = vpop.f32.mrf.mxu1  ;;  %v3583_v60 = vpop.f32.mrf.mxu0 }
 0x293   :  { %v3280_v39 = vpop.f32.mrf.mxu1  ;;  %v3584_v40 = vpop.f32.mrf.mxu0 }
 0x295   :  { %v3357_v42 = vpop.f32.mrf.mxu1  ;;  %v3661_v43 = vpop.f32.mrf.mxu0 }
 0x296   :  { %v3408_v41 = vadd.f32 %v3357_v42, %v3144_v14  ;;  %v9413_v45 = vadd.f32 %v3661_v43, %v3410_v15 }
 0x297   :  { %v3359_v47 = vpop.f32.mrf.mxu1  ;;  %v7394_v48 = vpop.f32.mrf.mxu0 }
 0x298   :  { %v3409_v49 = vadd.f32 %v3359_v47, %v3145_v22 }
 0x299   :  { %v3361_v50 = vpop.f32.mrf.mxu1  ;;  %v3664_v51 = vpop.f32.mrf.mxu0 }
 0x29b   :  { %v3362_v54 = vpop.f32.mrf.mxu1  ;;  %v7395_v55 = vpop.f32.mrf.mxu0 }
 0x29c   :  { %v4992_v55 = vlaneseq }
 0x29d   :  { %v3538_v56 = vpop.f32.mrf.mxu1  ;;  %v9424_v57 = vpop.f32.mrf.mxu0 }
 0x29e   :  { %v9429_v61 = vadd.f32 %v3538_v56, %v3404_v29 }
 0x29f   :  { %v3540_v59 = vpop.f32.mrf.mxu1  ;;  %v9431_v62 = vpop.f32.mrf.mxu0 }
 0x2a0   :  { %v9433_v63 = vadd.f32 %v3540_v59, %v3405_v34 }
 0x2a1   :  { %v3542_v1 = vpop.f32.mrf.mxu1  ;;  %v3846_v2 = vpop.f32.mrf.mxu0 }
 0x2a2   :  { %v9457_v2 = vshrl.u32 %v4992_v55, 7 }
 0x2a3   :  { %v3543_v4 = vpop.f32.mrf.mxu1  ;;  %v3847_v5 = vpop.f32.mrf.mxu0 }
 0x2a5   :  { %v3620_v6 = vpop.f32.mrf.mxu1  ;;  %v9435_v8 = vpop.f32.mrf.mxu0 }
 0x2a6   :  { %v3671_v10 = vadd.f32 %v3620_v6, %v3408_v41  ;;  %v3932_v6 = vadd.f32 %v9424_v57, %v9397_v30  ;;  %v5006_v30 = vsub.s32 3, %v9457_v2 }
 0x2a7   :  { %v3622_v9 = vpop.f32.mrf.mxu1  ;;  %v7402_v11 = vpop.f32.mrf.mxu0 }
 0x2a8   :  { %v9437_v7 = vadd.f32 %v3622_v9, %v3409_v49  ;;  %v3933_v11 = vadd.f32 %v9431_v62, %v9402_v35 }
 0x2a9   :  { %v3624_v12 = vpop.f32.mrf.mxu1  ;;  %v3927_v13 = vpop.f32.mrf.mxu0 }
 0x2aa   :  { %v5002_v13 = vsub.s32 2, %v9457_v2 }
 0x2ab   :  { %v3625_v14 = vpop.f32.mrf.mxu1  ;;  %v7403_v15 = vpop.f32.mrf.mxu0 }
 0x2ad   :  { %v9439_v16 = vpop.f32.mrf.mxu1  ;;  %v4105_v18 = vpop.f32.mrf.mxu0 }
 0x2ae   :  { %v4195_v12 = vadd.f32 %v4105_v18, %v3932_v6  ;;  %v3930_v55 = vadd.f32 %v9439_v16, %v9429_v61 }
 0x2af   :  { %v9441_v19 = vpop.f32.mrf.mxu1  ;;  %v4107_v21 = vpop.f32.mrf.mxu0 }
 0x2b1   :  { %v3805_v22 = vpop.f32.mrf.mxu1  ;;  %v4109_v23 = vpop.f32.mrf.mxu0 }
 0x2b2   :  { %v9471_v22 = vld [vmem:[%s9809_s4] sm:$0x7f]  ;;  %v4196_v23 = vadd.f32 %v4107_v21, %v3933_v11 }
 0x2b3   :  { %v3806_v24 = vpop.f32.mrf.mxu1  ;;  %v4110_v25 = vpop.f32.mrf.mxu0  ;;  %v5003_v35 = vrot.slane %v9471_v22, %v5002_v13 }
 0x2b5   :  { %v3883_v20 = vpop.f32.mrf.mxu1  ;;  %v4187_v46 = vpop.f32.mrf.mxu0 }
 0x2b6   :  { %v3934_v17 = vadd.f32 %v3883_v20, %v3671_v10 }
 0x2b7   :  { %v9443_v26 = vpop.f32.mrf.mxu1  ;;  %v7410_v27 = vpop.f32.mrf.mxu0 }
 0x2b8   :  { %v3936_v27 = vadd.f32 %v9435_v8, %v9413_v45 }
 0x2b9   :  { %v3887_v28 = vpop.f32.mrf.mxu1  ;;  %v4190_v29 = vpop.f32.mrf.mxu0 }
 0x2bb   :  { %v3888_v31 = vpop.f32.mrf.mxu1  ;;  %v7411_v32 = vpop.f32.mrf.mxu0 }
 0x2bc   :  { %v5007_v31 = vrot.slane %v9471_v22, %v5006_v30 }
 0x2bd   :  { %v9445_v33 = vpop.f32.mrf.mxu1  ;;  %v4369_v34 = vpop.f32.mrf.mxu0 }
 0x2be   :  { %v4459_v24 = vadd.f32 %v4369_v34, %v4195_v12  ;;  %v4199_v34 = vadd.f32 %v4187_v46, %v3936_v27  ;;  %v4193_v6 = vadd.f32 %v9445_v33, %v3930_v55 }
 0x2bf   :  { %v9447_v36 = vpop.f32.mrf.mxu1  ;;  %v4371_v60 = vpop.f32.mrf.mxu0 }
 0x2c0   :  { %v4460_v20 = vadd.f32 %v4371_v60, %v4196_v23  ;;  %v5018_v60 = vsub.s32 6, %v9457_v2 }
 0x2c1   :  { %v4068_v37 = vpop.f32.mrf.mxu1  ;;  %v4373_v38 = vpop.f32.mrf.mxu0 }
 0x2c2   :  { %v5019_v46 = vrot.slane %v9471_v22, %v5018_v60 }
 0x2c3   :  { %v4069_v39 = vpop.f32.mrf.mxu1  ;;  %v4374_v40 = vpop.f32.mrf.mxu0 }
 0x2c5   :  { %v4146_v42 = vpop.f32.mrf.mxu1  ;;  %v4451_v43 = vpop.f32.mrf.mxu0 }
 0x2c6   :  { %v9449_v44 = vadd.f32 %v4146_v42, %v3934_v17  ;;  %v4463_v42 = vadd.f32 %v4451_v43, %v4199_v34 }
 0x2c7   :  { %v9451_v41 = vpop.f32.mrf.mxu1  ;;  %v7418_v0 = vpop.f32.mrf.mxu0 }
 0x2c9   :  { %v4150_v47 = vpop.f32.mrf.mxu1  ;;  %v4454_v48 = vpop.f32.mrf.mxu0 }
 0x2cb   :  { %v4151_v49 = vpop.f32.mrf.mxu1  ;;  %v7419_v50 = vpop.f32.mrf.mxu0 }
 0x2cd   :  { %v9453_v51 = vpop.f32.mrf.mxu1  ;;  %v4632_v52 = vpop.f32.mrf.mxu0 }
 0x2ce   :  { %v4722_v17 = vadd.f32 %v4632_v52, %v4459_v24  ;;  %v4457_v61 = vadd.f32 %v9453_v51, %v4193_v6  ;;  %v3935_v51 = vadd.f32 %v9443_v26, %v9437_v7 }
 0x2cf   :  { %v9455_v53 = vpop.f32.mrf.mxu1  ;;  %v4634_v54 = vpop.f32.mrf.mxu0 }
 0x2d0   :  { %v4723_v28 = vadd.f32 %v4634_v54, %v4460_v20 }
 0x2d1   :  { %v4332_v56 = vpop.f32.mrf.mxu1  ;;  %v4636_v58 = vpop.f32.mrf.mxu0 }
 0x2d3   :  { %v4333_v59 = vpop.f32.mrf.mxu1  ;;  %v4637_v1 = vpop.f32.mrf.mxu0 }
 0x2d4   :  { %v4994_v1 = vsub.s32 0, %v9457_v2 }
 0x2d5   :  { %v9459_v4 = vpop.f32.mrf.mxu1  ;;  %v4714_v5 = vpop.f32.mrf.mxu0 }
 0x2d6   :  { %v4726_v48 = vadd.f32 %v4714_v5, %v4463_v42  ;;  %v3931_v5 = vadd.f32 %v9441_v19, %v9433_v63  ;;  %v4995_v33 = vrot.slane %v9471_v22, %v4994_v1 }
 0x2d7   :  { %v9463_v10 = vpop.f32.mrf.mxu1  ;;  %v7426_v9 = vpop.f32.mrf.mxu0 }
 0x2d8   :  { %v4194_v13 = vadd.f32 %v9447_v36, %v3931_v5 }
 0x2d9   :  { %v4414_v14 = vpop.f32.mrf.mxu1  ;;  %v4717_v15 = vpop.f32.mrf.mxu0 }
 0x2da   :  { %v4998_v14 = vsub.s32 1, %v9457_v2  ;;  %v4458_v24 = vadd.f32 %v9455_v53, %v4194_v13  ;;  %v4198_v53 = vadd.f32 %v9451_v41, %v3935_v51 }
 0x2db   :  { %v4415_v57 = vpop.f32.mrf.mxu1  ;;  %v7427_v25 = vpop.f32.mrf.mxu0 }
 0x2dc   :  { %v4999_v36 = vrot.slane %v9471_v22, %v4998_v14 }
 0x2dd   :  { %v4591_v62 = vpop.f32.mrf.mxu1  ;;  %v4895_v18 = vpop.f32.mrf.mxu0 }
 0x2de   :  { %v4985_v29 = vadd.f32 %v4895_v18, %v4722_v17  ;;  %v4720_v63 = vadd.f32 %v4591_v62, %v4457_v61 }
 0x2df   :  { %v4593_v32 = vpop.f32.mrf.mxu1  ;;  %v4897_v21 = vpop.f32.mrf.mxu0 }
 0x2e0   :  { %v9478_v37 = vadd.f32 %v5003_v35, %v4985_v29  ;;  %v4986_v38 = vadd.f32 %v4897_v21, %v4723_v28  ;;  %v4721_v57 = vadd.f32 %v4593_v32, %v4458_v24  ;;  %v5014_v28 = vsub.s32 5, %v9457_v2 }
 0x2e1   :  { %v4595_v39 = vpop.f32.mrf.mxu1  ;;  %v4899_v40 = vpop.f32.mrf.mxu0  ;;  %v4462_v32 = vadd.f32 %v9463_v10, %v4198_v53  ;;  %v7874_v53 = vld [vmem:[%s9810_s5 + $0x188] sm:$0xff]  }
 0x2e2   :  { %v5043_v0 = vmin.f32 %v9478_v37, 20.0  ;;  %v9482_v47 = vadd.f32 %v5007_v31, %v4986_v38  ;;  %v5015_v41 = vrot.slane %v9471_v22, %v5014_v28  ;;  %vm5036_vm11 = vcmp.gt.f32.partialorder %v9478_v37, 20.0 }
 0x2e3   :  { %v4596_v45 = vpop.f32.mrf.mxu1  ;;  %v4900_v8 = vpop.f32.mrf.mxu0 }
 0x2e4   :  { %v5052_v49 = vmul.f32 1.442695, %v5043_v0  ;;  %v5044_v50 = vmin.f32 %v9482_v47, 20.0  ;;  %vm5037_vm12 = vcmp.gt.f32.partialorder %v9482_v47, 20.0 }
 0x2e5   :  { %v9486_v52 = vpop.f32.mrf.mxu1  ;;  %v4977_v54 = vpop.f32.mrf.mxu0 }
 0x2e6   :  { %7964 = vpow2.f32 %v5052_v49  ;;  %v5054_v43 = vmul.f32 1.442695, %v5044_v50  ;;  %v4989_v56 = vadd.f32 %v4977_v54, %v4726_v48  ;;  %v4461_v48 = vadd.f32 %v9459_v4, %v9449_v44 }
 0x2e7   :  { %v4675_v58 = vpop.f32.mrf.mxu1  ;;  %v7434_v59 = vpop.f32.mrf.mxu0  ;;  %v5010_v49 = vsub.s32 4, %v9457_v2 }
 0x2e8   :  { %7966 = vpow2.f32 %v5054_v43  ;;  %v9494_v9 = vadd.f32 %v5019_v46, %v4989_v56  ;;  %v4725_v60 = vadd.f32 %v4675_v58, %v4462_v32  ;;  %v4724_v55 = vadd.f32 %v9486_v52, %v4461_v48 }
 0x2e9   :  { %v4677_v11 = vpop.f32.mrf.mxu1  ;;  %v4980_v12 = vpop.f32.mrf.mxu0  ;;  %v5011_v58 = vrot.slane %v9471_v22, %v5010_v49  ;;  %v7885_v49 = vld [vmem:[%s9812_s7 + $0x30] sm:$0xff]  }
 0x2ea   :  { %v5047_v16 = vmin.f32 %v9494_v9, 20.0  ;;  %vm5040_vm15 = vcmp.gt.f32.partialorder %v9494_v9, 20.0 }
 0x2eb   :  { %v4678_v15 = vpop.f32.mrf.mxu1  ;;  %v7435_v23 = vpop.f32.mrf.mxu0 }
 0x2ec   :  { %v5060_v19 = vmul.f32 1.442695, %v5047_v16 }
 0x2ed   :  { %v4854_v30 = vpop.f32.mrf.mxu1 }
 0x2ee   :  { %7968 = vpow2.f32 %v5060_v19  ;;  %v4983_v25 = vadd.f32 %v4854_v30, %v4720_v63 }
 0x2ef   :  { %v4856_v20 = vpop.f32.mrf.mxu1 }
 0x2f0   :  { %v9505_v17 = vadd.f32 %v4995_v33, %v4983_v25  ;;  %v4984_v35 = vadd.f32 %v4856_v20, %v4721_v57 }
 0x2f1   :  { %v4858_v18 = vpop.f32.mrf.mxu1 }
 0x2f2   :  { %v5041_v62 = vmin.f32 %v9505_v17, 20.0  ;;  %v9509_v27 = vadd.f32 %v4999_v36, %v4984_v35  ;;  %vm5034_vm3 = vcmp.gt.f32.partialorder %v9505_v17, 20.0 }
 0x2f3   :  { %v7965_v29 = vpop.eup %7964  ;;  %v4859_v31 = vpop.f32.mrf.mxu1 }
 0x2f4   :  { %v5080_v21 = vadd.f32 1.0, %v7965_v29  ;;  %v5048_v34 = vmul.f32 1.442695, %v5041_v62  ;;  %v5042_v7 = vmin.f32 %v9509_v27, 20.0  ;;  %v5083_v54 = vmul.f32 -0.5, %v7965_v29 }
 0x2f5   :  { %v7967_v38 = vpop.eup %7966  ;;  %v4936_v26 = vpop.f32.mrf.mxu1  ;;  %v5086_v6 = vand.u32 2147483647, %v7965_v29  ;;  %vm5035_vm5 = vcmp.gt.f32.partialorder %v9509_v27, 20.0 }
 0x2f6   :  { %7970 = vlog2.f32 %v5080_v21  ;;  %v5050_v39 = vmul.f32 1.442695, %v5042_v7  ;;  %v5089_v42 = vadd.f32 1.0, %v7967_v38  ;;  %v4987_v56 = vadd.f32 %v4936_v26, %v4724_v55  ;;  %v7887_v55 = vld [vmem:[%s9812_s7 + $0x68] sm:$0xff]  }
 0x2f7   :  { %7972 = vpow2.f32 %v5048_v34  ;;  %v4938_v40 = vpop.f32.mrf.mxu1  ;;  %v5092_v1 = vmul.f32 -0.5, %v7967_v38  ;;  %v5084_v5 = vadd.f32 1.0, %v5083_v54  ;;  %v5095_v16 = vand.u32 2147483647, %v7967_v38 }
 0x2f8   :  { %v4988_v0 = vadd.f32 %v4938_v40, %v4725_v60  ;;  %7974 = vpow2.f32 %v5050_v39  ;;  %v9523_v44 = vadd.f32 %v5011_v58, %v4987_v56  ;;  %vm5087_vm10 = vcmp.lt.f32.partialorder %v5086_v6, 0.0004427343  ;;  %v7889_v6 = vld [vmem:[%s9812_s7 + $0x28] sm:$0xff]  }
 0x2f9   :  { %v4940_v45 = vpop.f32.mrf.mxu1  ;;  %7976 = vlog2.f32 %v5089_v42  ;;  %v5093_v12 = vadd.f32 1.0, %v5092_v1  ;;  %v5085_v13 = vmul.f32 %v7965_v29, %v5084_v5  ;;  %vm5096_vm13 = vcmp.lt.f32.partialorder %v5095_v16, 0.0004427343  ;;  %v7888_v5 = vld [vmem:[%s9810_s5 + $0x138] sm:$0xff]  }
 0x2fa   :  { %v9515_v8 = vadd.f32 %v5015_v41, %v4988_v0  ;;  %v5045_v23 = vmin.f32 %v9523_v44, 20.0  ;;  %v7881_v41 = vld [vmem:[%s9812_s7 + $0x38] sm:$0xff]   ;;  %v7883_v45 = vld [vmem:[%s9812_s7 + $0x70] sm:$0xff]   ;;  %vm5038_vm9 = vcmp.gt.f32.partialorder %v9523_v44, 20.0 }
 0x2fb   :  { %v7969_v10 = vpop.eup %7968  ;;  %v4941_v50 = vpop.f32.mrf.mxu1  ;;  %v5094_v63 = vmul.f32 %v7967_v38, %v5093_v12  ;;  %v7879_v38 = vld [vmem:[%s9812_s7 + $0x78] sm:$0xff]  }
 0x2fc   :  { %v5116_v46 = vadd.f32 1.0, %v7969_v10  ;;  %v5046_v43 = vmin.f32 %v9515_v8, 20.0  ;;  %v5119_v61 = vmul.f32 -0.5, %v7969_v10  ;;  %v5122_v57 = vand.u32 2147483647, %v7969_v10 }
 0x2fd   :  { %v5056_v20 = vmul.f32 1.442695, %v5045_v23  ;;  %vm5039_vm7 = vcmp.gt.f32.partialorder %v9515_v8, 20.0 }
 0x2fe   :  { %7978 = vlog2.f32 %v5116_v46  ;;  %v5058_v59 = vmul.f32 1.442695, %v5046_v43  ;;  %v5120_v33 = vadd.f32 1.0, %v5119_v61  ;;  %vm5123_vm14 = vcmp.lt.f32.partialorder %v5122_v57, 0.0004427343  ;;  %v7892_v61 = vld [vmem:[%s9810_s5 + $0x130] sm:$0xff]  }
 0x2ff   :  { %v7900_v57 = vld [vmem:[%s9810_s5 + $0x120] sm:$0xff]  }
 0x300   :  { %7980 = vpow2.f32 %v5058_v59  ;;  %v5121_v28 = vmul.f32 %v7969_v10, %v5120_v33  ;;  %v7897_v33 = vld [vmem:[%s9812_s7 + $0x18] sm:$0xff]  }
 0x303   :  { %v7971_v11 = vpop.eup %7970 }
 0x304   :  { %v7973_v2 = vpop.eup %7972  ;;  %v5082_v4 = vmul.f32 0.6931472, %v7971_v11 }
 0x305   :  { %v5062_v52 = vadd.f32 1.0, %v7973_v2  ;;  %v9525_v14 = vpop.eup %7974  ;;  %v5065_v29 = vmul.f32 -0.5, %v7973_v2  ;;  %v5068_v26 = vand.u32 2147483647, %v7973_v2 }
 0x306   :  { %v7977_v15 = vpop.eup %7976  ;;  %v5088_v22 = vsel %vm5087_vm10, %v5085_v13, %v5082_v4  ;;  %v5071_v19 = vadd.f32 1.0, %v9525_v14  ;;  %v5074_v32 = vmul.f32 -0.5, %v9525_v14 }
 0x307   :  { %7982 = vlog2.f32 %v5062_v52  ;;  %v5091_v24 = vmul.f32 0.6931472, %v7977_v15  ;;  %v5127_v30 = vsel %vm5036_vm11, %v9478_v37, %v5088_v22  ;;  %v5066_v34 = vadd.f32 1.0, %v5065_v29  ;;  %v7893_v52 = vld [vmem:[%s9812_s7 + $0x20] sm:$0xff]   ;;  %v7894_v15 = vld [vmem:[%s9810_s5 + $0x168] sm:$0xff]   ;;  %v7895_v22 = vld [vmem:[%s9812_s7 + $0x58] sm:$0xff]  }
 0x308   :  { %7984 = vlog2.f32 %v5071_v19  ;;  %v9538_v62 = vpack.c.bf16 %v5127_v30, %v5127_v30  ;;  %v5075_v39 = vadd.f32 1.0, %v5074_v32  ;;  %vm5069_vm2 = vcmp.lt.f32.partialorder %v5068_v26, 0.0004427343  ;;  %v7896_v19 = vld [vmem:[%s9810_s5 + $0x128] sm:$0xff]   ;;  %v7898_v30 = vld [vmem:[%s9810_s5 + $0x160] sm:$0xff]  }
 0x309   :  { %v5097_v25 = vsel %vm5096_vm13, %v5094_v63, %v5091_v24  ;;  %7986 = vpow2.f32 %v5056_v20  ;;  %v5067_v0 = vmul.f32 %v7973_v2, %v5066_v34  ;;  %v7903_v20 = vld [vmem:[%s9812_s7 + $0x48] sm:$0xff]   ;;  %v7907_v29 = vld [vmem:[%s9812_s7 + $0x40] sm:$0xff]   ;;  %v7911_v34 = vld [vmem:[%s9812_s7 + $0x178] sm:$0xff]  }
 0x30a   :  { %v5128_v51 = vsel %vm5037_vm12, %v9482_v47, %v5097_v25  ;;  %v7877_v47 = vld [vmem:[%s9810_s5 + $0x180] sm:$0xff]   ;;  %v5076_v46 = vmul.f32 %v9525_v14, %v5075_v39  ;;  %v7901_v25 = vld [vmem:[%s9812_s7 + $0x10] sm:$0xff]   ;;  %v7912_v26 = vld [vmem:[%s9810_s5 + $0x108] sm:$0xff]  }
 0x30b   :  { %v7979_v36 = vpop.eup %7978  ;;  %v9533_v18 = vpack.c.bf16 %v5128_v51, %v5128_v51  ;;  %v7904_v51 = vld [vmem:[%s9810_s5 + $0x118] sm:$0xff]   ;;  %v7914_v39 = vld [vmem:[%s9810_s5 + $0x140] sm:$0xff]  }
 0x30c   :  { %v5118_v35 = vmul.f32 0.6931472, %v7979_v36  ;;  %v7902_v36 = vld [vmem:[%s9810_s5 + $0x158] sm:$0xff]  }
 0x30d   :  { %v9540_v31 = vpop.eup %7980  ;;  %5621 = vmatprep.mubr.bf16.mxu0 %v9533_v18 }
 0x30e   :  { %v5124_v37 = vsel %vm5123_vm14, %v5121_v28, %v5118_v35  ;;  %5622 = vmatmul.mubr.bf16.vlgmr.msra.gmra.mxu0 %v9538_v62  ;;  %v5107_v21 = vadd.f32 1.0, %v9540_v31  ;;  %v5110_v54 = vmul.f32 -0.5, %v9540_v31  ;;  %v5113_v4 = vand.u32 2147483647, %v9540_v31  ;;  %v7905_v35 = vld [vmem:[%s9812_s7 + $0x8] sm:$0xff]   ;;  %v7906_v28 = vld [vmem:[%s9810_s5 + $0x150] sm:$0xff]  }
 0x30f   :  { %7437 = vmatpush3.bf16.msra.mxu0 %v7874_v53  ;;  %7440 = vmatprep.mubr.msk.bf16.mxu0 %vm8060_vm1, %v8058_v3  ;;  %v5131_v7 = vsel %vm5040_vm15, %v9494_v9, %v5124_v37  ;;  %v5077_v9 = vand.u32 2147483647, %v9525_v14  ;;  %v7908_v37 = vld [vmem:[%s9810_s5 + $0x110] sm:$0xff]  }
 0x310   :  { %7438 = vmatprep.subr.bf16.mxu0 %v8058_v3  ;;  %7988 = vlog2.f32 %v5107_v21  ;;  %v9560_v40 = vpack.c.bf16 %v5131_v7, %v5131_v7  ;;  %v5111_v11 = vadd.f32 1.0, %v5110_v54  ;;  %vm5114_vm6 = vcmp.lt.f32.partialorder %v5113_v4, 0.0004427343  ;;  %v7910_v21 = vld [vmem:[%s9810_s5 + $0x148] sm:$0xff]   ;;  %v7936_v4 = vld [vmem:[%s9812_s7 + $0x98] sm:$0xff]  }
 0x311   :  { %vm5078_vm4 = vcmp.lt.f32.partialorder %v5077_v9, 0.0004427343  ;;  %v7917_v9 = vld [vmem:[%s9812_s7 + $0x130] sm:$0xff]   ;;  %v7921_v54 = vld [vmem:[%s9812_s7 + $0x128] sm:$0xff]  }
 0x312   :  { %v5112_v14 = vmul.f32 %v9540_v31, %v5111_v11  ;;  %v7932_v11 = vld [vmem:[%s9812_s7 + $0xa0] sm:$0xff]  }
 0x313   :  { %7439 = vmatpush3.bf16.msra.mxu0 %v7877_v47  ;;  %v7909_v47 = vld [vmem:[%s9812_s7] sm:$0xff]  }
 0x314   :  { %v7983_v60 = vpop.eup %7982  ;;  %7231 = vmatprep.subr.bf16.mxu0 %v7879_v38 }
 0x315   :  { %v5064_v42 = vmul.f32 0.6931472, %v7983_v60  ;;  %v7985_v10 = vpop.eup %7984  ;;  %v7913_v60 = vld [vmem:[%s9812_s7 + $0x138] sm:$0xff]  }
 0x316   :  { %7441 = vmatmul.mubr.msk.bf16.vlgmr.msra.gmra.mxu0 %vm534_vm0, %v9560_v40  ;;  %v5073_v50 = vmul.f32 0.6931472, %v7985_v10  ;;  %v9580_v59 = vpop.eup %7986  ;;  %v7918_v10 = vld [vmem:[%s9812_s7 + $0xf8] sm:$0xff]  }
 0x317   :  { %v5070_v48 = vsel %vm5069_vm2, %v5067_v0, %v5064_v42  ;;  %7232 = vmatpush3.bf16.msra.mxu0 %v7881_v41  ;;  %v5098_v13 = vadd.f32 1.0, %v9580_v59  ;;  %v5101_v53 = vmul.f32 -0.5, %v9580_v59  ;;  %v5104_v38 = vand.u32 2147483647, %v9580_v59  ;;  %v7915_v42 = vld [vmem:[%s9812_s7 + $0x170] sm:$0xff]  }
 0x318   :  { %7233 = vmatprep.subr.bf16.mxu0 %v7883_v45  ;;  %v5125_v43 = vsel %vm5034_vm3, %v9505_v17, %v5070_v48  ;;  %v5079_v56 = vsel %vm5078_vm4, %v5076_v46, %v5073_v50  ;;  %v7890_v17 = vld [vmem:[%s9810_s5 + $0x170] sm:$0xff]   ;;  %v7916_v45 = vld [vmem:[%s9810_s5 + $0x100] sm:$0xff]   ;;  %v7919_v48 = vld [vmem:[%s9812_s7 + $0x168] sm:$0xff]  }
 0x319   :  { %v5126_v58 = vsel %vm5035_vm5, %v9509_v27, %v5079_v56  ;;  %v9588_v2 = vpack.c.bf16 %v5125_v43, %v5125_v43  ;;  %v7891_v27 = vld [vmem:[%s9812_s7 + $0x60] sm:$0xff]   ;;  %7990 = vlog2.f32 %v5098_v13  ;;  %v5102_v32 = vadd.f32 1.0, %v5101_v53  ;;  %v7920_v50 = vld [vmem:[%s9812_s7 + $0xb8] sm:$0xff]   ;;  %v7924_v43 = vld [vmem:[%s9812_s7 + $0xb0] sm:$0xff]  }
 0x31a   :  { %v5133_v1 = vpack.c.bf16 %v5126_v58, %v5126_v58  ;;  %vm5105_vm8 = vcmp.lt.f32.partialorder %v5104_v38, 0.0004427343  ;;  %v7925_v56 = vld [vmem:[%s9812_s7 + $0x120] sm:$0xff]   ;;  %v7926_v58 = vld [vmem:[%s9812_s7 + $0xe8] sm:$0xff]   ;;  %v7938_v13 = vld [vmem:[%s9812_s7 + $0xd0] sm:$0xff]  }
 0x31b   :  { %7234 = vmatpush3.bf16.msra.mxu0 %v7885_v49  ;;  %v5103_v41 = vmul.f32 %v9580_v59, %v5102_v32  ;;  %v7927_v59 = vld [vmem:[%s9812_s7 + $0x158] sm:$0xff]  }
 0x31c   :  { %7235 = vmatprep.subr.bf16.mxu0 %v7887_v55  ;;  %5581 = vmatprep.mubr.bf16.mxu1 %v5133_v1  ;;  %v7922_v55 = vld [vmem:[%s9812_s7 + $0xf0] sm:$0xff]  }
 0x31d   :  { %6148 = vmatprep.mubr.bf16.mxu0 %v5133_v1  ;;  %v7989_v12 = vpop.eup %7988  ;;  %5582 = vmatmul.mubr.bf16.vlgmr.msra.gmra.mxu1 %v9588_v2  ;;  %v7929_v1 = vld [vmem:[%s9812_s7 + $0x118] sm:$0xff]  }
 0x31e   :  { %7207 = vmatpush3.bf16.msra.mxu1 %v7888_v5  ;;  %v5109_v16 = vmul.f32 0.6931472, %v7989_v12  ;;  %v7930_v5 = vld [vmem:[%s9812_s7 + $0xe0] sm:$0xff]   ;;  %v7937_v12 = vld [vmem:[%s9812_s7 + $0x108] sm:$0xff]  }
 0x31f   :  { %7236 = vmatpush3.bf16.msra.mxu0 %v7889_v6  ;;  %7208 = vmatprep.subr.bf16.mxu1 %v7890_v17  ;;  %v7931_v6 = vld [vmem:[%s9812_s7 + $0x150] sm:$0xff]   ;;  %v7934_v17 = vld [vmem:[%s9812_s7 + $0xd8] sm:$0xff]  }
 0x320   :  { %7237 = vmatprep.subr.bf16.mxu0 %v7891_v27  ;;  %v5115_v23 = vsel %vm5114_vm6, %v5112_v14, %v5109_v16  ;;  %v7935_v27 = vld [vmem:[%s9812_s7 + $0x148] sm:$0xff]   ;;  %v7941_v16 = vld [vmem:[%s9812_s7 + $0x100] sm:$0xff]  }
 0x321   :  { %v5130_v24 = vsel %vm5039_vm7, %v9515_v8, %v5115_v23  ;;  %v7899_v8 = vld [vmem:[%s9812_s7 + $0x50] sm:$0xff]   ;;  %v7942_v14 = vld [vmem:[%s9812_s7 + $0xc8] sm:$0xff]   ;;  %v7945_v23 = vld [vmem:[%s9812_s7 + $0x80] sm:$0xff]  }
 0x322   :  { %7209 = vmatpush3.bf16.msra.mxu1 %v7892_v61  ;;  %v5137_v63 = vpack.c.bf16 %v5130_v24, %v5130_v24  ;;  %v7939_v61 = vld [vmem:[%s9812_s7 + $0x140] sm:$0xff]   ;;  %v7946_v24 = vld [vmem:[%s9812_s7 + $0x188] sm:$0xff]  }
 0x323   :  { %7238 = vmatpush3.bf16.msra.mxu0 %v7893_v52  ;;  %7210 = vmatprep.subr.bf16.mxu1 %v7894_v15  ;;  %v7940_v52 = vld [vmem:[%s9812_s7 + $0x90] sm:$0xff]   ;;  %v7943_v15 = vld [vmem:[%s9812_s7 + $0x88] sm:$0xff]  }
 0x324   :  { %7239 = vmatprep.subr.bf16.mxu0 %v7895_v22  ;;  %5661 = vmatprep.mubr.bf16.mxu1 %v5137_v63  ;;  %v7944_v22 = vld [vmem:[%s9812_s7 + $0xc0] sm:$0xff]  }
 0x326   :  { %7211 = vmatpush3.bf16.msra.mxu1 %v7896_v19  ;;  %v7991_v31 = vpop.eup %7990 }
 0x327   :  { %7240 = vmatpush3.bf16.msra.mxu0 %v7897_v33  ;;  %7212 = vmatprep.subr.bf16.mxu1 %v7898_v30  ;;  %v5100_v7 = vmul.f32 0.6931472, %v7991_v31 }
 0x328   :  { %7241 = vmatprep.subr.bf16.mxu0 %v7899_v8 }
 0x329   :  { %v5106_v0 = vsel %vm5105_vm8, %v5103_v41, %v5100_v7 }
 0x32a   :  { %7213 = vmatpush3.bf16.msra.mxu1 %v7900_v57  ;;  %v5129_v49 = vsel %vm5038_vm9, %v9523_v44, %v5106_v0  ;;  %v7923_v44 = vld [vmem:[%s9812_s7 + $0x160] sm:$0xff]  }
 0x32b   :  { %7242 = vmatpush3.bf16.msra.mxu0 %v7901_v25  ;;  %7214 = vmatprep.subr.bf16.mxu1 %v7902_v36  ;;  %v5136_v46 = vpack.c.bf16 %v5129_v49, %v5129_v49 }
 0x32c   :  { %7243 = vmatprep.subr.bf16.mxu0 %v7903_v20 }
 0x32e   :  { %7215 = vmatpush3.bf16.msra.mxu1 %v7904_v51 }
 0x32f   :  { %7244 = vmatpush3.bf16.msra.mxu0 %v7905_v35  ;;  %7216 = vmatprep.subr.bf16.mxu1 %v7906_v28 }
 0x330   :  { %7245 = vmatprep.subr.bf16.mxu0 %v7907_v29 }
 0x332   :  { %7217 = vmatpush3.bf16.msra.mxu1 %v7908_v37 }
 0x333   :  { %7246 = vmatpush3.bf16.msra.mxu0 %v7909_v47  ;;  %7218 = vmatprep.subr.bf16.mxu1 %v7910_v21 }
 0x334   :  { %7275 = vmatprep.subr.bf16.mxu0 %v7911_v34 }
 0x336   :  { %6149 = vmatmul.mubr.bf16.vlgmr.msra.gmra.mxu0 %v9588_v2  ;;  %7219 = vmatpush3.bf16.msra.mxu1 %v7912_v26  ;;  %v7933_v2 = vld [vmem:[%s9812_s7 + $0x110] sm:$0xff]  }
 0x337   :  { %7276 = vmatpush3.bf16.msra.mxu0 %v7913_v60  ;;  %6228 = vmatprep.mubr.bf16.mxu0 %v5137_v63  ;;  %v7947_v63 = vld [vmem:[%s9812_s7 + $0x180] sm:$0xff]  }
 0x338   :  { %7220 = vmatprep.subr.bf16.mxu1 %v7914_v39  ;;  %7277 = vmatprep.subr.bf16.mxu0 %v7915_v42 }
 0x33a   :  { %7221 = vmatpush3.bf16.msra.mxu1 %v7916_v45 }
 0x33b   :  { %7278 = vmatpush3.bf16.msra.mxu0 %v7917_v9  ;;  %7253 = vmatprep.subr.bf16.mxu1 %v7918_v10 }
 0x33c   :  { %7279 = vmatprep.subr.bf16.mxu0 %v7919_v48 }
 0x33d   :  { %5662 = vmatmul.mubr.bf16.vlgmr.msra.gmra.mxu1 %v5136_v46 }
 0x33e   :  { %7254 = vmatpush3.bf16.msra.mxu1 %v7920_v50  ;;  %6188 = vmatprep.mubr.bf16.mxu1 %v9533_v18  ;;  %v7928_v18 = vld [vmem:[%s9812_s7 + $0xa8] sm:$0xff]  }
 0x33f   :  { %7280 = vmatpush3.bf16.msra.mxu0 %v7921_v54  ;;  %7255 = vmatprep.subr.bf16.mxu1 %v7922_v55 }
 0x340   :  { %7281 = vmatprep.subr.bf16.mxu0 %v7923_v44 }
 0x342   :  { %7256 = vmatpush3.bf16.msra.mxu1 %v7924_v43 }
 0x343   :  { %7282 = vmatpush3.bf16.msra.mxu0 %v7925_v56  ;;  %7257 = vmatprep.subr.bf16.mxu1 %v7926_v58 }
 0x344   :  { %7283 = vmatprep.subr.bf16.mxu0 %v7927_v59 }
 0x346   :  { %7258 = vmatpush3.bf16.msra.mxu1 %v7928_v18 }
 0x347   :  { %7284 = vmatpush3.bf16.msra.mxu0 %v7929_v1  ;;  %7259 = vmatprep.subr.bf16.mxu1 %v7930_v5 }
 0x348   :  { %7285 = vmatprep.subr.bf16.mxu0 %v7931_v6 }
 0x34a   :  { %7260 = vmatpush3.bf16.msra.mxu1 %v7932_v11 }
 0x34b   :  { %7286 = vmatpush3.bf16.msra.mxu0 %v7933_v2  ;;  %7261 = vmatprep.subr.bf16.mxu1 %v7934_v17 }
 0x34c   :  { %7287 = vmatprep.subr.bf16.mxu0 %v7935_v27 }
 0x34e   :  { %7262 = vmatpush3.bf16.msra.mxu1 %v7936_v4 }
 0x34f   :  { %7288 = vmatpush3.bf16.msra.mxu0 %v7937_v12  ;;  %7263 = vmatprep.subr.bf16.mxu1 %v7938_v13 }
 0x350   :  { %7289 = vmatprep.subr.bf16.mxu0 %v7939_v61 }
 0x352   :  { %7264 = vmatpush3.bf16.msra.mxu1 %v7940_v52 }
 0x353   :  { %7290 = vmatpush3.bf16.msra.mxu0 %v7941_v16  ;;  %7265 = vmatprep.subr.bf16.mxu1 %v7942_v14 }
 0x356   :  { %6229 = vmatmul.mubr.bf16.vlgmr.msra.gmra.mxu0 %v5136_v46  ;;  %7266 = vmatpush3.bf16.msra.mxu1 %v7943_v15 }
 0x357   :  { %7267 = vmatprep.subr.bf16.mxu1 %v7944_v22 }
 0x35a   :  { %7268 = vmatpush3.bf16.msra.mxu1 %v7945_v23 }
 0x35b   :  { %7444 = vmatprep.subr.bf16.mxu1 %v8058_v3 }
 0x35d   :  { %6189 = vmatmul.mubr.bf16.vlgmr.msra.gmra.mxu1 %v9538_v62 }
 0x35e   :  { %7445 = vmatpush3.bf16.msra.mxu1 %v7946_v24  ;;  %7448 = vmatprep.mubr.msk.bf16.mxu1 %vm8060_vm1, %v8058_v3 }
 0x35f   :  { %7446 = vmatprep.subr.bf16.mxu1 %v8058_v3  ;;  %v6922_v3 = vld [vmem:[%s9811_s6] ss:$0 sm:$0xff] }
 0x362   :  { %7447 = vmatpush3.bf16.msra.mxu1 %v7947_v63 }
 0x365   :  { %7449 = vmatmul.mubr.msk.bf16.vlgmr.msra.gmra.mxu1 %vm534_vm0, %v9560_v40  ;;  %vm6276_vm0 = vcmask 254976  }
 0x3ce   :  { %v7200_v19 = vpop.f32.mrf.mxu0 }
 0x3d0   :  { %v7201_v33 = vpop.f32.mrf.mxu0 }
 0x3d1   :  { %v7202_v21 = vadd.f32 %v7201_v33, %v7200_v19 }
 0x3d2   :  { %v7203_v30 = vpop.f32.mrf.mxu0 }
 0x3d4   :  { %v7204_v8 = vpop.f32.mrf.mxu0 }
 0x3d6   :  { %v5703_v57 = vpop.f32.mrf.mxu0 }
 0x3d8   :  { %v7442_v62 = vpop.f32.mrf.mxu0 }
 0x3da   :  { %v5706_v25 = vpop.f32.mrf.mxu0 }
 0x3dc   :  { %v7443_v36 = vpop.f32.mrf.mxu0 }
 0x3dd   :  { %v7178_v20 = vpop.f32.mrf.mxu1 }
 0x3df   :  { %v7179_v51 = vpop.f32.mrf.mxu1 }
 0x3e0   :  { %v7180_v31 = vadd.f32 %v7179_v51, %v7178_v20 }
 0x3e1   :  { %v7181_v35 = vpop.f32.mrf.mxu1 }
 0x3e2   :  { %v5584_v47 = vadd.f32 %v7180_v31, %v6922_v3 }
 0x3e3   :  { %v7182_v53 = vpop.f32.mrf.mxu1 }
 0x3e4   :  { %v5624_v38 = vadd.f32 %v7202_v21, %v5584_v47 }
 0x3f6   :  { %v7247_v28 = vpop.f32.mrf.mxu0 }
 0x3f8   :  { %v7248_v29 = vpop.f32.mrf.mxu0 }
 0x3fa   :  { %v7250_v40 = vpop.f32.mrf.mxu0 }
 0x3fc   :  { %v7251_v37 = vpop.f32.mrf.mxu0 }
 0x3fd   :  { %v7222_v32 = vpop.f32.mrf.mxu1 }
 0x3ff   :  { %v7223_v34 = vpop.f32.mrf.mxu1 }
 0x400   :  { %v7224_v7 = vadd.f32 %v7223_v34, %v7222_v32 }
 0x401   :  { %v7225_v26 = vpop.f32.mrf.mxu1 }
 0x402   :  { %v5664_v60 = vadd.f32 %v7224_v7, %v5624_v38 }
 0x403   :  { %v7226_v41 = vpop.f32.mrf.mxu1 }
 0x404   :  { %v5704_v39 = vadd.f32 %v5703_v57, %v5664_v60 }
 0x406   :  { %6277 = vst.msk [vmem:[#allocation4] sm:$0x3] %vm6276_vm0, %v5704_v39 }
 0x407   :  { %8005 = shalt.err (!%p8002_p4)
}
 0x408   :  { %6305 = dma.vmem_to_hbm [thread:$0]  %s6303_s0, 32, %s9816_s11, [#allocation5]   ;;  %v7249_v9 = vadd.f32 %v7248_v29, %v7247_v28  ;;  %v6974_v48 = vld [vmem:[%s9813_s8] ss:$0 sm:$0xff] }
 0x409   :  { %s8062_s4 = smov [#allocation6]  }
 0x40a   :  { %v6151_v46 = vadd.f32 %v7249_v9, %v6974_v48  ;;  %s6312_s13 = sshll.u32 %s8062_s4, 4  ;;  %s6313_s13 = int_to_ptr.vmem [resolvable:$true] %s6312_s13 }
 0x40b   :  { %s8014_s8 = scalar_lea.vmem %s6313_s13, 32  ;;  %p8019_p6 = scmp.lt.s32.totalorder %s6313_s13, %s6313_s13 }
 0x40c   :  { %p8015_p5 = scmp.ne.s32.totalorder %s6313_s13, %s8014_s8  ;;  %p8020_p7 = scmp.lt.s32.totalorder %s8014_s8, %s8014_s8 }
 0x40e   :  { %p8021_p8 = por %p8020_p7, %p8019_p6 }
 0x410   :  { %p8022_p9 = pnand %p8021_p8, %p8015_p5 }
 0x416   :  { %v7291_v42 = vpop.f32.mrf.mxu0 }
 0x418   :  { %v7292_v0 = vpop.f32.mrf.mxu0 }
 0x419   :  { %v7293_v44 = vadd.f32 %v7292_v0, %v7291_v42 }
 0x41a   :  { %v7294_v45 = vpop.f32.mrf.mxu0 }
 0x41c   :  { %v7295_v10 = vpop.f32.mrf.mxu0 }
 0x41d   :  { %v7269_v49 = vpop.f32.mrf.mxu1 }
 0x41f   :  { %v7270_v50 = vpop.f32.mrf.mxu1 }
 0x420   :  { %v7271_v54 = vadd.f32 %v7270_v50, %v7269_v49 }
 0x421   :  { %v7272_v55 = vpop.f32.mrf.mxu1 }
 0x422   :  { %v6191_v43 = vadd.f32 %v7271_v54, %v6151_v46 }
 0x423   :  { %v7273_v56 = vpop.f32.mrf.mxu1 }
 0x424   :  { %v6231_v58 = vadd.f32 %v7293_v44, %v6191_v43 }
 0x425   :  { %v6270_v59 = vpop.f32.mrf.mxu1 }
 0x426   :  { %v6271_v18 = vadd.f32 %v6270_v59, %v6231_v58 }
 0x427   :  { %v7450_v1 = vpop.f32.mrf.mxu1 }
 0x428   :  { %v6279_v5 = vmul.f32 0.5, %v6271_v18  ;;  %6278 = vst.msk [vmem:[#allocation6] sm:$0x3] %vm6276_vm0, %v6271_v18 }
 0x429   :  { %v6273_v6 = vpop.f32.mrf.mxu1 }
 0x42a   :  { %8025 = shalt.err (!%p8022_p9)
}
 0x42b   :  { %6315 = dma.vmem_to_hbm [thread:$0]  %s6313_s13, 32, %s9817_s12, [#allocation5]   ;;  %v6280_v11 = vmul.f32 1.442695, %v6279_v5  ;;  %v7451_v2 = vpop.f32.mrf.mxu1  ;;  %v6282_v17 = vld [vmem:[%s9814_s9] sm:$0x3] }
 0x42c   :  { %s8063_s17 = smov [#allocation2]  }
 0x42d   :  { %7992 = vpow2.f32 %v6280_v11  ;;  %s6292_s18 = sshll.u32 %s8063_s17, 4  ;;  %s6293_s18 = int_to_ptr.vmem [resolvable:$true] %s6292_s18 }
 0x42e   :  { %s8034_s19 = scalar_lea.vmem %s6293_s18, 32  ;;  %p8039_p11 = scmp.lt.s32.totalorder %s6293_s18, %s6293_s18 }
 0x42f   :  { %p8035_p10 = scmp.ne.s32.totalorder %s6293_s18, %s8034_s19  ;;  %p8040_p12 = scmp.lt.s32.totalorder %s8034_s19, %s8034_s19 }
 0x431   :  { %p8041_p13 = por %p8040_p12, %p8039_p11 }
 0x433   :  { %p8042_p0 = pnand %p8041_p13, %p8035_p10 }
 0x43a   :  { %v7993_v27 = vpop.eup %7992 }
 0x43b   :  { %v6283_v4 = vmul.f32 %v7993_v27, %v6282_v17 }
 0x43d   :  { %v6284_v12 = vadd.f32 %v6283_v4, %v5704_v39 }
 0x43f   :  { %6285 = vst.msk [vmem:[#allocation2] sm:$0x3] %vm6276_vm0, %v6284_v12 }
 0x440   :  { %8045 = shalt.err (!%p8042_p0)
}
 0x441   :  { %6295 = dma.vmem_to_hbm [thread:$0]  %s6293_s18, 32, %s9815_s10, [#allocation3]  }
 0x442   :  { %8054 = dma.done.wait [#allocation3], 32  }
 0x443   :  { %8055 = vsyncadd [#allocation3], 4294967264 }
 0x444   :  { %8056 = dma.done.wait [#allocation5], 64  }
 0x445   :  { %8057 = vsyncadd [#allocation5], 4294967232 }
 0x446   :  { %6325 = vsyncpa [#allocation3], 1 }
 0x447   :  { %6326 = vsyncpa [#allocation5], 1 }

</bundles_post_ra>
